<compile_context>
chip_gen: v7x
topology: tpu7x:2x2x1
jax: 0.10.0
libtpu: 0.0.40
codegen_flags: <defaults>
</compile_context>

<pallas_src>
import math

import jax
import jax.numpy as jnp
import numpy as np
from jax import lax
from jax.experimental import pallas as pl
from jax.experimental.pallas import tpu as pltpu


def _round_up(n, m):
    return ((n + m - 1) // m) * m


def _make_lstm_kernel(L, T, Hp, Bb, I, mx_dtype, unroll):
    """Kernel body: L layers, seq_len T, padded hidden Hp, batch block Bb."""
    assert Bb % 8 == 0  # pl.multiple_of hint below relies on this

    def kernel(*refs):
        # ---- unpack refs -------------------------------------------------
        x_ref, h0_ref, c0_ref = refs[0:3]             # (T,Bb,I), (L,Bb,Hp) x2
        layer_refs = refs[3:3 + 3 * L]                 # (w_ih, w_hh, b) per layer
        w_fc_ref = refs[3 + 3 * L]                     # (1, Hp) f32
        b_fc_ref = refs[4 + 3 * L]                     # (1,) in SMEM
        out_ref, hn_ref, cn_ref = refs[5 + 3 * L:8 + 3 * L]
        gates_x_ref, seq_ref = refs[8 + 3 * L:]        # VMEM scratch

        h_last = None

        # ---- L layers, statically unrolled --------------------------------
        for l in range(L):
            w_ih_ref = layer_refs[3 * l]               # (I or Hp, 4Hp)
            w_hh_ref = layer_refs[3 * l + 1]           # (Hp, 4Hp)
            b_ref = layer_refs[3 * l + 2]              # (1, 4Hp) f32 = b_ih+b_hh

            # Hoisted input projection + bias: ONE big MXU matmul per layer.
            if l == 0:
                src = x_ref[...].reshape(T * Bb, I)    # (T*Bb, I)
            else:
                src = seq_ref[...]                     # (T*Bb, Hp)
            gx_all = (jnp.dot(src, w_ih_ref[...],
                              preferred_element_type=jnp.float32)
                      + b_ref[...])                    # f32 (T*Bb, 4Hp)
            gates_x_ref[...] = gx_all.astype(mx_dtype)

            write_seq = l < L - 1                      # last layer's seq is dead

            def step(t, carry, write_seq=write_seq, w_hh_ref=w_hh_ref):
                h, c = carry                           # vreg-resident f32 (Bb, Hp)
                row = pl.multiple_of(t * Bb, 8)
                gx = gates_x_ref[pl.ds(row, Bb), :].astype(jnp.float32)
                gates = (jnp.dot(h.astype(mx_dtype), w_hh_ref[...],
                                 preferred_element_type=jnp.float32)
                         + gx)                         # (Bb, 4Hp), order i,f,o,g
                sig = jax.nn.sigmoid(gates[:, 0:3 * Hp])      # i|f|o contiguous
                i_g = sig[:, 0 * Hp:1 * Hp]
                f_g = sig[:, 1 * Hp:2 * Hp]
                o_g = sig[:, 2 * Hp:3 * Hp]
                g_g = jnp.tanh(gates[:, 3 * Hp:4 * Hp])
                c_new = f_g * c + i_g * g_g
                h_new = o_g * jnp.tanh(c_new)
                if write_seq:
                    seq_ref[pl.ds(row, Bb), :] = h_new.astype(mx_dtype)
                return (h_new, c_new)

            h_f, c_f = lax.fori_loop(0, T, step,
                                     (h0_ref[l], c0_ref[l]), unroll=unroll)
            hn_ref[l] = h_f
            cn_ref[l] = c_f
            h_last = h_f

        # ---- fc(H, 1) on last layer / last step: VPU mul + lane reduce ----
        # Lane-dense store: broadcast the single column across 128 lanes,
        # wrapper slices [:, :1].
        fc = (jnp.sum(h_last * w_fc_ref[...], axis=-1, keepdims=True)
              + b_fc_ref[0])
        out_ref[...] = jnp.broadcast_to(fc, (Bb, 128))

    return kernel


def lstm_forward(x, h0, c0, layer_params, w_fc, b_fc, *,
                 matmul_dtype=jnp.float32, num_batch_blocks=None):
    """x: (B, T, I) batch-first (PyTorch convention). Returns (out, (hn, cn)).

    matmul_dtype: dtype of MXU operands (x / W_ih / W_hh / gates_x / seq).
                  State, biases, nonlinearities and accumulation stay f32.
    """
    B, T, I = x.shape
    L, _, H = h0.shape
    f32 = jnp.float32

    # Lane-dense hidden dim and sublane-aligned batch blocks.
    Hp = _round_up(H, 128)
    if num_batch_blocks is None:
        num_batch_blocks = 2 if B > 8 else 1   # v7x: 2 TensorCores
    Bb = _round_up(-(-B // num_batch_blocks), 8)
    Bp = Bb * num_batch_blocks
    assert Bb % 8 == 0

    # Pad batch, go time-major 3-D: (T, Bp, I); row (t, b).
    x_p = jnp.pad(x.astype(matmul_dtype), ((0, Bp - B), (0, 0), (0, 0)))
    x3 = jnp.transpose(x_p, (1, 0, 2))
    h0_p = jnp.pad(h0.astype(f32), ((0, 0), (0, Bp - B), (0, Hp - H)))
    c0_p = jnp.pad(c0.astype(f32), ((0, 0), (0, Bp - B), (0, Hp - H)))

    def prep_gate_cols(w):
        # PyTorch gate column order (i, f, g, o) -> (i, f, o, g),
        # each gate zero-padded from H to Hp lanes.
        i, f, g, o = jnp.split(w, 4, axis=-1)
        pad = [(0, 0)] * (w.ndim - 1) + [(0, Hp - H)]
        return jnp.concatenate([jnp.pad(a, pad) for a in (i, f, o, g)], axis=-1)

    flat_params = []
    for l, (w_ih, w_hh, b) in enumerate(layer_params):
        w_ih_p = prep_gate_cols(w_ih)                       # (in, 4Hp)
        if l > 0:
            w_ih_p = jnp.pad(w_ih_p, ((0, Hp - H), (0, 0)))  # rows H -> Hp
        w_hh_p = jnp.pad(prep_gate_cols(w_hh), ((0, Hp - H), (0, 0)))
        b_p = prep_gate_cols(b.reshape(1, 4 * H))           # (1, 4Hp) f32
        flat_params += [w_ih_p.astype(matmul_dtype),
                        w_hh_p.astype(matmul_dtype),
                        b_p.astype(f32)]

    w_fc_row = jnp.pad(w_fc.reshape(1, H).astype(f32), ((0, 0), (0, Hp - H)))
    b_fc_s = b_fc.reshape(1).astype(f32)

    inputs = [x3, h0_p, c0_p] + flat_params + [w_fc_row, b_fc_s]

    # ---- BlockSpecs: batch tiled along a "parallel" grid axis --------------
    in_specs = [
        pl.BlockSpec((T, Bb, I), lambda i: (0, i, 0)),
        pl.BlockSpec((L, Bb, Hp), lambda i: (0, i, 0)),
        pl.BlockSpec((L, Bb, Hp), lambda i: (0, i, 0)),
    ]
    for l in range(L):
        in_dim = I if l == 0 else Hp
        in_specs += [
            pl.BlockSpec((in_dim, 4 * Hp), lambda i: (0, 0)),   # W_ih (replicated)
            pl.BlockSpec((Hp, 4 * Hp), lambda i: (0, 0)),       # W_hh (replicated)
            pl.BlockSpec((1, 4 * Hp), lambda i: (0, 0)),        # bias (replicated)
        ]
    in_specs += [
        pl.BlockSpec((1, Hp), lambda i: (0, 0)),                # w_fc (replicated)
        pl.BlockSpec(memory_space=pltpu.MemorySpace.SMEM),      # b_fc scalar
    ]

    out_specs = (
        pl.BlockSpec((Bb, 128), lambda i: (i, 0)),
        pl.BlockSpec((L, Bb, Hp), lambda i: (0, i, 0)),
        pl.BlockSpec((L, Bb, Hp), lambda i: (0, i, 0)),
    )
    out_shape = (
        jax.ShapeDtypeStruct((Bp, 128), f32),
        jax.ShapeDtypeStruct((L, Bp, Hp), f32),
        jax.ShapeDtypeStruct((L, Bp, Hp), f32),
    )

    scratch_shapes = [
        pltpu.VMEM((T * Bb, 4 * Hp), matmul_dtype),   # hoisted gates_x
        pltpu.VMEM((T * Bb, Hp), matmul_dtype),       # inter-layer seq output
    ]

    # ---- explicit VMEM budget from the real per-block buffer sum -----------
    def nbytes(shape, dtype):
        return int(np.prod(shape)) * jnp.dtype(dtype).itemsize

    blk_bytes = (nbytes((T, Bb, I), matmul_dtype)
                 + 2 * nbytes((L, Bb, Hp), f32)                  # h0, c0
                 + sum(nbytes(a.shape, a.dtype) for a in flat_params)
                 + nbytes((1, Hp), f32)                          # w_fc
                 + nbytes((Bb, 128), f32)                        # out
                 + 2 * nbytes((L, Bb, Hp), f32))                 # hn, cn
    scratch_bytes = (nbytes((T * Bb, 4 * Hp), matmul_dtype)
                     + nbytes((T * Bb, Hp), matmul_dtype))
    vmem_limit = int(min(96 * 2**20,
                         max(32 * 2**20,
                             2 * blk_bytes + scratch_bytes + (4 << 20))))

    kernel = _make_lstm_kernel(L, T, Hp, Bb, I, matmul_dtype,
                               unroll=min(T, 8))

    out_p, hn_p, cn_p = pl.pallas_call(
        kernel,
        grid=(num_batch_blocks,),
        out_shape=out_shape,
        in_specs=in_specs,
        out_specs=out_specs,
        scratch_shapes=scratch_shapes,
        compiler_params=pltpu.CompilerParams(
            dimension_semantics=("parallel",),
            vmem_limit_bytes=vmem_limit),
    )(*inputs)

    out = out_p[:B, :1]
    return out, (hn_p[:, :B, :H], cn_p[:, :B, :H])


def lstm_reference(x, h0, c0, layer_params, w_fc, b_fc):
    """Pure-JAX reference matching PyTorch nn.LSTM + nn.Linear semantics."""
    B, T, _ = x.shape
    L, _, H = h0.shape
    seq = x
    hs, cs = [], []
    for l in range(L):
        w_ih, w_hh, b = layer_params[l]
        h, c = h0[l], c0[l]
        outs = []
        for t in range(T):
            gates = seq[:, t, :] @ w_ih + h @ w_hh + b
            i = jax.nn.sigmoid(gates[:, 0 * H:1 * H])
            f = jax.nn.sigmoid(gates[:, 1 * H:2 * H])
            g = jnp.tanh(gates[:, 2 * H:3 * H])
            o = jax.nn.sigmoid(gates[:, 3 * H:4 * H])
            c = f * c + i * g
            h = o * jnp.tanh(c)
            outs.append(h)
        seq = jnp.stack(outs, axis=1)
        hs.append(h)
        cs.append(c)
    out = seq[:, -1, :] @ w_fc + b_fc
    return out, (jnp.stack(hs), jnp.stack(cs))


if __name__ == "__main__":
    # small shapes consistent with the module's forward
    T = 8                # sequence length
    I, H, L = 4, 32, 2   # input_size, hidden_size, num_layers

    key = jax.random.PRNGKey(0)

    # deterministic parameter init (PyTorch-style uniform(-1/sqrt(H), 1/sqrt(H)))
    bound = 1.0 / math.sqrt(H)
    layer_params = []
    for l in range(L):
        in_dim = I if l == 0 else H
        key, k1, k2, k3, k4 = jax.random.split(key, 5)
        w_ih = jax.random.uniform(k1, (in_dim, 4 * H), jnp.float32, -bound, bound)
        w_hh = jax.random.uniform(k2, (H, 4 * H), jnp.float32, -bound, bound)
        b_ih = jax.random.uniform(k3, (4 * H,), jnp.float32, -bound, bound)
        b_hh = jax.random.uniform(k4, (4 * H,), jnp.float32, -bound, bound)
        layer_params.append((w_ih, w_hh, b_ih + b_hh))
    key, k5, k6 = jax.random.split(key, 3)
    w_fc = jax.random.uniform(k5, (H, 1), jnp.float32, -bound, bound)
    b_fc = jax.random.uniform(k6, (1,), jnp.float32, -bound, bound)

    def run_case(key, B, matmul_dtype, atol, rtol):
        kx, _ = jax.random.split(key)
        x = jax.random.normal(kx, (B, T, I), dtype=jnp.float32)
        h0 = jnp.zeros((L, B, H), dtype=jnp.float32)
        c0 = jnp.zeros((L, B, H), dtype=jnp.float32)

        out, (hn, cn) = lstm_forward(x, h0, c0, layer_params, w_fc, b_fc,
                                     matmul_dtype=matmul_dtype)
        out = jax.block_until_ready(out)
        hn = jax.block_until_ready(hn)
        cn = jax.block_until_ready(cn)

        out_r, (hn_r, cn_r) = lstm_reference(x, h0, c0, layer_params, w_fc, b_fc)
        np.testing.assert_allclose(np.asarray(out), np.asarray(out_r), atol=atol, rtol=rtol)
        np.testing.assert_allclose(np.asarray(hn), np.asarray(hn_r), atol=atol, rtol=rtol)
        np.testing.assert_allclose(np.asarray(cn), np.asarray(cn_r), atol=atol, rtol=rtol)

    key, ka, kb, kc = jax.random.split(key, 4)
    # 1) base case: B=2, f32 MXU operands, strict tolerance, grid=(1,)
    run_case(ka, 2, jnp.float32, 1e-5, 1e-5)
    # 2) multi batch-block grid ("parallel" axis, 2 blocks): B=10 -> Bp=16
    run_case(kb, 10, jnp.float32, 1e-5, 1e-5)
    # 3) bf16 MXU operands (f32 state/accumulation), relaxed tolerance
    run_case(kc, 2, jnp.bfloat16, 5e-2, 5e-2)

    print("KERNEL_OK")
</pallas_src>

<mosaic_0001>
module attributes {stable_mosaic.version = 11 : i64} {
  func.func @kernel(%arg0: i32, %arg1: memref<8x8x4xf32, #tpu.memory_space<vmem>>, %arg2: memref<2x8x128xf32, #tpu.memory_space<vmem>>, %arg3: memref<2x8x128xf32, #tpu.memory_space<vmem>>, %arg4: memref<4x512xf32, #tpu.memory_space<vmem>>, %arg5: memref<128x512xf32, #tpu.memory_space<vmem>>, %arg6: memref<1x512xf32, #tpu.memory_space<vmem>>, %arg7: memref<128x512xf32, #tpu.memory_space<vmem>>, %arg8: memref<128x512xf32, #tpu.memory_space<vmem>>, %arg9: memref<1x512xf32, #tpu.memory_space<vmem>>, %arg10: memref<1x128xf32, #tpu.memory_space<vmem>>, %arg11: memref<1xf32, #tpu.memory_space<smem>>, %arg12: memref<8x128xf32, #tpu.memory_space<vmem>>, %arg13: memref<2x8x128xf32, #tpu.memory_space<vmem>>, %arg14: memref<2x8x128xf32, #tpu.memory_space<vmem>>, %arg15: memref<64x512xf32, #tpu.memory_space<vmem>>, %arg16: memref<64x128xf32, #tpu.memory_space<vmem>>) attributes {dimension_semantics = [#tpu.dimension_semantics<parallel>], iteration_bounds = array<i64: 1>, scalar_prefetch = 0 : i64, scratch_operands = 2 : i64, tpu.core_type = #tpu.core_type<tc>, window_params = [{transform_indices = @transform_0, window_bounds = array<i64: 8, 8, 4>}, {transform_indices = @transform_1, window_bounds = array<i64: 2, 8, 128>}, {transform_indices = @transform_2, window_bounds = array<i64: 2, 8, 128>}, {pipeline_mode = #tpu.pipeline_mode<synchronous>, transform_indices = @transform_3, window_bounds = array<i64: 4, 512>}, {pipeline_mode = #tpu.pipeline_mode<synchronous>, transform_indices = @transform_4, window_bounds = array<i64: 128, 512>}, {pipeline_mode = #tpu.pipeline_mode<synchronous>, transform_indices = @transform_5, window_bounds = array<i64: 1, 512>}, {pipeline_mode = #tpu.pipeline_mode<synchronous>, transform_indices = @transform_6, window_bounds = array<i64: 128, 512>}, {pipeline_mode = #tpu.pipeline_mode<synchronous>, transform_indices = @transform_7, window_bounds = array<i64: 128, 512>}, {pipeline_mode = #tpu.pipeline_mode<synchronous>, transform_indices = @transform_8, window_bounds = array<i64: 1, 512>}, {pipeline_mode = #tpu.pipeline_mode<synchronous>, transform_indices = @transform_9, window_bounds = array<i64: 1, 128>}, {transform_indices = @transform_10, window_bounds = array<i64: 1>}, {transform_indices = @transform_11, window_bounds = array<i64: 8, 128>}, {transform_indices = @transform_12, window_bounds = array<i64: 2, 8, 128>}, {transform_indices = @transform_13, window_bounds = array<i64: 2, 8, 128>}]} {
    %c0 = arith.constant 0 : index
    %c0_0 = arith.constant 0 : index
    %c0_1 = arith.constant 0 : index
    %0 = vector.load %arg1[%c0, %c0_0, %c0_1] : memref<8x8x4xf32, #tpu.memory_space<vmem>>, vector<8x8x4xf32>
    %1 = vector.shape_cast %0 : vector<8x8x4xf32> to vector<64x4xf32>
    %c0_2 = arith.constant 0 : index
    %c0_3 = arith.constant 0 : index
    %2 = vector.load %arg4[%c0_2, %c0_3] : memref<4x512xf32, #tpu.memory_space<vmem>>, vector<4x512xf32>
    %cst = arith.constant dense<0.000000e+00> : vector<64x512xf32>
    %3 = tpu.matmul %1, %2, %cst {dimension_numbers = #tpu.dot_dimension_numbers<[1], [0], [0], [1], [0, 0, 1, 1], [], []>} : vector<64x4xf32>, vector<4x512xf32>, vector<64x512xf32> -> vector<64x512xf32>
    %c0_4 = arith.constant 0 : index
    %c0_5 = arith.constant 0 : index
    %4 = vector.load %arg6[%c0_4, %c0_5] : memref<1x512xf32, #tpu.memory_space<vmem>>, vector<1x512xf32>
    %5 = vector.broadcast %4 : vector<1x512xf32> to vector<64x512xf32>
    %6 = arith.addf %3, %5 : vector<64x512xf32>
    %c0_6 = arith.constant 0 : index
    %c0_7 = arith.constant 0 : index
    %7 = vector.load %arg15[%c0_6, %c0_7] : memref<64x512xf32, #tpu.memory_space<vmem>>, vector<64x512xf32>
    tpu.vector_store %arg15[%c0_6, %c0_7], %6 {strides = array<i32>} : memref<64x512xf32, #tpu.memory_space<vmem>>, vector<64x512xf32>,
    %c0_8 = arith.constant 0 : index
    %c0_9 = arith.constant 0 : index
    %c0_10 = arith.constant 0 : index
    %8 = vector.load %arg2[%c0_8, %c0_9, %c0_10] : memref<2x8x128xf32, #tpu.memory_space<vmem>>, vector<1x8x128xf32>
    %9 = vector.shape_cast %8 : vector<1x8x128xf32> to vector<8x128xf32>
    %c0_11 = arith.constant 0 : index
    %c0_12 = arith.constant 0 : index
    %c0_13 = arith.constant 0 : index
    %10 = vector.load %arg3[%c0_11, %c0_12, %c0_13] : memref<2x8x128xf32, #tpu.memory_space<vmem>>, vector<1x8x128xf32>
    %11 = vector.shape_cast %10 : vector<1x8x128xf32> to vector<8x128xf32>
    %c0_i32 = arith.constant 0 : i32
    %c8_i32 = arith.constant 8 : i32
    %12 = arith.muli %c0_i32, %c8_i32 : i32
    %13 = tpu.assume_multiple %12, 8 : i32
    %14 = arith.index_cast %13 : i32 to index
    %c0_14 = arith.constant 0 : index
    %15 = vector.load %arg15[%14, %c0_14] : memref<64x512xf32, #tpu.memory_space<vmem>>, vector<8x512xf32>
    %c0_15 = arith.constant 0 : index
    %c0_16 = arith.constant 0 : index
    %16 = vector.load %arg5[%c0_15, %c0_16] : memref<128x512xf32, #tpu.memory_space<vmem>>, vector<128x512xf32>
    %cst_17 = arith.constant dense<0.000000e+00> : vector<8x512xf32>
    %17 = tpu.matmul %9, %16, %cst_17 {dimension_numbers = #tpu.dot_dimension_numbers<[1], [0], [0], [1], [0, 0, 1, 1], [], []>} : vector<8x128xf32>, vector<128x512xf32>, vector<8x512xf32> -> vector<8x512xf32>
    %18 = arith.addf %17, %15 : vector<8x512xf32>
    %19 = vector.extract_strided_slice %18 {offsets = [0, 0], sizes = [8, 384], strides = [1, 1]} : vector<8x512xf32> to vector<8x384xf32>
    %20 = arith.negf %19 : vector<8x384xf32>
    %21 = math.exp %20 : vector<8x384xf32>
    %cst_18 = arith.constant 1.000000e+00 : f32
    %22 = vector.broadcast %cst_18 : f32 to vector<8x384xf32>
    %23 = arith.addf %22, %21 : vector<8x384xf32>
    %24 = arith.divf %22, %23 : vector<8x384xf32>
    %25 = vector.extract_strided_slice %24 {offsets = [0, 0], sizes = [8, 128], strides = [1, 1]} : vector<8x384xf32> to vector<8x128xf32>
    %26 = vector.extract_strided_slice %24 {offsets = [0, 128], sizes = [8, 128], strides = [1, 1]} : vector<8x384xf32> to vector<8x128xf32>
    %27 = vector.extract_strided_slice %24 {offsets = [0, 256], sizes = [8, 128], strides = [1, 1]} : vector<8x384xf32> to vector<8x128xf32>
    %28 = vector.extract_strided_slice %18 {offsets = [0, 384], sizes = [8, 128], strides = [1, 1]} : vector<8x512xf32> to vector<8x128xf32>
    %29 = math.tanh %28 : vector<8x128xf32>
    %30 = arith.mulf %26, %11 : vector<8x128xf32>
    %31 = arith.mulf %25, %29 : vector<8x128xf32>
    %32 = arith.addf %30, %31 : vector<8x128xf32>
    %33 = math.tanh %32 : vector<8x128xf32>
    %34 = arith.mulf %27, %33 : vector<8x128xf32>
    %35 = arith.index_cast %13 : i32 to index
    %c0_19 = arith.constant 0 : index
    %36 = vector.load %arg16[%35, %c0_19] : memref<64x128xf32, #tpu.memory_space<vmem>>, vector<8x128xf32>
    tpu.vector_store %arg16[%35, %c0_19], %34 {strides = array<i32>} : memref<64x128xf32, #tpu.memory_space<vmem>>, vector<8x128xf32>,
    %c1_i32 = arith.constant 1 : i32
    %c8_i32_20 = arith.constant 8 : i32
    %37 = arith.muli %c1_i32, %c8_i32_20 : i32
    %38 = tpu.assume_multiple %37, 8 : i32
    %39 = arith.index_cast %38 : i32 to index
    %c0_21 = arith.constant 0 : index
    %40 = vector.load %arg15[%39, %c0_21] : memref<64x512xf32, #tpu.memory_space<vmem>>, vector<8x512xf32>
    %c0_22 = arith.constant 0 : index
    %c0_23 = arith.constant 0 : index
    %41 = vector.load %arg5[%c0_22, %c0_23] : memref<128x512xf32, #tpu.memory_space<vmem>>, vector<128x512xf32>
    %cst_24 = arith.constant dense<0.000000e+00> : vector<8x512xf32>
    %42 = tpu.matmul %34, %41, %cst_24 {dimension_numbers = #tpu.dot_dimension_numbers<[1], [0], [0], [1], [0, 0, 1, 1], [], []>} : vector<8x128xf32>, vector<128x512xf32>, vector<8x512xf32> -> vector<8x512xf32>
    %43 = arith.addf %42, %40 : vector<8x512xf32>
    %44 = vector.extract_strided_slice %43 {offsets = [0, 0], sizes = [8, 384], strides = [1, 1]} : vector<8x512xf32> to vector<8x384xf32>
    %45 = arith.negf %44 : vector<8x384xf32>
    %46 = math.exp %45 : vector<8x384xf32>
    %cst_25 = arith.constant 1.000000e+00 : f32
    %47 = vector.broadcast %cst_25 : f32 to vector<8x384xf32>
    %48 = arith.addf %47, %46 : vector<8x384xf32>
    %49 = arith.divf %47, %48 : vector<8x384xf32>
    %50 = vector.extract_strided_slice %49 {offsets = [0, 0], sizes = [8, 128], strides = [1, 1]} : vector<8x384xf32> to vector<8x128xf32>
    %51 = vector.extract_strided_slice %49 {offsets = [0, 128], sizes = [8, 128], strides = [1, 1]} : vector<8x384xf32> to vector<8x128xf32>
    %52 = vector.extract_strided_slice %49 {offsets = [0, 256], sizes = [8, 128], strides = [1, 1]} : vector<8x384xf32> to vector<8x128xf32>
    %53 = vector.extract_strided_slice %43 {offsets = [0, 384], sizes = [8, 128], strides = [1, 1]} : vector<8x512xf32> to vector<8x128xf32>
    %54 = math.tanh %53 : vector<8x128xf32>
    %55 = arith.mulf %51, %32 : vector<8x128xf32>
    %56 = arith.mulf %50, %54 : vector<8x128xf32>
    %57 = arith.addf %55, %56 : vector<8x128xf32>
    %58 = math.tanh %57 : vector<8x128xf32>
    %59 = arith.mulf %52, %58 : vector<8x128xf32>
    %60 = arith.index_cast %38 : i32 to index
    %c0_26 = arith.constant 0 : index
    %61 = vector.load %arg16[%60, %c0_26] : memref<64x128xf32, #tpu.memory_space<vmem>>, vector<8x128xf32>
    tpu.vector_store %arg16[%60, %c0_26], %59 {strides = array<i32>} : memref<64x128xf32, #tpu.memory_space<vmem>>, vector<8x128xf32>,
    %c2_i32 = arith.constant 2 : i32
    %c8_i32_27 = arith.constant 8 : i32
    %62 = arith.muli %c2_i32, %c8_i32_27 : i32
    %63 = tpu.assume_multiple %62, 8 : i32
    %64 = arith.index_cast %63 : i32 to index
    %c0_28 = arith.constant 0 : index
    %65 = vector.load %arg15[%64, %c0_28] : memref<64x512xf32, #tpu.memory_space<vmem>>, vector<8x512xf32>
    %c0_29 = arith.constant 0 : index
    %c0_30 = arith.constant 0 : index
    %66 = vector.load %arg5[%c0_29, %c0_30] : memref<128x512xf32, #tpu.memory_space<vmem>>, vector<128x512xf32>
    %cst_31 = arith.constant dense<0.000000e+00> : vector<8x512xf32>
    %67 = tpu.matmul %59, %66, %cst_31 {dimension_numbers = #tpu.dot_dimension_numbers<[1], [0], [0], [1], [0, 0, 1, 1], [], []>} : vector<8x128xf32>, vector<128x512xf32>, vector<8x512xf32> -> vector<8x512xf32>
    %68 = arith.addf %67, %65 : vector<8x512xf32>
    %69 = vector.extract_strided_slice %68 {offsets = [0, 0], sizes = [8, 384], strides = [1, 1]} : vector<8x512xf32> to vector<8x384xf32>
    %70 = arith.negf %69 : vector<8x384xf32>
    %71 = math.exp %70 : vector<8x384xf32>
    %cst_32 = arith.constant 1.000000e+00 : f32
    %72 = vector.broadcast %cst_32 : f32 to vector<8x384xf32>
    %73 = arith.addf %72, %71 : vector<8x384xf32>
    %74 = arith.divf %72, %73 : vector<8x384xf32>
    %75 = vector.extract_strided_slice %74 {offsets = [0, 0], sizes = [8, 128], strides = [1, 1]} : vector<8x384xf32> to vector<8x128xf32>
    %76 = vector.extract_strided_slice %74 {offsets = [0, 128], sizes = [8, 128], strides = [1, 1]} : vector<8x384xf32> to vector<8x128xf32>
    %77 = vector.extract_strided_slice %74 {offsets = [0, 256], sizes = [8, 128], strides = [1, 1]} : vector<8x384xf32> to vector<8x128xf32>
    %78 = vector.extract_strided_slice %68 {offsets = [0, 384], sizes = [8, 128], strides = [1, 1]} : vector<8x512xf32> to vector<8x128xf32>
    %79 = math.tanh %78 : vector<8x128xf32>
    %80 = arith.mulf %76, %57 : vector<8x128xf32>
    %81 = arith.mulf %75, %79 : vector<8x128xf32>
    %82 = arith.addf %80, %81 : vector<8x128xf32>
    %83 = math.tanh %82 : vector<8x128xf32>
    %84 = arith.mulf %77, %83 : vector<8x128xf32>
    %85 = arith.index_cast %63 : i32 to index
    %c0_33 = arith.constant 0 : index
    %86 = vector.load %arg16[%85, %c0_33] : memref<64x128xf32, #tpu.memory_space<vmem>>, vector<8x128xf32>
    tpu.vector_store %arg16[%85, %c0_33], %84 {strides = array<i32>} : memref<64x128xf32, #tpu.memory_space<vmem>>, vector<8x128xf32>,
    %c3_i32 = arith.constant 3 : i32
    %c8_i32_34 = arith.constant 8 : i32
    %87 = arith.muli %c3_i32, %c8_i32_34 : i32
    %88 = tpu.assume_multiple %87, 8 : i32
    %89 = arith.index_cast %88 : i32 to index
    %c0_35 = arith.constant 0 : index
    %90 = vector.load %arg15[%89, %c0_35] : memref<64x512xf32, #tpu.memory_space<vmem>>, vector<8x512xf32>
    %c0_36 = arith.constant 0 : index
    %c0_37 = arith.constant 0 : index
    %91 = vector.load %arg5[%c0_36, %c0_37] : memref<128x512xf32, #tpu.memory_space<vmem>>, vector<128x512xf32>
    %cst_38 = arith.constant dense<0.000000e+00> : vector<8x512xf32>
    %92 = tpu.matmul %84, %91, %cst_38 {dimension_numbers = #tpu.dot_dimension_numbers<[1], [0], [0], [1], [0, 0, 1, 1], [], []>} : vector<8x128xf32>, vector<128x512xf32>, vector<8x512xf32> -> vector<8x512xf32>
    %93 = arith.addf %92, %90 : vector<8x512xf32>
    %94 = vector.extract_strided_slice %93 {offsets = [0, 0], sizes = [8, 384], strides = [1, 1]} : vector<8x512xf32> to vector<8x384xf32>
    %95 = arith.negf %94 : vector<8x384xf32>
    %96 = math.exp %95 : vector<8x384xf32>
    %cst_39 = arith.constant 1.000000e+00 : f32
    %97 = vector.broadcast %cst_39 : f32 to vector<8x384xf32>
    %98 = arith.addf %97, %96 : vector<8x384xf32>
    %99 = arith.divf %97, %98 : vector<8x384xf32>
    %100 = vector.extract_strided_slice %99 {offsets = [0, 0], sizes = [8, 128], strides = [1, 1]} : vector<8x384xf32> to vector<8x128xf32>
    %101 = vector.extract_strided_slice %99 {offsets = [0, 128], sizes = [8, 128], strides = [1, 1]} : vector<8x384xf32> to vector<8x128xf32>
    %102 = vector.extract_strided_slice %99 {offsets = [0, 256], sizes = [8, 128], strides = [1, 1]} : vector<8x384xf32> to vector<8x128xf32>
    %103 = vector.extract_strided_slice %93 {offsets = [0, 384], sizes = [8, 128], strides = [1, 1]} : vector<8x512xf32> to vector<8x128xf32>
    %104 = math.tanh %103 : vector<8x128xf32>
    %105 = arith.mulf %101, %82 : vector<8x128xf32>
    %106 = arith.mulf %100, %104 : vector<8x128xf32>
    %107 = arith.addf %105, %106 : vector<8x128xf32>
    %108 = math.tanh %107 : vector<8x128xf32>
    %109 = arith.mulf %102, %108 : vector<8x128xf32>
    %110 = arith.index_cast %88 : i32 to index
    %c0_40 = arith.constant 0 : index
    %111 = vector.load %arg16[%110, %c0_40] : memref<64x128xf32, #tpu.memory_space<vmem>>, vector<8x128xf32>
    tpu.vector_store %arg16[%110, %c0_40], %109 {strides = array<i32>} : memref<64x128xf32, #tpu.memory_space<vmem>>, vector<8x128xf32>,
    %c4_i32 = arith.constant 4 : i32
    %c8_i32_41 = arith.constant 8 : i32
    %112 = arith.muli %c4_i32, %c8_i32_41 : i32
    %113 = tpu.assume_multiple %112, 8 : i32
    %114 = arith.index_cast %113 : i32 to index
    %c0_42 = arith.constant 0 : index
    %115 = vector.load %arg15[%114, %c0_42] : memref<64x512xf32, #tpu.memory_space<vmem>>, vector<8x512xf32>
    %c0_43 = arith.constant 0 : index
    %c0_44 = arith.constant 0 : index
    %116 = vector.load %arg5[%c0_43, %c0_44] : memref<128x512xf32, #tpu.memory_space<vmem>>, vector<128x512xf32>
    %cst_45 = arith.constant dense<0.000000e+00> : vector<8x512xf32>
    %117 = tpu.matmul %109, %116, %cst_45 {dimension_numbers = #tpu.dot_dimension_numbers<[1], [0], [0], [1], [0, 0, 1, 1], [], []>} : vector<8x128xf32>, vector<128x512xf32>, vector<8x512xf32> -> vector<8x512xf32>
    %118 = arith.addf %117, %115 : vector<8x512xf32>
    %119 = vector.extract_strided_slice %118 {offsets = [0, 0], sizes = [8, 384], strides = [1, 1]} : vector<8x512xf32> to vector<8x384xf32>
    %120 = arith.negf %119 : vector<8x384xf32>
    %121 = math.exp %120 : vector<8x384xf32>
    %cst_46 = arith.constant 1.000000e+00 : f32
    %122 = vector.broadcast %cst_46 : f32 to vector<8x384xf32>
    %123 = arith.addf %122, %121 : vector<8x384xf32>
    %124 = arith.divf %122, %123 : vector<8x384xf32>
    %125 = vector.extract_strided_slice %124 {offsets = [0, 0], sizes = [8, 128], strides = [1, 1]} : vector<8x384xf32> to vector<8x128xf32>
    %126 = vector.extract_strided_slice %124 {offsets = [0, 128], sizes = [8, 128], strides = [1, 1]} : vector<8x384xf32> to vector<8x128xf32>
    %127 = vector.extract_strided_slice %124 {offsets = [0, 256], sizes = [8, 128], strides = [1, 1]} : vector<8x384xf32> to vector<8x128xf32>
    %128 = vector.extract_strided_slice %118 {offsets = [0, 384], sizes = [8, 128], strides = [1, 1]} : vector<8x512xf32> to vector<8x128xf32>
    %129 = math.tanh %128 : vector<8x128xf32>
    %130 = arith.mulf %126, %107 : vector<8x128xf32>
    %131 = arith.mulf %125, %129 : vector<8x128xf32>
    %132 = arith.addf %130, %131 : vector<8x128xf32>
    %133 = math.tanh %132 : vector<8x128xf32>
    %134 = arith.mulf %127, %133 : vector<8x128xf32>
    %135 = arith.index_cast %113 : i32 to index
    %c0_47 = arith.constant 0 : index
    %136 = vector.load %arg16[%135, %c0_47] : memref<64x128xf32, #tpu.memory_space<vmem>>, vector<8x128xf32>
    tpu.vector_store %arg16[%135, %c0_47], %134 {strides = array<i32>} : memref<64x128xf32, #tpu.memory_space<vmem>>, vector<8x128xf32>,
    %c5_i32 = arith.constant 5 : i32
    %c8_i32_48 = arith.constant 8 : i32
    %137 = arith.muli %c5_i32, %c8_i32_48 : i32
    %138 = tpu.assume_multiple %137, 8 : i32
    %139 = arith.index_cast %138 : i32 to index
    %c0_49 = arith.constant 0 : index
    %140 = vector.load %arg15[%139, %c0_49] : memref<64x512xf32, #tpu.memory_space<vmem>>, vector<8x512xf32>
    %c0_50 = arith.constant 0 : index
    %c0_51 = arith.constant 0 : index
    %141 = vector.load %arg5[%c0_50, %c0_51] : memref<128x512xf32, #tpu.memory_space<vmem>>, vector<128x512xf32>
    %cst_52 = arith.constant dense<0.000000e+00> : vector<8x512xf32>
    %142 = tpu.matmul %134, %141, %cst_52 {dimension_numbers = #tpu.dot_dimension_numbers<[1], [0], [0], [1], [0, 0, 1, 1], [], []>} : vector<8x128xf32>, vector<128x512xf32>, vector<8x512xf32> -> vector<8x512xf32>
    %143 = arith.addf %142, %140 : vector<8x512xf32>
    %144 = vector.extract_strided_slice %143 {offsets = [0, 0], sizes = [8, 384], strides = [1, 1]} : vector<8x512xf32> to vector<8x384xf32>
    %145 = arith.negf %144 : vector<8x384xf32>
    %146 = math.exp %145 : vector<8x384xf32>
    %cst_53 = arith.constant 1.000000e+00 : f32
    %147 = vector.broadcast %cst_53 : f32 to vector<8x384xf32>
    %148 = arith.addf %147, %146 : vector<8x384xf32>
    %149 = arith.divf %147, %148 : vector<8x384xf32>
    %150 = vector.extract_strided_slice %149 {offsets = [0, 0], sizes = [8, 128], strides = [1, 1]} : vector<8x384xf32> to vector<8x128xf32>
    %151 = vector.extract_strided_slice %149 {offsets = [0, 128], sizes = [8, 128], strides = [1, 1]} : vector<8x384xf32> to vector<8x128xf32>
    %152 = vector.extract_strided_slice %149 {offsets = [0, 256], sizes = [8, 128], strides = [1, 1]} : vector<8x384xf32> to vector<8x128xf32>
    %153 = vector.extract_strided_slice %143 {offsets = [0, 384], sizes = [8, 128], strides = [1, 1]} : vector<8x512xf32> to vector<8x128xf32>
    %154 = math.tanh %153 : vector<8x128xf32>
    %155 = arith.mulf %151, %132 : vector<8x128xf32>
    %156 = arith.mulf %150, %154 : vector<8x128xf32>
    %157 = arith.addf %155, %156 : vector<8x128xf32>
    %158 = math.tanh %157 : vector<8x128xf32>
    %159 = arith.mulf %152, %158 : vector<8x128xf32>
    %160 = arith.index_cast %138 : i32 to index
    %c0_54 = arith.constant 0 : index
    %161 = vector.load %arg16[%160, %c0_54] : memref<64x128xf32, #tpu.memory_space<vmem>>, vector<8x128xf32>
    tpu.vector_store %arg16[%160, %c0_54], %159 {strides = array<i32>} : memref<64x128xf32, #tpu.memory_space<vmem>>, vector<8x128xf32>,
    %c6_i32 = arith.constant 6 : i32
    %c8_i32_55 = arith.constant 8 : i32
    %162 = arith.muli %c6_i32, %c8_i32_55 : i32
    %163 = tpu.assume_multiple %162, 8 : i32
    %164 = arith.index_cast %163 : i32 to index
    %c0_56 = arith.constant 0 : index
    %165 = vector.load %arg15[%164, %c0_56] : memref<64x512xf32, #tpu.memory_space<vmem>>, vector<8x512xf32>
    %c0_57 = arith.constant 0 : index
    %c0_58 = arith.constant 0 : index
    %166 = vector.load %arg5[%c0_57, %c0_58] : memref<128x512xf32, #tpu.memory_space<vmem>>, vector<128x512xf32>
    %cst_59 = arith.constant dense<0.000000e+00> : vector<8x512xf32>
    %167 = tpu.matmul %159, %166, %cst_59 {dimension_numbers = #tpu.dot_dimension_numbers<[1], [0], [0], [1], [0, 0, 1, 1], [], []>} : vector<8x128xf32>, vector<128x512xf32>, vector<8x512xf32> -> vector<8x512xf32>
    %168 = arith.addf %167, %165 : vector<8x512xf32>
    %169 = vector.extract_strided_slice %168 {offsets = [0, 0], sizes = [8, 384], strides = [1, 1]} : vector<8x512xf32> to vector<8x384xf32>
    %170 = arith.negf %169 : vector<8x384xf32>
    %171 = math.exp %170 : vector<8x384xf32>
    %cst_60 = arith.constant 1.000000e+00 : f32
    %172 = vector.broadcast %cst_60 : f32 to vector<8x384xf32>
    %173 = arith.addf %172, %171 : vector<8x384xf32>
    %174 = arith.divf %172, %173 : vector<8x384xf32>
    %175 = vector.extract_strided_slice %174 {offsets = [0, 0], sizes = [8, 128], strides = [1, 1]} : vector<8x384xf32> to vector<8x128xf32>
    %176 = vector.extract_strided_slice %174 {offsets = [0, 128], sizes = [8, 128], strides = [1, 1]} : vector<8x384xf32> to vector<8x128xf32>
    %177 = vector.extract_strided_slice %174 {offsets = [0, 256], sizes = [8, 128], strides = [1, 1]} : vector<8x384xf32> to vector<8x128xf32>
    %178 = vector.extract_strided_slice %168 {offsets = [0, 384], sizes = [8, 128], strides = [1, 1]} : vector<8x512xf32> to vector<8x128xf32>
    %179 = math.tanh %178 : vector<8x128xf32>
    %180 = arith.mulf %176, %157 : vector<8x128xf32>
    %181 = arith.mulf %175, %179 : vector<8x128xf32>
    %182 = arith.addf %180, %181 : vector<8x128xf32>
    %183 = math.tanh %182 : vector<8x128xf32>
    %184 = arith.mulf %177, %183 : vector<8x128xf32>
    %185 = arith.index_cast %163 : i32 to index
    %c0_61 = arith.constant 0 : index
    %186 = vector.load %arg16[%185, %c0_61] : memref<64x128xf32, #tpu.memory_space<vmem>>, vector<8x128xf32>
    tpu.vector_store %arg16[%185, %c0_61], %184 {strides = array<i32>} : memref<64x128xf32, #tpu.memory_space<vmem>>, vector<8x128xf32>,
    %c7_i32 = arith.constant 7 : i32
    %c8_i32_62 = arith.constant 8 : i32
    %187 = arith.muli %c7_i32, %c8_i32_62 : i32
    %188 = tpu.assume_multiple %187, 8 : i32
    %189 = arith.index_cast %188 : i32 to index
    %c0_63 = arith.constant 0 : index
    %190 = vector.load %arg15[%189, %c0_63] : memref<64x512xf32, #tpu.memory_space<vmem>>, vector<8x512xf32>
    %c0_64 = arith.constant 0 : index
    %c0_65 = arith.constant 0 : index
    %191 = vector.load %arg5[%c0_64, %c0_65] : memref<128x512xf32, #tpu.memory_space<vmem>>, vector<128x512xf32>
    %cst_66 = arith.constant dense<0.000000e+00> : vector<8x512xf32>
    %192 = tpu.matmul %184, %191, %cst_66 {dimension_numbers = #tpu.dot_dimension_numbers<[1], [0], [0], [1], [0, 0, 1, 1], [], []>} : vector<8x128xf32>, vector<128x512xf32>, vector<8x512xf32> -> vector<8x512xf32>
    %193 = arith.addf %192, %190 : vector<8x512xf32>
    %194 = vector.extract_strided_slice %193 {offsets = [0, 0], sizes = [8, 384], strides = [1, 1]} : vector<8x512xf32> to vector<8x384xf32>
    %195 = arith.negf %194 : vector<8x384xf32>
    %196 = math.exp %195 : vector<8x384xf32>
    %cst_67 = arith.constant 1.000000e+00 : f32
    %197 = vector.broadcast %cst_67 : f32 to vector<8x384xf32>
    %198 = arith.addf %197, %196 : vector<8x384xf32>
    %199 = arith.divf %197, %198 : vector<8x384xf32>
    %200 = vector.extract_strided_slice %199 {offsets = [0, 0], sizes = [8, 128], strides = [1, 1]} : vector<8x384xf32> to vector<8x128xf32>
    %201 = vector.extract_strided_slice %199 {offsets = [0, 128], sizes = [8, 128], strides = [1, 1]} : vector<8x384xf32> to vector<8x128xf32>
    %202 = vector.extract_strided_slice %199 {offsets = [0, 256], sizes = [8, 128], strides = [1, 1]} : vector<8x384xf32> to vector<8x128xf32>
    %203 = vector.extract_strided_slice %193 {offsets = [0, 384], sizes = [8, 128], strides = [1, 1]} : vector<8x512xf32> to vector<8x128xf32>
    %204 = math.tanh %203 : vector<8x128xf32>
    %205 = arith.mulf %201, %182 : vector<8x128xf32>
    %206 = arith.mulf %200, %204 : vector<8x128xf32>
    %207 = arith.addf %205, %206 : vector<8x128xf32>
    %208 = math.tanh %207 : vector<8x128xf32>
    %209 = arith.mulf %202, %208 : vector<8x128xf32>
    %210 = arith.index_cast %188 : i32 to index
    %c0_68 = arith.constant 0 : index
    %211 = vector.load %arg16[%210, %c0_68] : memref<64x128xf32, #tpu.memory_space<vmem>>, vector<8x128xf32>
    tpu.vector_store %arg16[%210, %c0_68], %209 {strides = array<i32>} : memref<64x128xf32, #tpu.memory_space<vmem>>, vector<8x128xf32>,
    %c8_i32_69 = arith.constant 8 : i32
    %c0_70 = arith.constant 0 : index
    %c0_71 = arith.constant 0 : index
    %c0_72 = arith.constant 0 : index
    %212 = vector.load %arg13[%c0_70, %c0_71, %c0_72] : memref<2x8x128xf32, #tpu.memory_space<vmem>>, vector<1x8x128xf32>
    %213 = vector.shape_cast %212 : vector<1x8x128xf32> to vector<8x128xf32>
    %214 = vector.shape_cast %209 : vector<8x128xf32> to vector<1x8x128xf32>
    tpu.vector_store %arg13[%c0_70, %c0_71, %c0_72], %214 {strides = array<i32>} : memref<2x8x128xf32, #tpu.memory_space<vmem>>, vector<1x8x128xf32>,
    %c0_73 = arith.constant 0 : index
    %c0_74 = arith.constant 0 : index
    %c0_75 = arith.constant 0 : index
    %215 = vector.load %arg14[%c0_73, %c0_74, %c0_75] : memref<2x8x128xf32, #tpu.memory_space<vmem>>, vector<1x8x128xf32>
    %216 = vector.shape_cast %215 : vector<1x8x128xf32> to vector<8x128xf32>
    %217 = vector.shape_cast %207 : vector<8x128xf32> to vector<1x8x128xf32>
    tpu.vector_store %arg14[%c0_73, %c0_74, %c0_75], %217 {strides = array<i32>} : memref<2x8x128xf32, #tpu.memory_space<vmem>>, vector<1x8x128xf32>,
    %c0_76 = arith.constant 0 : index
    %c0_77 = arith.constant 0 : index
    %218 = vector.load %arg16[%c0_76, %c0_77] : memref<64x128xf32, #tpu.memory_space<vmem>>, vector<64x128xf32>
    %c0_78 = arith.constant 0 : index
    %c0_79 = arith.constant 0 : index
    %219 = vector.load %arg7[%c0_78, %c0_79] : memref<128x512xf32, #tpu.memory_space<vmem>>, vector<128x512xf32>
    %cst_80 = arith.constant dense<0.000000e+00> : vector<64x512xf32>
    %220 = tpu.matmul %218, %219, %cst_80 {dimension_numbers = #tpu.dot_dimension_numbers<[1], [0], [0], [1], [0, 0, 1, 1], [], []>} : vector<64x128xf32>, vector<128x512xf32>, vector<64x512xf32> -> vector<64x512xf32>
    %c0_81 = arith.constant 0 : index
    %c0_82 = arith.constant 0 : index
    %221 = vector.load %arg9[%c0_81, %c0_82] : memref<1x512xf32, #tpu.memory_space<vmem>>, vector<1x512xf32>
    %222 = vector.broadcast %221 : vector<1x512xf32> to vector<64x512xf32>
    %223 = arith.addf %220, %222 : vector<64x512xf32>
    %c0_83 = arith.constant 0 : index
    %c0_84 = arith.constant 0 : index
    %224 = vector.load %arg15[%c0_83, %c0_84] : memref<64x512xf32, #tpu.memory_space<vmem>>, vector<64x512xf32>
    tpu.vector_store %arg15[%c0_83, %c0_84], %223 {strides = array<i32>} : memref<64x512xf32, #tpu.memory_space<vmem>>, vector<64x512xf32>,
    %c1 = arith.constant 1 : index
    %c0_85 = arith.constant 0 : index
    %c0_86 = arith.constant 0 : index
    %225 = vector.load %arg2[%c1, %c0_85, %c0_86] : memref<2x8x128xf32, #tpu.memory_space<vmem>>, vector<1x8x128xf32>
    %226 = vector.shape_cast %225 : vector<1x8x128xf32> to vector<8x128xf32>
    %c1_87 = arith.constant 1 : index
    %c0_88 = arith.constant 0 : index
    %c0_89 = arith.constant 0 : index
    %227 = vector.load %arg3[%c1_87, %c0_88, %c0_89] : memref<2x8x128xf32, #tpu.memory_space<vmem>>, vector<1x8x128xf32>
    %228 = vector.shape_cast %227 : vector<1x8x128xf32> to vector<8x128xf32>
    %c0_i32_90 = arith.constant 0 : i32
    %c8_i32_91 = arith.constant 8 : i32
    %229 = arith.muli %c0_i32_90, %c8_i32_91 : i32
    %230 = tpu.assume_multiple %229, 8 : i32
    %231 = arith.index_cast %230 : i32 to index
    %c0_92 = arith.constant 0 : index
    %232 = vector.load %arg15[%231, %c0_92] : memref<64x512xf32, #tpu.memory_space<vmem>>, vector<8x512xf32>
    %c0_93 = arith.constant 0 : index
    %c0_94 = arith.constant 0 : index
    %233 = vector.load %arg8[%c0_93, %c0_94] : memref<128x512xf32, #tpu.memory_space<vmem>>, vector<128x512xf32>
    %cst_95 = arith.constant dense<0.000000e+00> : vector<8x512xf32>
    %234 = tpu.matmul %226, %233, %cst_95 {dimension_numbers = #tpu.dot_dimension_numbers<[1], [0], [0], [1], [0, 0, 1, 1], [], []>} : vector<8x128xf32>, vector<128x512xf32>, vector<8x512xf32> -> vector<8x512xf32>
    %235 = arith.addf %234, %232 : vector<8x512xf32>
    %236 = vector.extract_strided_slice %235 {offsets = [0, 0], sizes = [8, 384], strides = [1, 1]} : vector<8x512xf32> to vector<8x384xf32>
    %237 = arith.negf %236 : vector<8x384xf32>
    %238 = math.exp %237 : vector<8x384xf32>
    %cst_96 = arith.constant 1.000000e+00 : f32
    %239 = vector.broadcast %cst_96 : f32 to vector<8x384xf32>
    %240 = arith.addf %239, %238 : vector<8x384xf32>
    %241 = arith.divf %239, %240 : vector<8x384xf32>
    %242 = vector.extract_strided_slice %241 {offsets = [0, 0], sizes = [8, 128], strides = [1, 1]} : vector<8x384xf32> to vector<8x128xf32>
    %243 = vector.extract_strided_slice %241 {offsets = [0, 128], sizes = [8, 128], strides = [1, 1]} : vector<8x384xf32> to vector<8x128xf32>
    %244 = vector.extract_strided_slice %241 {offsets = [0, 256], sizes = [8, 128], strides = [1, 1]} : vector<8x384xf32> to vector<8x128xf32>
    %245 = vector.extract_strided_slice %235 {offsets = [0, 384], sizes = [8, 128], strides = [1, 1]} : vector<8x512xf32> to vector<8x128xf32>
    %246 = math.tanh %245 : vector<8x128xf32>
    %247 = arith.mulf %243, %228 : vector<8x128xf32>
    %248 = arith.mulf %242, %246 : vector<8x128xf32>
    %249 = arith.addf %247, %248 : vector<8x128xf32>
    %250 = math.tanh %249 : vector<8x128xf32>
    %251 = arith.mulf %244, %250 : vector<8x128xf32>
    %c1_i32_97 = arith.constant 1 : i32
    %c8_i32_98 = arith.constant 8 : i32
    %252 = arith.muli %c1_i32_97, %c8_i32_98 : i32
    %253 = tpu.assume_multiple %252, 8 : i32
    %254 = arith.index_cast %253 : i32 to index
    %c0_99 = arith.constant 0 : index
    %255 = vector.load %arg15[%254, %c0_99] : memref<64x512xf32, #tpu.memory_space<vmem>>, vector<8x512xf32>
    %c0_100 = arith.constant 0 : index
    %c0_101 = arith.constant 0 : index
    %256 = vector.load %arg8[%c0_100, %c0_101] : memref<128x512xf32, #tpu.memory_space<vmem>>, vector<128x512xf32>
    %cst_102 = arith.constant dense<0.000000e+00> : vector<8x512xf32>
    %257 = tpu.matmul %251, %256, %cst_102 {dimension_numbers = #tpu.dot_dimension_numbers<[1], [0], [0], [1], [0, 0, 1, 1], [], []>} : vector<8x128xf32>, vector<128x512xf32>, vector<8x512xf32> -> vector<8x512xf32>
    %258 = arith.addf %257, %255 : vector<8x512xf32>
    %259 = vector.extract_strided_slice %258 {offsets = [0, 0], sizes = [8, 384], strides = [1, 1]} : vector<8x512xf32> to vector<8x384xf32>
    %260 = arith.negf %259 : vector<8x384xf32>
    %261 = math.exp %260 : vector<8x384xf32>
    %cst_103 = arith.constant 1.000000e+00 : f32
    %262 = vector.broadcast %cst_103 : f32 to vector<8x384xf32>
    %263 = arith.addf %262, %261 : vector<8x384xf32>
    %264 = arith.divf %262, %263 : vector<8x384xf32>
    %265 = vector.extract_strided_slice %264 {offsets = [0, 0], sizes = [8, 128], strides = [1, 1]} : vector<8x384xf32> to vector<8x128xf32>
    %266 = vector.extract_strided_slice %264 {offsets = [0, 128], sizes = [8, 128], strides = [1, 1]} : vector<8x384xf32> to vector<8x128xf32>
    %267 = vector.extract_strided_slice %264 {offsets = [0, 256], sizes = [8, 128], strides = [1, 1]} : vector<8x384xf32> to vector<8x128xf32>
    %268 = vector.extract_strided_slice %258 {offsets = [0, 384], sizes = [8, 128], strides = [1, 1]} : vector<8x512xf32> to vector<8x128xf32>
    %269 = math.tanh %268 : vector<8x128xf32>
    %270 = arith.mulf %266, %249 : vector<8x128xf32>
    %271 = arith.mulf %265, %269 : vector<8x128xf32>
    %272 = arith.addf %270, %271 : vector<8x128xf32>
    %273 = math.tanh %272 : vector<8x128xf32>
    %274 = arith.mulf %267, %273 : vector<8x128xf32>
    %c2_i32_104 = arith.constant 2 : i32
    %c8_i32_105 = arith.constant 8 : i32
    %275 = arith.muli %c2_i32_104, %c8_i32_105 : i32
    %276 = tpu.assume_multiple %275, 8 : i32
    %277 = arith.index_cast %276 : i32 to index
    %c0_106 = arith.constant 0 : index
    %278 = vector.load %arg15[%277, %c0_106] : memref<64x512xf32, #tpu.memory_space<vmem>>, vector<8x512xf32>
    %c0_107 = arith.constant 0 : index
    %c0_108 = arith.constant 0 : index
    %279 = vector.load %arg8[%c0_107, %c0_108] : memref<128x512xf32, #tpu.memory_space<vmem>>, vector<128x512xf32>
    %cst_109 = arith.constant dense<0.000000e+00> : vector<8x512xf32>
    %280 = tpu.matmul %274, %279, %cst_109 {dimension_numbers = #tpu.dot_dimension_numbers<[1], [0], [0], [1], [0, 0, 1, 1], [], []>} : vector<8x128xf32>, vector<128x512xf32>, vector<8x512xf32> -> vector<8x512xf32>
    %281 = arith.addf %280, %278 : vector<8x512xf32>
    %282 = vector.extract_strided_slice %281 {offsets = [0, 0], sizes = [8, 384], strides = [1, 1]} : vector<8x512xf32> to vector<8x384xf32>
    %283 = arith.negf %282 : vector<8x384xf32>
    %284 = math.exp %283 : vector<8x384xf32>
    %cst_110 = arith.constant 1.000000e+00 : f32
    %285 = vector.broadcast %cst_110 : f32 to vector<8x384xf32>
    %286 = arith.addf %285, %284 : vector<8x384xf32>
    %287 = arith.divf %285, %286 : vector<8x384xf32>
    %288 = vector.extract_strided_slice %287 {offsets = [0, 0], sizes = [8, 128], strides = [1, 1]} : vector<8x384xf32> to vector<8x128xf32>
    %289 = vector.extract_strided_slice %287 {offsets = [0, 128], sizes = [8, 128], strides = [1, 1]} : vector<8x384xf32> to vector<8x128xf32>
    %290 = vector.extract_strided_slice %287 {offsets = [0, 256], sizes = [8, 128], strides = [1, 1]} : vector<8x384xf32> to vector<8x128xf32>
    %291 = vector.extract_strided_slice %281 {offsets = [0, 384], sizes = [8, 128], strides = [1, 1]} : vector<8x512xf32> to vector<8x128xf32>
    %292 = math.tanh %291 : vector<8x128xf32>
    %293 = arith.mulf %289, %272 : vector<8x128xf32>
    %294 = arith.mulf %288, %292 : vector<8x128xf32>
    %295 = arith.addf %293, %294 : vector<8x128xf32>
    %296 = math.tanh %295 : vector<8x128xf32>
    %297 = arith.mulf %290, %296 : vector<8x128xf32>
    %c3_i32_111 = arith.constant 3 : i32
    %c8_i32_112 = arith.constant 8 : i32
    %298 = arith.muli %c3_i32_111, %c8_i32_112 : i32
    %299 = tpu.assume_multiple %298, 8 : i32
    %300 = arith.index_cast %299 : i32 to index
    %c0_113 = arith.constant 0 : index
    %301 = vector.load %arg15[%300, %c0_113] : memref<64x512xf32, #tpu.memory_space<vmem>>, vector<8x512xf32>
    %c0_114 = arith.constant 0 : index
    %c0_115 = arith.constant 0 : index
    %302 = vector.load %arg8[%c0_114, %c0_115] : memref<128x512xf32, #tpu.memory_space<vmem>>, vector<128x512xf32>
    %cst_116 = arith.constant dense<0.000000e+00> : vector<8x512xf32>
    %303 = tpu.matmul %297, %302, %cst_116 {dimension_numbers = #tpu.dot_dimension_numbers<[1], [0], [0], [1], [0, 0, 1, 1], [], []>} : vector<8x128xf32>, vector<128x512xf32>, vector<8x512xf32> -> vector<8x512xf32>
    %304 = arith.addf %303, %301 : vector<8x512xf32>
    %305 = vector.extract_strided_slice %304 {offsets = [0, 0], sizes = [8, 384], strides = [1, 1]} : vector<8x512xf32> to vector<8x384xf32>
    %306 = arith.negf %305 : vector<8x384xf32>
    %307 = math.exp %306 : vector<8x384xf32>
    %cst_117 = arith.constant 1.000000e+00 : f32
    %308 = vector.broadcast %cst_117 : f32 to vector<8x384xf32>
    %309 = arith.addf %308, %307 : vector<8x384xf32>
    %310 = arith.divf %308, %309 : vector<8x384xf32>
    %311 = vector.extract_strided_slice %310 {offsets = [0, 0], sizes = [8, 128], strides = [1, 1]} : vector<8x384xf32> to vector<8x128xf32>
    %312 = vector.extract_strided_slice %310 {offsets = [0, 128], sizes = [8, 128], strides = [1, 1]} : vector<8x384xf32> to vector<8x128xf32>
    %313 = vector.extract_strided_slice %310 {offsets = [0, 256], sizes = [8, 128], strides = [1, 1]} : vector<8x384xf32> to vector<8x128xf32>
    %314 = vector.extract_strided_slice %304 {offsets = [0, 384], sizes = [8, 128], strides = [1, 1]} : vector<8x512xf32> to vector<8x128xf32>
    %315 = math.tanh %314 : vector<8x128xf32>
    %316 = arith.mulf %312, %295 : vector<8x128xf32>
    %317 = arith.mulf %311, %315 : vector<8x128xf32>
    %318 = arith.addf %316, %317 : vector<8x128xf32>
    %319 = math.tanh %318 : vector<8x128xf32>
    %320 = arith.mulf %313, %319 : vector<8x128xf32>
    %c4_i32_118 = arith.constant 4 : i32
    %c8_i32_119 = arith.constant 8 : i32
    %321 = arith.muli %c4_i32_118, %c8_i32_119 : i32
    %322 = tpu.assume_multiple %321, 8 : i32
    %323 = arith.index_cast %322 : i32 to index
    %c0_120 = arith.constant 0 : index
    %324 = vector.load %arg15[%323, %c0_120] : memref<64x512xf32, #tpu.memory_space<vmem>>, vector<8x512xf32>
    %c0_121 = arith.constant 0 : index
    %c0_122 = arith.constant 0 : index
    %325 = vector.load %arg8[%c0_121, %c0_122] : memref<128x512xf32, #tpu.memory_space<vmem>>, vector<128x512xf32>
    %cst_123 = arith.constant dense<0.000000e+00> : vector<8x512xf32>
    %326 = tpu.matmul %320, %325, %cst_123 {dimension_numbers = #tpu.dot_dimension_numbers<[1], [0], [0], [1], [0, 0, 1, 1], [], []>} : vector<8x128xf32>, vector<128x512xf32>, vector<8x512xf32> -> vector<8x512xf32>
    %327 = arith.addf %326, %324 : vector<8x512xf32>
    %328 = vector.extract_strided_slice %327 {offsets = [0, 0], sizes = [8, 384], strides = [1, 1]} : vector<8x512xf32> to vector<8x384xf32>
    %329 = arith.negf %328 : vector<8x384xf32>
    %330 = math.exp %329 : vector<8x384xf32>
    %cst_124 = arith.constant 1.000000e+00 : f32
    %331 = vector.broadcast %cst_124 : f32 to vector<8x384xf32>
    %332 = arith.addf %331, %330 : vector<8x384xf32>
    %333 = arith.divf %331, %332 : vector<8x384xf32>
    %334 = vector.extract_strided_slice %333 {offsets = [0, 0], sizes = [8, 128], strides = [1, 1]} : vector<8x384xf32> to vector<8x128xf32>
    %335 = vector.extract_strided_slice %333 {offsets = [0, 128], sizes = [8, 128], strides = [1, 1]} : vector<8x384xf32> to vector<8x128xf32>
    %336 = vector.extract_strided_slice %333 {offsets = [0, 256], sizes = [8, 128], strides = [1, 1]} : vector<8x384xf32> to vector<8x128xf32>
    %337 = vector.extract_strided_slice %327 {offsets = [0, 384], sizes = [8, 128], strides = [1, 1]} : vector<8x512xf32> to vector<8x128xf32>
    %338 = math.tanh %337 : vector<8x128xf32>
    %339 = arith.mulf %335, %318 : vector<8x128xf32>
    %340 = arith.mulf %334, %338 : vector<8x128xf32>
    %341 = arith.addf %339, %340 : vector<8x128xf32>
    %342 = math.tanh %341 : vector<8x128xf32>
    %343 = arith.mulf %336, %342 : vector<8x128xf32>
    %c5_i32_125 = arith.constant 5 : i32
    %c8_i32_126 = arith.constant 8 : i32
    %344 = arith.muli %c5_i32_125, %c8_i32_126 : i32
    %345 = tpu.assume_multiple %344, 8 : i32
    %346 = arith.index_cast %345 : i32 to index
    %c0_127 = arith.constant 0 : index
    %347 = vector.load %arg15[%346, %c0_127] : memref<64x512xf32, #tpu.memory_space<vmem>>, vector<8x512xf32>
    %c0_128 = arith.constant 0 : index
    %c0_129 = arith.constant 0 : index
    %348 = vector.load %arg8[%c0_128, %c0_129] : memref<128x512xf32, #tpu.memory_space<vmem>>, vector<128x512xf32>
    %cst_130 = arith.constant dense<0.000000e+00> : vector<8x512xf32>
    %349 = tpu.matmul %343, %348, %cst_130 {dimension_numbers = #tpu.dot_dimension_numbers<[1], [0], [0], [1], [0, 0, 1, 1], [], []>} : vector<8x128xf32>, vector<128x512xf32>, vector<8x512xf32> -> vector<8x512xf32>
    %350 = arith.addf %349, %347 : vector<8x512xf32>
    %351 = vector.extract_strided_slice %350 {offsets = [0, 0], sizes = [8, 384], strides = [1, 1]} : vector<8x512xf32> to vector<8x384xf32>
    %352 = arith.negf %351 : vector<8x384xf32>
    %353 = math.exp %352 : vector<8x384xf32>
    %cst_131 = arith.constant 1.000000e+00 : f32
    %354 = vector.broadcast %cst_131 : f32 to vector<8x384xf32>
    %355 = arith.addf %354, %353 : vector<8x384xf32>
    %356 = arith.divf %354, %355 : vector<8x384xf32>
    %357 = vector.extract_strided_slice %356 {offsets = [0, 0], sizes = [8, 128], strides = [1, 1]} : vector<8x384xf32> to vector<8x128xf32>
    %358 = vector.extract_strided_slice %356 {offsets = [0, 128], sizes = [8, 128], strides = [1, 1]} : vector<8x384xf32> to vector<8x128xf32>
    %359 = vector.extract_strided_slice %356 {offsets = [0, 256], sizes = [8, 128], strides = [1, 1]} : vector<8x384xf32> to vector<8x128xf32>
    %360 = vector.extract_strided_slice %350 {offsets = [0, 384], sizes = [8, 128], strides = [1, 1]} : vector<8x512xf32> to vector<8x128xf32>
    %361 = math.tanh %360 : vector<8x128xf32>
    %362 = arith.mulf %358, %341 : vector<8x128xf32>
    %363 = arith.mulf %357, %361 : vector<8x128xf32>
    %364 = arith.addf %362, %363 : vector<8x128xf32>
    %365 = math.tanh %364 : vector<8x128xf32>
    %366 = arith.mulf %359, %365 : vector<8x128xf32>
    %c6_i32_132 = arith.constant 6 : i32
    %c8_i32_133 = arith.constant 8 : i32
    %367 = arith.muli %c6_i32_132, %c8_i32_133 : i32
    %368 = tpu.assume_multiple %367, 8 : i32
    %369 = arith.index_cast %368 : i32 to index
    %c0_134 = arith.constant 0 : index
    %370 = vector.load %arg15[%369, %c0_134] : memref<64x512xf32, #tpu.memory_space<vmem>>, vector<8x512xf32>
    %c0_135 = arith.constant 0 : index
    %c0_136 = arith.constant 0 : index
    %371 = vector.load %arg8[%c0_135, %c0_136] : memref<128x512xf32, #tpu.memory_space<vmem>>, vector<128x512xf32>
    %cst_137 = arith.constant dense<0.000000e+00> : vector<8x512xf32>
    %372 = tpu.matmul %366, %371, %cst_137 {dimension_numbers = #tpu.dot_dimension_numbers<[1], [0], [0], [1], [0, 0, 1, 1], [], []>} : vector<8x128xf32>, vector<128x512xf32>, vector<8x512xf32> -> vector<8x512xf32>
    %373 = arith.addf %372, %370 : vector<8x512xf32>
    %374 = vector.extract_strided_slice %373 {offsets = [0, 0], sizes = [8, 384], strides = [1, 1]} : vector<8x512xf32> to vector<8x384xf32>
    %375 = arith.negf %374 : vector<8x384xf32>
    %376 = math.exp %375 : vector<8x384xf32>
    %cst_138 = arith.constant 1.000000e+00 : f32
    %377 = vector.broadcast %cst_138 : f32 to vector<8x384xf32>
    %378 = arith.addf %377, %376 : vector<8x384xf32>
    %379 = arith.divf %377, %378 : vector<8x384xf32>
    %380 = vector.extract_strided_slice %379 {offsets = [0, 0], sizes = [8, 128], strides = [1, 1]} : vector<8x384xf32> to vector<8x128xf32>
    %381 = vector.extract_strided_slice %379 {offsets = [0, 128], sizes = [8, 128], strides = [1, 1]} : vector<8x384xf32> to vector<8x128xf32>
    %382 = vector.extract_strided_slice %379 {offsets = [0, 256], sizes = [8, 128], strides = [1, 1]} : vector<8x384xf32> to vector<8x128xf32>
    %383 = vector.extract_strided_slice %373 {offsets = [0, 384], sizes = [8, 128], strides = [1, 1]} : vector<8x512xf32> to vector<8x128xf32>
    %384 = math.tanh %383 : vector<8x128xf32>
    %385 = arith.mulf %381, %364 : vector<8x128xf32>
    %386 = arith.mulf %380, %384 : vector<8x128xf32>
    %387 = arith.addf %385, %386 : vector<8x128xf32>
    %388 = math.tanh %387 : vector<8x128xf32>
    %389 = arith.mulf %382, %388 : vector<8x128xf32>
    %c7_i32_139 = arith.constant 7 : i32
    %c8_i32_140 = arith.constant 8 : i32
    %390 = arith.muli %c7_i32_139, %c8_i32_140 : i32
    %391 = tpu.assume_multiple %390, 8 : i32
    %392 = arith.index_cast %391 : i32 to index
    %c0_141 = arith.constant 0 : index
    %393 = vector.load %arg15[%392, %c0_141] : memref<64x512xf32, #tpu.memory_space<vmem>>, vector<8x512xf32>
    %c0_142 = arith.constant 0 : index
    %c0_143 = arith.constant 0 : index
    %394 = vector.load %arg8[%c0_142, %c0_143] : memref<128x512xf32, #tpu.memory_space<vmem>>, vector<128x512xf32>
    %cst_144 = arith.constant dense<0.000000e+00> : vector<8x512xf32>
    %395 = tpu.matmul %389, %394, %cst_144 {dimension_numbers = #tpu.dot_dimension_numbers<[1], [0], [0], [1], [0, 0, 1, 1], [], []>} : vector<8x128xf32>, vector<128x512xf32>, vector<8x512xf32> -> vector<8x512xf32>
    %396 = arith.addf %395, %393 : vector<8x512xf32>
    %397 = vector.extract_strided_slice %396 {offsets = [0, 0], sizes = [8, 384], strides = [1, 1]} : vector<8x512xf32> to vector<8x384xf32>
    %398 = arith.negf %397 : vector<8x384xf32>
    %399 = math.exp %398 : vector<8x384xf32>
    %cst_145 = arith.constant 1.000000e+00 : f32
    %400 = vector.broadcast %cst_145 : f32 to vector<8x384xf32>
    %401 = arith.addf %400, %399 : vector<8x384xf32>
    %402 = arith.divf %400, %401 : vector<8x384xf32>
    %403 = vector.extract_strided_slice %402 {offsets = [0, 0], sizes = [8, 128], strides = [1, 1]} : vector<8x384xf32> to vector<8x128xf32>
    %404 = vector.extract_strided_slice %402 {offsets = [0, 128], sizes = [8, 128], strides = [1, 1]} : vector<8x384xf32> to vector<8x128xf32>
    %405 = vector.extract_strided_slice %402 {offsets = [0, 256], sizes = [8, 128], strides = [1, 1]} : vector<8x384xf32> to vector<8x128xf32>
    %406 = vector.extract_strided_slice %396 {offsets = [0, 384], sizes = [8, 128], strides = [1, 1]} : vector<8x512xf32> to vector<8x128xf32>
    %407 = math.tanh %406 : vector<8x128xf32>
    %408 = arith.mulf %404, %387 : vector<8x128xf32>
    %409 = arith.mulf %403, %407 : vector<8x128xf32>
    %410 = arith.addf %408, %409 : vector<8x128xf32>
    %411 = math.tanh %410 : vector<8x128xf32>
    %412 = arith.mulf %405, %411 : vector<8x128xf32>
    %c8_i32_146 = arith.constant 8 : i32
    %c1_147 = arith.constant 1 : index
    %c0_148 = arith.constant 0 : index
    %c0_149 = arith.constant 0 : index
    %413 = vector.load %arg13[%c1_147, %c0_148, %c0_149] : memref<2x8x128xf32, #tpu.memory_space<vmem>>, vector<1x8x128xf32>
    %414 = vector.shape_cast %413 : vector<1x8x128xf32> to vector<8x128xf32>
    %415 = vector.shape_cast %412 : vector<8x128xf32> to vector<1x8x128xf32>
    tpu.vector_store %arg13[%c1_147, %c0_148, %c0_149], %415 {strides = array<i32>} : memref<2x8x128xf32, #tpu.memory_space<vmem>>, vector<1x8x128xf32>,
    %c1_150 = arith.constant 1 : index
    %c0_151 = arith.constant 0 : index
    %c0_152 = arith.constant 0 : index
    %416 = vector.load %arg14[%c1_150, %c0_151, %c0_152] : memref<2x8x128xf32, #tpu.memory_space<vmem>>, vector<1x8x128xf32>
    %417 = vector.shape_cast %416 : vector<1x8x128xf32> to vector<8x128xf32>
    %418 = vector.shape_cast %410 : vector<8x128xf32> to vector<1x8x128xf32>
    tpu.vector_store %arg14[%c1_150, %c0_151, %c0_152], %418 {strides = array<i32>} : memref<2x8x128xf32, #tpu.memory_space<vmem>>, vector<1x8x128xf32>,
    %c0_153 = arith.constant 0 : index
    %c0_154 = arith.constant 0 : index
    %419 = vector.load %arg10[%c0_153, %c0_154] : memref<1x128xf32, #tpu.memory_space<vmem>>, vector<1x128xf32>
    %420 = vector.broadcast %419 : vector<1x128xf32> to vector<8x128xf32>
    %421 = arith.mulf %412, %420 : vector<8x128xf32>
    %cst_155 = arith.constant dense<0.000000e+00> : vector<8xf32>
    %422 = vector.multi_reduction <add>, %421, %cst_155 [1] : vector<8x128xf32> to vector<8xf32>
    %423 = vector.shape_cast %422 : vector<8xf32> to vector<8x1xf32>
    %c0_156 = arith.constant 0 : index
    %424 = memref.load %arg11[%c0_156] : memref<1xf32, #tpu.memory_space<smem>>
    %425 = vector.broadcast %424 : f32 to vector<8x1xf32>
    %426 = arith.addf %423, %425 : vector<8x1xf32>
    %427 = vector.shape_cast %426 : vector<8x1xf32> to vector<8x1xf32>
    %428 = vector.broadcast %427 : vector<8x1xf32> to vector<8x128xf32>
    %c0_157 = arith.constant 0 : index
    %c0_158 = arith.constant 0 : index
    %429 = vector.load %arg12[%c0_157, %c0_158] : memref<8x128xf32, #tpu.memory_space<vmem>>, vector<8x128xf32>
    tpu.vector_store %arg12[%c0_157, %c0_158], %428 {strides = array<i32>} : memref<8x128xf32, #tpu.memory_space<vmem>>, vector<8x128xf32>,
    return
  }
  func.func @transform_0(%arg0: i32) -> (i32, i32, i32) {
    %c0_i32 = arith.constant 0 : i32
    %c0_i32_0 = arith.constant 0 : i32
    %c0_i32_1 = arith.constant 0 : i32
    return %c0_i32, %arg0, %c0_i32_0 : i32, i32, i32
  }
  func.func @transform_1(%arg0: i32) -> (i32, i32, i32) {
    %c0_i32 = arith.constant 0 : i32
    %c0_i32_0 = arith.constant 0 : i32
    %c0_i32_1 = arith.constant 0 : i32
    return %c0_i32, %arg0, %c0_i32_0 : i32, i32, i32
  }
  func.func @transform_2(%arg0: i32) -> (i32, i32, i32) {
    %c0_i32 = arith.constant 0 : i32
    %c0_i32_0 = arith.constant 0 : i32
    %c0_i32_1 = arith.constant 0 : i32
    return %c0_i32, %arg0, %c0_i32_0 : i32, i32, i32
  }
  func.func @transform_3(%arg0: i32) -> (i32, i32) {
    %c0_i32 = arith.constant 0 : i32
    %c0_i32_0 = arith.constant 0 : i32
    %c0_i32_1 = arith.constant 0 : i32
    return %c0_i32, %c0_i32_0 : i32, i32
  }
  func.func @transform_4(%arg0: i32) -> (i32, i32) {
    %c0_i32 = arith.constant 0 : i32
    %c0_i32_0 = arith.constant 0 : i32
    %c0_i32_1 = arith.constant 0 : i32
    return %c0_i32, %c0_i32_0 : i32, i32
  }
  func.func @transform_5(%arg0: i32) -> (i32, i32) {
    %c0_i32 = arith.constant 0 : i32
    %c0_i32_0 = arith.constant 0 : i32
    %c0_i32_1 = arith.constant 0 : i32
    return %c0_i32, %c0_i32_0 : i32, i32
  }
  func.func @transform_6(%arg0: i32) -> (i32, i32) {
    %c0_i32 = arith.constant 0 : i32
    %c0_i32_0 = arith.constant 0 : i32
    %c0_i32_1 = arith.constant 0 : i32
    return %c0_i32, %c0_i32_0 : i32, i32
  }
  func.func @transform_7(%arg0: i32) -> (i32, i32) {
    %c0_i32 = arith.constant 0 : i32
    %c0_i32_0 = arith.constant 0 : i32
    %c0_i32_1 = arith.constant 0 : i32
    return %c0_i32, %c0_i32_0 : i32, i32
  }
  func.func @transform_8(%arg0: i32) -> (i32, i32) {
    %c0_i32 = arith.constant 0 : i32
    %c0_i32_0 = arith.constant 0 : i32
    %c0_i32_1 = arith.constant 0 : i32
    return %c0_i32, %c0_i32_0 : i32, i32
  }
  func.func @transform_9(%arg0: i32) -> (i32, i32) {
    %c0_i32 = arith.constant 0 : i32
    %c0_i32_0 = arith.constant 0 : i32
    %c0_i32_1 = arith.constant 0 : i32
    return %c0_i32, %c0_i32_0 : i32, i32
  }
  func.func @transform_10(%arg0: i32) -> i32 {
    %c0_i32 = arith.constant 0 : i32
    %c0_i32_0 = arith.constant 0 : i32
    return %c0_i32 : i32
  }
  func.func @transform_11(%arg0: i32) -> (i32, i32) {
    %c0_i32 = arith.constant 0 : i32
    %c0_i32_0 = arith.constant 0 : i32
    return %arg0, %c0_i32 : i32, i32
  }
  func.func @transform_12(%arg0: i32) -> (i32, i32, i32) {
    %c0_i32 = arith.constant 0 : i32
    %c0_i32_0 = arith.constant 0 : i32
    %c0_i32_1 = arith.constant 0 : i32
    return %c0_i32, %arg0, %c0_i32_0 : i32, i32, i32
  }
  func.func @transform_13(%arg0: i32) -> (i32, i32, i32) {
    %c0_i32 = arith.constant 0 : i32
    %c0_i32_0 = arith.constant 0 : i32
    %c0_i32_1 = arith.constant 0 : i32
    return %c0_i32, %arg0, %c0_i32_0 : i32, i32, i32
  }
}

</mosaic_0001>

<bundles_post_ra>
// kernel: tpu_custom_call.1
= control target key start
LH: loop header
LB: loop body
LE: loop exit
PB: predicated region body
PF: predicated region fallthrough
CT: control target
= control target key end

     0   :  { %20 = vsyncpa [#allocation6], 0  ;;  %s7075_s0 = inlined_call_operand.vmem [shape: f32[8,8,4], index: 0, kind: input, shape index: {}]   ;;  %s7076_s1 = inlined_call_operand.vmem [shape: f32[2,8,128], index: 1, kind: input, shape index: {}]   ;;  %s7077_s2 = inlined_call_operand.vmem [shape: f32[2,8,128], index: 2, kind: input, shape index: {}]   ;;  %s7078_s3 = inlined_call_operand.vmem [shape: f32[4,512], index: 3, kind: input, shape index: {}]   ;;  %s7079_s4 = inlined_call_operand.hbm [shape: f32[128,512], index: 4, kind: input, shape index: {}]   ;;  %s7080_s5 = inlined_call_operand.vmem [shape: f32[1,512], index: 5, kind: input, shape index: {}]   ;;  %s7081_s6 = inlined_call_operand.hbm [shape: f32[128,512], index: 6, kind: input, shape index: {}]   ;;  %s7082_s7 = inlined_call_operand.hbm [shape: f32[128,512], index: 7, kind: input, shape index: {}]   ;;  %s7083_s8 = inlined_call_operand.vmem [shape: f32[1,512], index: 8, kind: input, shape index: {}]   ;;  %s7084_s9 = inlined_call_operand.vmem [shape: f32[1,128], index: 9, kind: input, shape index: {}]   ;;  %s7085_s10 = inlined_call_operand.<no memory space> [shape: f32[1], index: 10, kind: input, shape index: {}]   ;;  %s7086_s11 = inlined_call_operand.hbm [shape: f32[8,128], index: 11, kind: output, shape index: {0}]   ;;  %s7087_s12 = inlined_call_operand.hbm [shape: f32[2,8,128], index: 12, kind: output, shape index: {1}]   ;;  %s7088_s13 = inlined_call_operand.hbm [shape: f32[2,8,128], index: 13, kind: output, shape index: {2}]  }
   0x1   :  { %21 = vsyncpa [#allocation9], 0 }
   0x2   :  { %22 = vsyncpa [#allocation7], 0 }
   0x3   :  { %23 = vsyncpa [#allocation13], 0  ;;  %s5876_s25 = smov [#allocation8]   ;;  %s5877_s27 = smov [#allocation5]  }
   0x4   :  { %s51_s26 = sshll.u32 %s5876_s25, 4  ;;  %s37_s28 = sshll.u32 %s5877_s27, 4  ;;  %s52_s26 = int_to_ptr.vmem [resolvable:$true] %s51_s26  ;;  %s5957_s28 = int_to_ptr.vmem [resolvable:$true] %s37_s28 }
   0x5   :  { %s5736_s14 = scalar_lea.hbm %s7081_s6, 8192 }
   0x6   :  { %p5737_p0 = scmp.ne.s32.totalorder %s7081_s6, %s5736_s14  ;;  %p5740_p1 = scmp.lt.u32.totalorder %s5736_s14, %s7081_s6 }
   0x8   :  { %p5742_p2 = pnand %p5740_p1, %p5737_p0 }
   0xa   :  { %5745 = shalt.err (!%p5742_p2)
}
   0xb   :  { %s5746_s19 = scalar_lea.vmem %s52_s26, 8192  ;;  %p5751_p4 = scmp.lt.s32.totalorder %s52_s26, %s52_s26 }
   0xc   :  { %p5747_p3 = scmp.ne.s32.totalorder %s52_s26, %s5746_s19  ;;  %p5752_p5 = scmp.lt.s32.totalorder %s5746_s19, %s5746_s19 }
   0xe   :  { %p5753_p6 = por %p5752_p5, %p5751_p4 }
  0x10   :  { %p5754_p7 = pnand %p5753_p6, %p5747_p3 }
  0x12   :  { %5757 = shalt.err (!%p5754_p7)
}
  0x13   :  { %s5878_s20 = smov 512   ;;  %s5879_s21 = smov 32  }
  0x14   :  { %57 = dma.hbm_to_vmem [thread:$0]  %s7081_s6, 8192, %s52_s26, [#allocation9], %s5878_s20, %s5878_s20, %s5879_s21  }
  0x15   :  { %s5758_s27 = scalar_lea.hbm %s7079_s4, 8192 }
  0x16   :  { %p5759_p8 = scmp.ne.s32.totalorder %s7079_s4, %s5758_s27  ;;  %p5762_p9 = scmp.lt.u32.totalorder %s5758_s27, %s7079_s4 }
  0x18   :  { %p5764_p10 = pnand %p5762_p9, %p5759_p8 }
  0x1a   :  { %5767 = shalt.err (!%p5764_p10)
}
  0x1b   :  { %s5768_s16 = scalar_lea.vmem %s5957_s28, 8192  ;;  %p5773_p12 = scmp.lt.s32.totalorder %s5957_s28, %s5957_s28 }
  0x1c   :  { %p5769_p11 = scmp.ne.s32.totalorder %s5957_s28, %s5768_s16  ;;  %p5774_p13 = scmp.lt.s32.totalorder %s5768_s16, %s5768_s16 }
  0x1e   :  { %p5775_p0 = por %p5774_p13, %p5773_p12 }
  0x20   :  { %p5776_p1 = pnand %p5775_p0, %p5769_p11 }
  0x22   :  { %5779 = shalt.err (!%p5776_p1)
}
  0x23   :  { %43 = dma.hbm_to_vmem [thread:$0]  %s7079_s4, 8192, %s5957_s28, [#allocation6], %s5878_s20, %s5878_s20, %s5879_s21  }
  0x24   :  { %s5880_s17 = smov [#allocation10]   ;;  %s5780_s23 = scalar_lea.hbm %s7082_s7, 8192 }
  0x25   :  { %s63_s18 = sshll.u32 %s5880_s17, 4  ;;  %p5781_p2 = scmp.ne.s32.totalorder %s7082_s7, %s5780_s23  ;;  %s64_s18 = int_to_ptr.vmem [resolvable:$true] %s63_s18 }
  0x26   :  { %p5784_p3 = scmp.lt.u32.totalorder %s5780_s23, %s7082_s7 }
  0x28   :  { %p5786_p4 = pnand %p5784_p3, %p5781_p2 }
  0x2a   :  { %5789 = shalt.err (!%p5786_p4)
}
  0x2b   :  { %s5790_s30 = scalar_lea.vmem %s64_s18, 8192  ;;  %p5795_p6 = scmp.lt.s32.totalorder %s64_s18, %s64_s18 }
  0x2c   :  { %p5791_p5 = scmp.ne.s32.totalorder %s64_s18, %s5790_s30  ;;  %p5796_p7 = scmp.lt.s32.totalorder %s5790_s30, %s5790_s30 }
  0x2e   :  { %p5797_p8 = por %p5796_p7, %p5795_p6 }
  0x30   :  { %p5798_p9 = pnand %p5797_p8, %p5791_p5 }
  0x32   :  { %5801 = shalt.err (!%p5798_p9)
}
  0x33   :  { %69 = dma.hbm_to_vmem [thread:$0]  %s7082_s7, 8192, %s64_s18, [#allocation9], %s5878_s20, %s5878_s20, %s5879_s21  }
  0x34   :  { %5868 = dma.done.wait [#allocation6], 8192  }
  0x35   :  { %5869 = vsyncadd [#allocation6], 4294959104 }
  0x36   :  { %5870 = dma.done.wait [#allocation9], 16384  }
  0x37   :  { %5871 = vsyncadd [#allocation9], 4294950912  ;;  %v5881_v0 = vmov 0.0   ;;  %v93_v1 = vld [vmem:[%s7078_s3] sm:$0xff]  ;;  %vm146_vm0 = vcmask 1043456   ;;  %v94_v2 = vld [vmem:[%s7078_s3 + $0x8] sm:$0xff] }
  0x38   :  { %219 = vmatprep.mubr.f32.mxu0 %v5881_v0  ;;  %332 = vmatprep.mubr.f32.mxu1 %v5881_v0  ;;  %v85_v3 = vld [vmem:[%s7075_s0] sm:$0xff]  ;;  %v119_v4 = vcombine.high %v93_v1, %v93_v1  ;;  %v120_v5 = vcombine.high %v94_v2, %v94_v2  ;;  %v423_v6 = vld [vmem:[#allocation5 + $0x8] sm:$0xff]  ;;  %v425_v8 = vld [vmem:[#allocation5 + $0x18] sm:$0xff]  ;;  %vm121_vm1 = vcmask 31744   ;;  %s5882_s21 = smov [#allocation12]  }
  0x39   :  { %v427_v7 = vld [vmem:[#allocation5 + $0x28] sm:$0xff]  ;;  %v429_v10 = vld [vmem:[#allocation5 + $0x38] sm:$0xff]  ;;  %v422_v11 = vld [vmem:[#allocation5] sm:$0xff]  ;;  %s4141_s17 = sshll.u32 %s5882_s21, 4  ;;  %s4142_s17 = int_to_ptr.vmem [resolvable:$true] %s4141_s17 }
  0x3a   :  { %v6020_v9 = vpack.c.bf16 %v427_v7, %v423_v6  ;;  %v426_v12 = vld [vmem:[#allocation5 + $0x20] sm:$0xff]  ;;  %4180 = vmatprep.subr.msk.mxu0 %vm146_vm0, %v119_v4  ;;  %4190 = vmatprep.subr.msk.mxu1 %vm146_vm0, %v120_v5  ;;  %v6024_v13 = vpack.c.bf16 %v429_v10, %v425_v8  ;;  %v424_v15 = vld [vmem:[#allocation5 + $0x10] sm:$0xff]  ;;  %v431_v18 = vld [vmem:[#allocation5 + $0x48] sm:$0xff]  ;;  %s5802_s18 = scalar_lea.vmem %s4142_s17, 256  ;;  %p5807_p11 = scmp.lt.s32.totalorder %s4142_s17, %s4142_s17 }
  0x3b   :  { %v6026_v14 = vpack.c.bf16 %v426_v12, %v422_v11  ;;  %v428_v16 = vld [vmem:[#allocation5 + $0x30] sm:$0xff]  ;;  %4181 = vmatpush1.msk.msra.mxu0 %vm146_vm0, %v93_v1  ;;  %4191 = vmatpush1.msk.msra.mxu1 %vm146_vm0, %v94_v2  ;;  %v435_v19 = vld [vmem:[#allocation5 + $0x68] sm:$0xff]  ;;  %v433_v20 = vld [vmem:[#allocation5 + $0x58] sm:$0xff]  ;;  %p5803_p10 = scmp.ne.s32.totalorder %s4142_s17, %s5802_s18  ;;  %p5808_p12 = scmp.lt.s32.totalorder %s5802_s18, %s5802_s18 }
  0x3c   :  { %v6030_v17 = vpack.c.bf16 %v428_v16, %v424_v15  ;;  %4182 = vmatmul.mubr.msk.f32.vlgmr.msra.gmra.mrb[0].mxu0 %vm121_vm1, %v85_v3  ;;  %4192 = vmatmul.mubr.msk.f32.vlgmr.msra.gmra.mrb[0].mxu1 %vm121_vm1, %v85_v3  ;;  %v437_v21 = vld [vmem:[#allocation5 + $0x78] sm:$0xff]  ;;  %v430_v22 = vld [vmem:[#allocation5 + $0x40] sm:$0xff]  ;;  %v86_v24 = vld [vmem:[%s7075_s0 + $0x8] sm:$0xff]  ;;  %v6039_v25 = vpack.c.bf16 %v435_v19, %v431_v18 }
  0x3d   :  { %v434_v23 = vld [vmem:[#allocation5 + $0x60] sm:$0xff]  ;;  %4252 = vmatprep.subr.bf16.mxu0 %v6020_v9  ;;  %4284 = vmatprep.subr.bf16.mxu1 %v6024_v13  ;;  %v6041_v26 = vpack.c.bf16 %v437_v21, %v433_v20  ;;  %v432_v27 = vld [vmem:[#allocation5 + $0x50] sm:$0xff]  ;;  %v439_v31 = vld [vmem:[#allocation5 + $0x88] sm:$0xff]  ;;  %p5809_p13 = por %p5808_p12, %p5807_p11 }
  0x3e   :  { %v436_v28 = vld [vmem:[#allocation5 + $0x70] sm:$0xff]  ;;  %4254 = vmatpush1.bf16.msra.mxu0 %v6026_v14  ;;  %4286 = vmatpush1.bf16.msra.mxu1 %v6030_v17  ;;  %v6045_v29 = vpack.c.bf16 %v434_v23, %v430_v22  ;;  %v443_v32 = vld [vmem:[#allocation5 + $0xa8] sm:$0xff]  ;;  %v441_v33 = vld [vmem:[#allocation5 + $0x98] sm:$0xff] }
  0x3f   :  { %v6047_v30 = vpack.c.bf16 %v436_v28, %v432_v27  ;;  %225 = vmatprep.mubr.f32.mxu0 %v5881_v0  ;;  %338 = vmatprep.mubr.f32.mxu1 %v5881_v0  ;;  %v445_v34 = vld [vmem:[#allocation5 + $0xb8] sm:$0xff]  ;;  %v438_v35 = vld [vmem:[#allocation5 + $0x80] sm:$0xff]  ;;  %v440_v37 = vld [vmem:[#allocation5 + $0x90] sm:$0xff]  ;;  %v6058_v40 = vpack.c.bf16 %v443_v32, %v439_v31  ;;  %p5810_p0 = pnand %p5809_p13, %p5803_p10 }
  0x40   :  { %v442_v36 = vld [vmem:[#allocation5 + $0xa0] sm:$0xff]  ;;  %4183 = vmatmul.mubr.msk.f32.gmra.mrb[2].mxu0 %vm121_vm1, %v86_v24  ;;  %4193 = vmatmul.mubr.msk.f32.gmra.mrb[2].mxu1 %vm121_vm1, %v86_v24  ;;  %v444_v38 = vld [vmem:[#allocation5 + $0xb0] sm:$0xff]  ;;  %v6060_v41 = vpack.c.bf16 %v445_v34, %v441_v33  ;;  %v447_v42 = vld [vmem:[#allocation5 + $0xc8] sm:$0xff] }
  0x41   :  { %4256 = vmatprep.subr.bf16.mxu0 %v6039_v25  ;;  %4288 = vmatprep.subr.bf16.mxu1 %v6041_v26  ;;  %v87_v39 = vld [vmem:[%s7075_s0 + $0x10] sm:$0xff]  ;;  %v451_v43 = vld [vmem:[#allocation5 + $0xe8] sm:$0xff]  ;;  %v6064_v44 = vpack.c.bf16 %v442_v36, %v438_v35  ;;  %v6066_v45 = vpack.c.bf16 %v444_v38, %v440_v37  ;;  %v449_v46 = vld [vmem:[#allocation5 + $0xd8] sm:$0xff] }
  0x42   :  { %4258 = vmatpush1.bf16.msra.mxu0 %v6045_v29  ;;  %4290 = vmatpush1.bf16.msra.mxu1 %v6047_v30  ;;  %v453_v47 = vld [vmem:[#allocation5 + $0xf8] sm:$0xff]  ;;  %v446_v48 = vld [vmem:[#allocation5 + $0xc0] sm:$0xff]  ;;  %v448_v50 = vld [vmem:[#allocation5 + $0xd0] sm:$0xff]  ;;  %v6077_v53 = vpack.c.bf16 %v451_v43, %v447_v42 }
  0x43   :  { %231 = vmatprep.mubr.f32.mxu0 %v5881_v0  ;;  %344 = vmatprep.mubr.f32.mxu1 %v5881_v0  ;;  %v450_v49 = vld [vmem:[#allocation5 + $0xe0] sm:$0xff]  ;;  %v452_v51 = vld [vmem:[#allocation5 + $0xf0] sm:$0xff]  ;;  %v88_v52 = vld [vmem:[%s7075_s0 + $0x18] sm:$0xff]  ;;  %v6079_v54 = vpack.c.bf16 %v453_v47, %v449_v46 }
  0x44   :  { %4184 = vmatmul.mubr.msk.f32.gmra.mrb[4].mxu0 %vm121_vm1, %v87_v39  ;;  %4194 = vmatmul.mubr.msk.f32.gmra.mrb[4].mxu1 %vm121_vm1, %v87_v39  ;;  %v455_v55 = vld [vmem:[#allocation5 + $0x108] sm:$0xff]  ;;  %v6083_v57 = vpack.c.bf16 %v450_v49, %v446_v48  ;;  %v6085_v58 = vpack.c.bf16 %v452_v51, %v448_v50  ;;  %v457_v59 = vld [vmem:[#allocation5 + $0x118] sm:$0xff]  ;;  %v454_v61 = vld [vmem:[#allocation5 + $0x100] sm:$0xff] }
  0x45   :  { %4260 = vmatprep.subr.bf16.mxu0 %v6058_v40  ;;  %4292 = vmatprep.subr.bf16.mxu1 %v6060_v41  ;;  %v459_v56 = vld [vmem:[#allocation5 + $0x128] sm:$0xff]  ;;  %v461_v60 = vld [vmem:[#allocation5 + $0x138] sm:$0xff]  ;;  %v458_v62 = vld [vmem:[#allocation5 + $0x120] sm:$0xff] }
  0x46   :  { %4262 = vmatpush1.bf16.msra.mxu0 %v6064_v44  ;;  %4294 = vmatpush1.bf16.msra.mxu1 %v6066_v45  ;;  %v456_v63 = vld [vmem:[#allocation5 + $0x110] sm:$0xff]  ;;  %v89_v2 = vld [vmem:[%s7075_s0 + $0x20] sm:$0xff]  ;;  %v6096_v3 = vpack.c.bf16 %v459_v56, %v455_v55  ;;  %v6098_v4 = vpack.c.bf16 %v461_v60, %v457_v59  ;;  %v463_v5 = vld [vmem:[#allocation5 + $0x148] sm:$0xff]  ;;  %v6102_v7 = vpack.c.bf16 %v458_v62, %v454_v61 }
  0x47   :  { %237 = vmatprep.mubr.f32.mxu0 %v5881_v0  ;;  %350 = vmatprep.mubr.f32.mxu1 %v5881_v0  ;;  %v460_v1 = vld [vmem:[#allocation5 + $0x130] sm:$0xff]  ;;  %v467_v6 = vld [vmem:[#allocation5 + $0x168] sm:$0xff]  ;;  %v465_v10 = vld [vmem:[#allocation5 + $0x158] sm:$0xff] }
  0x48   :  { %4185 = vmatmul.mubr.msk.f32.gmra.mrb[6].mxu0 %vm121_vm1, %v88_v52  ;;  %4195 = vmatmul.mubr.msk.f32.gmra.mrb[6].mxu1 %vm121_vm1, %v88_v52  ;;  %v6104_v8 = vpack.c.bf16 %v460_v1, %v456_v63  ;;  %v469_v11 = vld [vmem:[#allocation5 + $0x178] sm:$0xff]  ;;  %v462_v12 = vld [vmem:[#allocation5 + $0x140] sm:$0xff]  ;;  %v464_v16 = vld [vmem:[#allocation5 + $0x150] sm:$0xff]  ;;  %v6115_v20 = vpack.c.bf16 %v467_v6, %v463_v5  ;;  %v97_v63 = vlaneseq }
  0x49   :  { %4264 = vmatprep.subr.bf16.mxu0 %v6077_v53  ;;  %4296 = vmatprep.subr.bf16.mxu1 %v6079_v54  ;;  %v466_v15 = vld [vmem:[#allocation5 + $0x160] sm:$0xff]  ;;  %v468_v18 = vld [vmem:[#allocation5 + $0x170] sm:$0xff]  ;;  %v90_v19 = vld [vmem:[%s7075_s0 + $0x28] sm:$0xff]  ;;  %v6117_v21 = vpack.c.bf16 %v469_v11, %v465_v10 }
  0x4a   :  { %4266 = vmatpush1.bf16.msra.mxu0 %v6083_v57  ;;  %4298 = vmatpush1.bf16.msra.mxu1 %v6085_v58  ;;  %v471_v22 = vld [vmem:[#allocation5 + $0x188] sm:$0xff]  ;;  %v6121_v24 = vpack.c.bf16 %v466_v15, %v462_v12  ;;  %v6123_v27 = vpack.c.bf16 %v468_v18, %v464_v16  ;;  %v473_v28 = vld [vmem:[#allocation5 + $0x198] sm:$0xff]  ;;  %v470_v32 = vld [vmem:[#allocation5 + $0x180] sm:$0xff]  ;;  %v6212_v1 = vshrl.u32 %v97_v63, 7 }
  0x4b   :  { %243 = vmatprep.mubr.f32.mxu0 %v5881_v0  ;;  %356 = vmatprep.mubr.f32.mxu1 %v5881_v0  ;;  %v475_v23 = vld [vmem:[#allocation5 + $0x1a8] sm:$0xff]  ;;  %v477_v31 = vld [vmem:[#allocation5 + $0x1b8] sm:$0xff]  ;;  %v474_v33 = vld [vmem:[#allocation5 + $0x1a0] sm:$0xff] }
  0x4c   :  { %4186 = vmatmul.mubr.msk.f32.gmra.mrb[8].mxu0 %vm121_vm1, %v89_v2  ;;  %4196 = vmatmul.mubr.msk.f32.gmra.mrb[8].mxu1 %vm121_vm1, %v89_v2  ;;  %v472_v34 = vld [vmem:[#allocation5 + $0x190] sm:$0xff]  ;;  %v6134_v37 = vpack.c.bf16 %v475_v23, %v471_v22  ;;  %v6136_v38 = vpack.c.bf16 %v477_v31, %v473_v28  ;;  %v479_v39 = vld [vmem:[#allocation5 + $0x1c8] sm:$0xff]  ;;  %v6140_v43 = vpack.c.bf16 %v474_v33, %v470_v32  ;;  %v481_v47 = vld [vmem:[#allocation5 + $0x1d8] sm:$0xff]  ;;  %v99_v2 = vsub.s32 0, %v6212_v1 }
  0x4d   :  { %4268 = vmatprep.subr.bf16.mxu0 %v6096_v3  ;;  %4300 = vmatprep.subr.bf16.mxu1 %v6098_v4  ;;  %v476_v35 = vld [vmem:[#allocation5 + $0x1b0] sm:$0xff]  ;;  %v483_v42 = vld [vmem:[#allocation5 + $0x1e8] sm:$0xff]  ;;  %v485_v48 = vld [vmem:[#allocation5 + $0x1f8] sm:$0xff]  ;;  %v103_v6 = vsub.s32 1, %v6212_v1  ;;  %v107_v15 = vsub.s32 2, %v6212_v1  ;;  %v111_v28 = vsub.s32 3, %v6212_v1 }
  0x4e   :  { %4270 = vmatpush1.bf16.msra.mxu0 %v6102_v7  ;;  %4302 = vmatpush1.bf16.msra.mxu1 %v6104_v8  ;;  %v91_v36 = vld [vmem:[%s7075_s0 + $0x30] sm:$0xff]  ;;  %v6142_v46 = vpack.c.bf16 %v476_v35, %v472_v34  ;;  %v478_v49 = vld [vmem:[#allocation5 + $0x1c0] sm:$0xff]  ;;  %v92_v55 = vld [vmem:[%s7075_s0 + $0x38] sm:$0xff]  ;;  %v6153_v56 = vpack.c.bf16 %v483_v42, %v479_v39  ;;  %v6155_v59 = vpack.c.bf16 %v485_v48, %v481_v47 }
  0x4f   :  { %249 = vmatprep.mubr.f32.mxu0 %v5881_v0  ;;  %362 = vmatprep.mubr.f32.mxu1 %v5881_v0  ;;  %v482_v50 = vld [vmem:[#allocation5 + $0x1e0] sm:$0xff]  ;;  %v480_v51 = vld [vmem:[#allocation5 + $0x1d0] sm:$0xff]  ;;  %v4225_v1 = vld [vmem:[%s7077_s2 + $0x8] sm:$0xff] }
  0x50   :  { %4187 = vmatmul.mubr.msk.f32.gmra.mrb[10].mxu0 %vm121_vm1, %v90_v19  ;;  %4197 = vmatmul.mubr.msk.f32.gmra.mrb[10].mxu1 %vm121_vm1, %v90_v19  ;;  %v484_v52 = vld [vmem:[#allocation5 + $0x1f0] sm:$0xff]  ;;  %v6159_v60 = vpack.c.bf16 %v482_v50, %v478_v49  ;;  %v413_v62 = vld [vmem:[%s7076_s1] sm:$0xff] }
  0x51   :  { %4272 = vmatprep.subr.bf16.mxu0 %v6115_v20  ;;  %4304 = vmatprep.subr.bf16.mxu1 %v6117_v21  ;;  %v6161_v61 = vpack.c.bf16 %v484_v52, %v480_v51  ;;  %v95_v5 = vld [vmem:[%s7080_s5] sm:$0xf] }
  0x52   :  { %4274 = vmatpush1.bf16.msra.mxu0 %v6121_v24  ;;  %4306 = vmatpush1.bf16.msra.mxu1 %v6123_v27  ;;  %v6221_v10 = vrot.slane %v95_v5, %v99_v2  ;;  %v6233_v31 = vrot.slane %v95_v5, %v107_v15  ;;  %v6237_v32 = vrot.slane %v95_v5, %v111_v28  ;;  %v414_v51 = vld [vmem:[%s7077_s2] sm:$0xff] }
  0x53   :  { %255 = vmatprep.mubr.f32.mxu0 %v5881_v0  ;;  %368 = vmatprep.mubr.f32.mxu1 %v5881_v0 }
  0x54   :  { %4188 = vmatmul.mubr.msk.f32.gmra.mrb[12].mxu0 %vm121_vm1, %v91_v36  ;;  %4198 = vmatmul.mubr.msk.f32.gmra.mrb[12].mxu1 %vm121_vm1, %v91_v36 }
  0x55   :  { %4276 = vmatprep.subr.bf16.mxu0 %v6134_v37  ;;  %4308 = vmatprep.subr.bf16.mxu1 %v6136_v38 }
  0x56   :  { %4278 = vmatpush1.bf16.msra.mxu0 %v6140_v43  ;;  %4310 = vmatpush1.bf16.msra.mxu1 %v6142_v46 }
  0x57   :  { %261 = vmatprep.mubr.f32.mxu0 %v5881_v0  ;;  %374 = vmatprep.mubr.f32.mxu1 %v5881_v0 }
  0x58   :  { %4189 = vmatmul.mubr.msk.f32.gmra.mrb[14].mxu0 %vm121_vm1, %v92_v55  ;;  %4199 = vmatmul.mubr.msk.f32.gmra.mrb[14].mxu1 %vm121_vm1, %v92_v55 }
  0x59   :  { %4280 = vmatprep.subr.bf16.mxu0 %v6153_v56  ;;  %4312 = vmatprep.subr.bf16.mxu1 %v6155_v59 }
  0x5a   :  { %4282 = vmatpush1.bf16.msra.mxu0 %v6159_v60  ;;  %4314 = vmatpush1.bf16.msra.mxu1 %v6161_v61 }
  0x5b   :  { %550 = vmatprep.mubr.f32.mxu0 %v5881_v0  ;;  %621 = vmatprep.mubr.f32.mxu1 %v5881_v0 }
  0x5c   :  { %4316 = vmatprep.subr.bf16.mxu0 %v6020_v9  ;;  %4348 = vmatprep.subr.bf16.mxu1 %v6024_v13 }
  0x5d   :  { %551 = vmatmul.mubr.f32.vlgmr.msra.gmra.mrb[0].mxu0 %v413_v62  ;;  %622 = vmatmul.mubr.f32.vlgmr.msra.gmra.mrb[0].mxu1 %v413_v62 }
  0x5e   :  { %4318 = vmatpush1.bf16.msra.mxu0 %v6026_v14  ;;  %4350 = vmatpush1.bf16.msra.mxu1 %v6030_v17 }
  0x5f   :  { %4320 = vmatprep.subr.bf16.mxu0 %v6039_v25  ;;  %4352 = vmatprep.subr.bf16.mxu1 %v6041_v26 }
  0x60   :  { %788 = vmatprep.mubr.f32.mxu0 %v5881_v0  ;;  %859 = vmatprep.mubr.f32.mxu1 %v5881_v0 }
  0x62   :  { %4322 = vmatpush1.bf16.msra.mxu0 %v6045_v29  ;;  %4354 = vmatpush1.bf16.msra.mxu1 %v6047_v30 }
  0x63   :  { %4324 = vmatprep.subr.bf16.mxu0 %v6058_v40  ;;  %4356 = vmatprep.subr.bf16.mxu1 %v6060_v41 }
  0x66   :  { %4326 = vmatpush1.bf16.msra.mxu0 %v6064_v44  ;;  %4358 = vmatpush1.bf16.msra.mxu1 %v6066_v45 }
  0x67   :  { %4328 = vmatprep.subr.bf16.mxu0 %v6077_v53  ;;  %4360 = vmatprep.subr.bf16.mxu1 %v6079_v54 }
  0x6a   :  { %4330 = vmatpush1.bf16.msra.mxu0 %v6083_v57  ;;  %4362 = vmatpush1.bf16.msra.mxu1 %v6085_v58 }
  0x6b   :  { %4332 = vmatprep.subr.bf16.mxu0 %v6096_v3  ;;  %4364 = vmatprep.subr.bf16.mxu1 %v6098_v4 }
  0x6e   :  { %4334 = vmatpush1.bf16.msra.mxu0 %v6102_v7  ;;  %4366 = vmatpush1.bf16.msra.mxu1 %v6104_v8 }
  0x6f   :  { %4336 = vmatprep.subr.bf16.mxu0 %v6115_v20  ;;  %4368 = vmatprep.subr.bf16.mxu1 %v6117_v21 }
  0x72   :  { %4338 = vmatpush1.bf16.msra.mxu0 %v6121_v24  ;;  %4370 = vmatpush1.bf16.msra.mxu1 %v6123_v27 }
  0x73   :  { %4340 = vmatprep.subr.bf16.mxu0 %v6134_v37  ;;  %4372 = vmatprep.subr.bf16.mxu1 %v6136_v38 }
  0x76   :  { %4342 = vmatpush1.bf16.msra.mxu0 %v6140_v43  ;;  %4374 = vmatpush1.bf16.msra.mxu1 %v6142_v46 }
  0x77   :  { %4344 = vmatprep.subr.bf16.mxu0 %v6153_v56  ;;  %4376 = vmatprep.subr.bf16.mxu1 %v6155_v59 }
  0x7a   :  { %4346 = vmatpush1.bf16.msra.mxu0 %v6159_v60  ;;  %4378 = vmatpush1.bf16.msra.mxu1 %v6161_v61 }
  0x7b   :  { %4380 = vmatprep.subr.bf16.mxu0 %v6020_v9  ;;  %4412 = vmatprep.subr.bf16.mxu1 %v6024_v13  ;;  %v6225_v9 = vrot.slane %v95_v5, %v103_v6 }
 0x130   :  { %v552_v13 = vpop.f32.mrb[0].mxu0  ;;  %v623_v11 = vpop.f32.mrb[0].mxu1 }
 0x131   :  { %v5339_v12 = vadd.f32 %v552_v13, %v6221_v10  ;;  %v554_v16 = vpop.f32.mrb[1].mxu0  ;;  %v625_v18 = vpop.f32.mrb[1].mxu1  ;;  %v5355_v33 = vadd.f32 %v623_v11, %v6233_v31 }
 0x132   :  { %v5340_v19 = vadd.f32 %v554_v16, %v6225_v9  ;;  %v5356_v34 = vadd.f32 %v625_v18, %v6237_v32 }
 0x133   :  { %v4200_v22 = vmul.f32 -1.442695, %v5339_v12  ;;  %v4202_v35 = vmul.f32 -1.442695, %v5355_v33 }
 0x134   :  { %v4201_v23 = vmul.f32 -1.442695, %v5340_v19 }
 0x135   :  { %5480 = vpow2.f32 %v4200_v22 }
 0x136   :  { %5482 = vpow2.f32 %v4201_v23 }
 0x137   :  { %5484 = vtanh.f32 %v5356_v34 }
 0x138   :  { %5486 = vpow2.f32 %v4202_v35 }
 0x13f   :  { %v5481_v36 = vpop.eup %5480 }
 0x140   :  { %v637_v39 = vadd.f32 1.0, %v5481_v36  ;;  %v5483_v42 = vpop.eup %5482 }
 0x141   :  { %v638_v47 = vadd.f32 1.0, %v5483_v42  ;;  %v5485_v48 = vpop.eup %5484 }
 0x142   :  { %5488 = vrcp.f32 %v637_v39  ;;  %v5487_v49 = vpop.eup %5486 }
 0x143   :  { %5490 = vrcp.f32 %v638_v47  ;;  %v639_v62 = vadd.f32 1.0, %v5487_v49 }
 0x145   :  { %5492 = vrcp.f32 %v639_v62 }
 0x14c   :  { %v5489_v50 = vpop.eup %5488 }
 0x14d   :  { %v648_v52 = vmul.f32 %v5489_v50, %v5485_v48  ;;  %v5491_v55 = vpop.eup %5490 }
 0x14e   :  { %v647_v63 = vmul.f32 %v5491_v55, %v414_v51 }
 0x14f   :  { %v5493_v13 = vpop.eup %5492 }
 0x150   :  { %v6244_v5 = vadd.f32 %v648_v52, %v647_v63 }
 0x152   :  { %5494 = vtanh.f32 %v6244_v5 }
 0x15c   :  { %v5495_v11 = vpop.eup %5494 }
 0x15d   :  { %v6247_v12 = vmul.f32 %v5495_v11, %v5493_v13  ;;  %v1139_v13 = vld [vmem:[#allocation5 + $0x8] sm:$0xff] }
 0x15e   :  { %v1143_v11 = vld [vmem:[#allocation5 + $0x28] sm:$0xff] }
 0x15f   :  { %789 = vmatmul.mubr.f32.vlgmr.msra.gmra.mrb[2].mxu0 %v6247_v12  ;;  %860 = vmatmul.mubr.f32.vlgmr.msra.gmra.mrb[2].mxu1 %v6247_v12 }
 0x160   :  { %4382 = vmatpush1.bf16.msra.mxu0 %v6026_v14  ;;  %4414 = vmatpush1.bf16.msra.mxu1 %v6030_v17 }
 0x161   :  { %4384 = vmatprep.subr.bf16.mxu0 %v6039_v25  ;;  %4416 = vmatprep.subr.bf16.mxu1 %v6041_v26 }
 0x162   :  { %1027 = vmatprep.mubr.f32.mxu0 %v5881_v0  ;;  %1098 = vmatprep.mubr.f32.mxu1 %v5881_v0 }
 0x164   :  { %4386 = vmatpush1.bf16.msra.mxu0 %v6045_v29  ;;  %4418 = vmatpush1.bf16.msra.mxu1 %v6047_v30 }
 0x165   :  { %4388 = vmatprep.subr.bf16.mxu0 %v6058_v40  ;;  %4420 = vmatprep.subr.bf16.mxu1 %v6060_v41 }
 0x168   :  { %4390 = vmatpush1.bf16.msra.mxu0 %v6064_v44  ;;  %4422 = vmatpush1.bf16.msra.mxu1 %v6066_v45 }
 0x169   :  { %4392 = vmatprep.subr.bf16.mxu0 %v6077_v53  ;;  %4424 = vmatprep.subr.bf16.mxu1 %v6079_v54 }
 0x16c   :  { %4394 = vmatpush1.bf16.msra.mxu0 %v6083_v57  ;;  %4426 = vmatpush1.bf16.msra.mxu1 %v6085_v58 }
 0x16d   :  { %4396 = vmatprep.subr.bf16.mxu0 %v6096_v3  ;;  %4428 = vmatprep.subr.bf16.mxu1 %v6098_v4 }
 0x170   :  { %4398 = vmatpush1.bf16.msra.mxu0 %v6102_v7  ;;  %4430 = vmatpush1.bf16.msra.mxu1 %v6104_v8 }
 0x171   :  { %4400 = vmatprep.subr.bf16.mxu0 %v6115_v20  ;;  %4432 = vmatprep.subr.bf16.mxu1 %v6117_v21 }
 0x174   :  { %4402 = vmatpush1.bf16.msra.mxu0 %v6121_v24  ;;  %4434 = vmatpush1.bf16.msra.mxu1 %v6123_v27 }
 0x175   :  { %4404 = vmatprep.subr.bf16.mxu0 %v6134_v37  ;;  %4436 = vmatprep.subr.bf16.mxu1 %v6136_v38 }
 0x178   :  { %4406 = vmatpush1.bf16.msra.mxu0 %v6140_v43  ;;  %4438 = vmatpush1.bf16.msra.mxu1 %v6142_v46 }
 0x179   :  { %4408 = vmatprep.subr.bf16.mxu0 %v6153_v56  ;;  %4440 = vmatprep.subr.bf16.mxu1 %v6155_v59 }
 0x17c   :  { %4410 = vmatpush1.bf16.msra.mxu0 %v6159_v60  ;;  %4442 = vmatpush1.bf16.msra.mxu1 %v6161_v61 }
 0x232   :  { %v790_v14 = vpop.f32.mrb[2].mxu0  ;;  %v861_v17 = vpop.f32.mrb[2].mxu1 }
 0x233   :  { %v5341_v25 = vadd.f32 %v790_v14, %v6221_v10  ;;  %v792_v26 = vpop.f32.mrb[3].mxu0  ;;  %v863_v29 = vpop.f32.mrb[3].mxu1  ;;  %v5357_v19 = vadd.f32 %v861_v17, %v6233_v31  ;;  %v6297_v14 = vpack.c.bf16 %v1143_v11, %v1139_v13  ;;  %v1145_v17 = vld [vmem:[#allocation5 + $0x38] sm:$0xff] }
 0x234   :  { %v5342_v30 = vadd.f32 %v792_v26, %v6225_v9  ;;  %v5358_v22 = vadd.f32 %v863_v29, %v6237_v32  ;;  %v1142_v26 = vld [vmem:[#allocation5 + $0x20] sm:$0xff]  ;;  %v1396_v13 = vld [vmem:[#allocation5 + $0x98] sm:$0xff] }
 0x235   :  { %v4203_v16 = vmul.f32 -1.442695, %v5341_v25  ;;  %v4205_v23 = vmul.f32 -1.442695, %v5357_v19  ;;  %v1138_v25 = vld [vmem:[#allocation5] sm:$0xff]  ;;  %4444 = vmatprep.subr.bf16.mxu0 %v6297_v14 }
 0x236   :  { %v4204_v18 = vmul.f32 -1.442695, %v5342_v30  ;;  %v6301_v30 = vpack.c.bf16 %v1142_v26, %v1138_v25  ;;  %v1397_v25 = vld [vmem:[#allocation5 + $0xa0] sm:$0xff] }
 0x237   :  { %5496 = vpow2.f32 %v4203_v16  ;;  %v1140_v16 = vld [vmem:[#allocation5 + $0x10] sm:$0xff] }
 0x238   :  { %5498 = vpow2.f32 %v4204_v18  ;;  %v1144_v18 = vld [vmem:[#allocation5 + $0x30] sm:$0xff] }
 0x239   :  { %5500 = vtanh.f32 %v5358_v22  ;;  %v6304_v19 = vpack.c.bf16 %v1144_v18, %v1140_v16  ;;  %v1147_v22 = vld [vmem:[#allocation5 + $0x48] sm:$0xff]  ;;  %v1395_v18 = vld [vmem:[#allocation5 + $0x90] sm:$0xff] }
 0x23a   :  { %5502 = vpow2.f32 %v4205_v23  ;;  %v1151_v23 = vld [vmem:[#allocation5 + $0x68] sm:$0xff] }
 0x241   :  { %v5497_v33 = vpop.eup %5496 }
 0x242   :  { %v875_v34 = vadd.f32 1.0, %v5497_v33  ;;  %v5499_v35 = vpop.eup %5498  ;;  %v1149_v33 = vld [vmem:[#allocation5 + $0x58] sm:$0xff] }
 0x243   :  { %v876_v36 = vadd.f32 1.0, %v5499_v35  ;;  %v5501_v39 = vpop.eup %5500  ;;  %v1153_v35 = vld [vmem:[#allocation5 + $0x78] sm:$0xff] }
 0x244   :  { %5504 = vrcp.f32 %v875_v34  ;;  %v5503_v42 = vpop.eup %5502  ;;  %v6309_v34 = vpack.c.bf16 %v1151_v23, %v1147_v22  ;;  %v1399_v22 = vld [vmem:[#allocation5 + $0xb0] sm:$0xff] }
 0x245   :  { %5506 = vrcp.f32 %v876_v36  ;;  %v877_v50 = vadd.f32 1.0, %v5503_v42  ;;  %v1146_v36 = vld [vmem:[#allocation5 + $0x40] sm:$0xff]  ;;  %v6311_v42 = vpack.c.bf16 %v1153_v35, %v1149_v33  ;;  %v6374_v23 = vpack.c.bf16 %v1399_v22, %v1395_v18  ;;  %v1402_v33 = vld [vmem:[#allocation5 + $0xc8] sm:$0xff] }
 0x246   :  { %v1406_v35 = vld [vmem:[#allocation5 + $0xe8] sm:$0xff] }
 0x247   :  { %5508 = vrcp.f32 %v877_v50  ;;  %v1430_v22 = vld [vmem:[#allocation5 + $0x1a8] sm:$0xff] }
 0x24e   :  { %v5505_v47 = vpop.eup %5504 }
 0x24f   :  { %v886_v48 = vmul.f32 %v5505_v47, %v5501_v39  ;;  %v5507_v49 = vpop.eup %5506  ;;  %v1150_v39 = vld [vmem:[#allocation5 + $0x60] sm:$0xff] }
 0x250   :  { %v885_v51 = vmul.f32 %v5507_v49, %v6244_v5  ;;  %v1141_v5 = vld [vmem:[#allocation5 + $0x18] sm:$0xff]  ;;  %v6313_v47 = vpack.c.bf16 %v1150_v39, %v1146_v36  ;;  %v1152_v49 = vld [vmem:[#allocation5 + $0x70] sm:$0xff]  ;;  %v6379_v39 = vpack.c.bf16 %v1406_v35, %v1402_v33 }
 0x251   :  { %v5509_v55 = vpop.eup %5508  ;;  %v6299_v29 = vpack.c.bf16 %v1145_v17, %v1141_v5  ;;  %v1400_v5 = vld [vmem:[#allocation5 + $0xb8] sm:$0xff]  ;;  %v1393_v17 = vld [vmem:[#allocation5 + $0x80] sm:$0xff] }
 0x252   :  { %v6288_v52 = vadd.f32 %v886_v48, %v885_v51  ;;  %v1148_v48 = vld [vmem:[#allocation5 + $0x50] sm:$0xff]  ;;  %v6369_v26 = vpack.c.bf16 %v1400_v5, %v1396_v13  ;;  %v6371_v16 = vpack.c.bf16 %v1397_v25, %v1393_v17  ;;  %v1404_v36 = vld [vmem:[#allocation5 + $0xd8] sm:$0xff]  ;;  %v1426_v25 = vld [vmem:[#allocation5 + $0x188] sm:$0xff] }
 0x253   :  { %4476 = vmatprep.subr.bf16.mxu1 %v6299_v29  ;;  %v6316_v50 = vpack.c.bf16 %v1152_v49, %v1148_v48  ;;  %v1408_v48 = vld [vmem:[#allocation5 + $0xf8] sm:$0xff]  ;;  %v1401_v49 = vld [vmem:[#allocation5 + $0xc0] sm:$0xff]  ;;  %v1419_v5 = vld [vmem:[#allocation5 + $0x150] sm:$0xff] }
 0x254   :  { %5510 = vtanh.f32 %v6288_v52  ;;  %v1423_v17 = vld [vmem:[#allocation5 + $0x170] sm:$0xff]  ;;  %v1428_v33 = vld [vmem:[#allocation5 + $0x198] sm:$0xff] }
 0x255   :  { %v6410_v18 = vpack.c.bf16 %v1423_v17, %v1419_v5  ;;  %v1432_v35 = vld [vmem:[#allocation5 + $0x1b8] sm:$0xff] }
 0x25e   :  { %v5511_v62 = vpop.eup %5510 }
 0x25f   :  { %v6291_v63 = vmul.f32 %v5511_v62, %v5509_v55  ;;  %v1398_v62 = vld [vmem:[#allocation5 + $0xa8] sm:$0xff] }
 0x261   :  { %1028 = vmatmul.mubr.f32.vlgmr.msra.gmra.mrb[4].mxu0 %v6291_v63  ;;  %1099 = vmatmul.mubr.f32.vlgmr.msra.gmra.mrb[4].mxu1 %v6291_v63 }
 0x262   :  { %1266 = vmatprep.mubr.f32.mxu0 %v5881_v0  ;;  %1337 = vmatprep.mubr.f32.mxu1 %v5881_v0 }
 0x263   :  { %4446 = vmatpush1.bf16.msra.mxu0 %v6301_v30  ;;  %4478 = vmatpush1.bf16.msra.mxu1 %v6304_v19 }
 0x264   :  { %4448 = vmatprep.subr.bf16.mxu0 %v6309_v34  ;;  %4480 = vmatprep.subr.bf16.mxu1 %v6311_v42 }
 0x267   :  { %4450 = vmatpush1.bf16.msra.mxu0 %v6313_v47  ;;  %4482 = vmatpush1.bf16.msra.mxu1 %v6316_v50 }
 0x268   :  { %4452 = vmatprep.subr.bf16.mxu0 %v6058_v40  ;;  %4484 = vmatprep.subr.bf16.mxu1 %v6060_v41 }
 0x26b   :  { %4454 = vmatpush1.bf16.msra.mxu0 %v6064_v44  ;;  %4486 = vmatpush1.bf16.msra.mxu1 %v6066_v45 }
 0x26c   :  { %4456 = vmatprep.subr.bf16.mxu0 %v6077_v53  ;;  %4488 = vmatprep.subr.bf16.mxu1 %v6079_v54 }
 0x26f   :  { %4458 = vmatpush1.bf16.msra.mxu0 %v6083_v57  ;;  %4490 = vmatpush1.bf16.msra.mxu1 %v6085_v58 }
 0x270   :  { %4460 = vmatprep.subr.bf16.mxu0 %v6096_v3  ;;  %4492 = vmatprep.subr.bf16.mxu1 %v6098_v4 }
 0x273   :  { %4462 = vmatpush1.bf16.msra.mxu0 %v6102_v7  ;;  %4494 = vmatpush1.bf16.msra.mxu1 %v6104_v8 }
 0x274   :  { %4464 = vmatprep.subr.bf16.mxu0 %v6115_v20  ;;  %4496 = vmatprep.subr.bf16.mxu1 %v6117_v21 }
 0x277   :  { %4466 = vmatpush1.bf16.msra.mxu0 %v6121_v24  ;;  %4498 = vmatpush1.bf16.msra.mxu1 %v6123_v27 }
 0x278   :  { %4468 = vmatprep.subr.bf16.mxu0 %v6134_v37  ;;  %4500 = vmatprep.subr.bf16.mxu1 %v6136_v38 }
 0x27b   :  { %4470 = vmatpush1.bf16.msra.mxu0 %v6140_v43  ;;  %4502 = vmatpush1.bf16.msra.mxu1 %v6142_v46 }
 0x27c   :  { %4472 = vmatprep.subr.bf16.mxu0 %v6153_v56  ;;  %4504 = vmatprep.subr.bf16.mxu1 %v6155_v59 }
 0x27f   :  { %4474 = vmatpush1.bf16.msra.mxu0 %v6159_v60  ;;  %4506 = vmatpush1.bf16.msra.mxu1 %v6161_v61 }
 0x280   :  { %4508 = vmatprep.subr.bf16.mxu0 %v6297_v14  ;;  %4540 = vmatprep.subr.bf16.mxu1 %v6299_v29 }
 0x334   :  { %v1029_v40 = vpop.f32.mrb[4].mxu0  ;;  %v1100_v41 = vpop.f32.mrb[4].mxu1 }
 0x335   :  { %v5343_v44 = vadd.f32 %v1029_v40, %v6221_v10  ;;  %v1031_v45 = vpop.f32.mrb[5].mxu0  ;;  %v1102_v53 = vpop.f32.mrb[5].mxu1  ;;  %v5359_v3 = vadd.f32 %v1100_v41, %v6233_v31  ;;  %v1405_v40 = vld [vmem:[#allocation5 + $0xe0] sm:$0xff]  ;;  %v6381_v41 = vpack.c.bf16 %v1408_v48, %v1404_v36  ;;  %v6414_v36 = vpack.c.bf16 %v1430_v22, %v1426_v25 }
 0x336   :  { %v5344_v54 = vadd.f32 %v1031_v45, %v6225_v9  ;;  %v5360_v4 = vadd.f32 %v1102_v53, %v6237_v32  ;;  %v1403_v45 = vld [vmem:[#allocation5 + $0xd0] sm:$0xff]  ;;  %v6416_v48 = vpack.c.bf16 %v1432_v35, %v1428_v33 }
 0x337   :  { %v4206_v57 = vmul.f32 -1.442695, %v5343_v44  ;;  %v4208_v7 = vmul.f32 -1.442695, %v5359_v3  ;;  %v6383_v44 = vpack.c.bf16 %v1405_v40, %v1401_v49  ;;  %v1407_v53 = vld [vmem:[#allocation5 + $0xf0] sm:$0xff]  ;;  %v1412_v3 = vld [vmem:[#allocation5 + $0x118] sm:$0xff] }
 0x338   :  { %v4207_v58 = vmul.f32 -1.442695, %v5344_v54  ;;  %v6386_v54 = vpack.c.bf16 %v1407_v53, %v1403_v45  ;;  %v1425_v49 = vld [vmem:[#allocation5 + $0x180] sm:$0xff]  ;;  %v1427_v45 = vld [vmem:[#allocation5 + $0x190] sm:$0xff] }
 0x339   :  { %5512 = vpow2.f32 %v4206_v57  ;;  %v1410_v57 = vld [vmem:[#allocation5 + $0x108] sm:$0xff]  ;;  %v1429_v40 = vld [vmem:[#allocation5 + $0x1a0] sm:$0xff] }
 0x33a   :  { %5514 = vpow2.f32 %v4207_v58  ;;  %v1414_v58 = vld [vmem:[#allocation5 + $0x128] sm:$0xff]  ;;  %v6419_v53 = vpack.c.bf16 %v1429_v40, %v1425_v49 }
 0x33b   :  { %5516 = vtanh.f32 %v5360_v4  ;;  %v6391_v4 = vpack.c.bf16 %v1414_v58, %v1410_v57  ;;  %v1431_v57 = vld [vmem:[#allocation5 + $0x1b0] sm:$0xff]  ;;  %v1434_v58 = vld [vmem:[#allocation5 + $0x1c8] sm:$0xff] }
 0x33c   :  { %5518 = vpow2.f32 %v4208_v7  ;;  %v1416_v7 = vld [vmem:[#allocation5 + $0x138] sm:$0xff] }
 0x343   :  { %v5513_v8 = vpop.eup %5512 }
 0x344   :  { %v1114_v20 = vadd.f32 1.0, %v5513_v8  ;;  %v5515_v21 = vpop.eup %5514  ;;  %v1409_v8 = vld [vmem:[#allocation5 + $0x100] sm:$0xff] }
 0x345   :  { %v1115_v24 = vadd.f32 1.0, %v5515_v21  ;;  %v5517_v27 = vpop.eup %5516  ;;  %v6393_v21 = vpack.c.bf16 %v1416_v7, %v1412_v3  ;;  %v1438_v3 = vld [vmem:[#allocation5 + $0x1e8] sm:$0xff]  ;;  %v6423_v7 = vpack.c.bf16 %v1431_v57, %v1427_v45 }
 0x346   :  { %5520 = vrcp.f32 %v1114_v20  ;;  %v5519_v37 = vpop.eup %5518  ;;  %v1413_v20 = vld [vmem:[#allocation5 + $0x120] sm:$0xff] }
 0x347   :  { %5522 = vrcp.f32 %v1115_v24  ;;  %v1116_v56 = vadd.f32 1.0, %v5519_v37  ;;  %v6395_v24 = vpack.c.bf16 %v1413_v20, %v1409_v8  ;;  %v1415_v37 = vld [vmem:[#allocation5 + $0x130] sm:$0xff]  ;;  %v6425_v8 = vpack.c.bf16 %v1438_v3, %v1434_v58  ;;  %v1436_v20 = vld [vmem:[#allocation5 + $0x1d8] sm:$0xff] }
 0x349   :  { %5524 = vrcp.f32 %v1116_v56  ;;  %v1420_v56 = vld [vmem:[#allocation5 + $0x158] sm:$0xff] }
 0x350   :  { %v5521_v38 = vpop.eup %5520 }
 0x351   :  { %v1125_v43 = vmul.f32 %v5521_v38, %v5517_v27  ;;  %v5523_v46 = vpop.eup %5522  ;;  %v1411_v27 = vld [vmem:[#allocation5 + $0x110] sm:$0xff] }
 0x352   :  { %v1124_v59 = vmul.f32 %v5523_v46, %v6288_v52  ;;  %v1394_v52 = vld [vmem:[#allocation5 + $0x88] sm:$0xff]  ;;  %v6398_v38 = vpack.c.bf16 %v1415_v37, %v1411_v27  ;;  %v1440_v27 = vld [vmem:[#allocation5 + $0x1f8] sm:$0xff]  ;;  %v1433_v37 = vld [vmem:[#allocation5 + $0x1c0] sm:$0xff] }
 0x353   :  { %v5525_v61 = vpop.eup %5524  ;;  %v6367_v11 = vpack.c.bf16 %v1398_v62, %v1394_v52  ;;  %v1422_v46 = vld [vmem:[#allocation5 + $0x168] sm:$0xff]  ;;  %v1421_v52 = vld [vmem:[#allocation5 + $0x160] sm:$0xff] }
 0x354   :  { %v6352_v60 = vadd.f32 %v1125_v43, %v1124_v59  ;;  %v1418_v43 = vld [vmem:[#allocation5 + $0x148] sm:$0xff] }
 0x355   :  { %v6403_v59 = vpack.c.bf16 %v1422_v46, %v1418_v43  ;;  %v6427_v43 = vpack.c.bf16 %v1440_v27, %v1436_v20  ;;  %v1437_v46 = vld [vmem:[#allocation5 + $0x1e0] sm:$0xff] }
 0x356   :  { %5526 = vtanh.f32 %v6352_v60 }
 0x360   :  { %v5527_v51 = vpop.eup %5526 }
 0x361   :  { %v6355_v55 = vmul.f32 %v5527_v51, %v5525_v61  ;;  %v1424_v61 = vld [vmem:[#allocation5 + $0x178] sm:$0xff]  ;;  %v1417_v51 = vld [vmem:[#allocation5 + $0x140] sm:$0xff] }
 0x362   :  { %v6405_v62 = vpack.c.bf16 %v1424_v61, %v1420_v56  ;;  %v6407_v13 = vpack.c.bf16 %v1421_v52, %v1417_v51  ;;  %v1435_v56 = vld [vmem:[#allocation5 + $0x1d0] sm:$0xff]  ;;  %v6430_v51 = vpack.c.bf16 %v1437_v46, %v1433_v37 }
 0x363   :  { %1267 = vmatmul.mubr.f32.vlgmr.msra.gmra.mrb[6].mxu0 %v6355_v55  ;;  %1338 = vmatmul.mubr.f32.vlgmr.msra.gmra.mrb[6].mxu1 %v6355_v55  ;;  %v1439_v61 = vld [vmem:[#allocation5 + $0x1f0] sm:$0xff] }
 0x364   :  { %4510 = vmatpush1.bf16.msra.mxu0 %v6301_v30  ;;  %4542 = vmatpush1.bf16.msra.mxu1 %v6304_v19  ;;  %v6434_v52 = vpack.c.bf16 %v1439_v61, %v1435_v56 }
 0x365   :  { %4512 = vmatprep.subr.bf16.mxu0 %v6309_v34  ;;  %4544 = vmatprep.subr.bf16.mxu1 %v6311_v42 }
 0x366   :  { %1505 = vmatprep.mubr.f32.mxu0 %v5881_v0  ;;  %1576 = vmatprep.mubr.f32.mxu1 %v5881_v0 }
 0x368   :  { %4514 = vmatpush1.bf16.msra.mxu0 %v6313_v47  ;;  %4546 = vmatpush1.bf16.msra.mxu1 %v6316_v50 }
 0x369   :  { %4516 = vmatprep.subr.bf16.mxu0 %v6367_v11  ;;  %4548 = vmatprep.subr.bf16.mxu1 %v6369_v26 }
 0x36c   :  { %4518 = vmatpush1.bf16.msra.mxu0 %v6371_v16  ;;  %4550 = vmatpush1.bf16.msra.mxu1 %v6374_v23 }
 0x36d   :  { %4520 = vmatprep.subr.bf16.mxu0 %v6379_v39  ;;  %4552 = vmatprep.subr.bf16.mxu1 %v6381_v41 }
 0x370   :  { %4522 = vmatpush1.bf16.msra.mxu0 %v6383_v44  ;;  %4554 = vmatpush1.bf16.msra.mxu1 %v6386_v54 }
 0x371   :  { %4524 = vmatprep.subr.bf16.mxu0 %v6391_v4  ;;  %4556 = vmatprep.subr.bf16.mxu1 %v6393_v21 }
 0x374   :  { %4526 = vmatpush1.bf16.msra.mxu0 %v6395_v24  ;;  %4558 = vmatpush1.bf16.msra.mxu1 %v6398_v38 }
 0x375   :  { %4528 = vmatprep.subr.bf16.mxu0 %v6403_v59  ;;  %4560 = vmatprep.subr.bf16.mxu1 %v6405_v62 }
 0x378   :  { %4530 = vmatpush1.bf16.msra.mxu0 %v6407_v13  ;;  %4562 = vmatpush1.bf16.msra.mxu1 %v6410_v18 }
 0x379   :  { %4532 = vmatprep.subr.bf16.mxu0 %v6414_v36  ;;  %4564 = vmatprep.subr.bf16.mxu1 %v6416_v48 }
 0x37c   :  { %4534 = vmatpush1.bf16.msra.mxu0 %v6419_v53  ;;  %4566 = vmatpush1.bf16.msra.mxu1 %v6423_v7 }
 0x37d   :  { %4536 = vmatprep.subr.bf16.mxu0 %v6425_v8  ;;  %4568 = vmatprep.subr.bf16.mxu1 %v6427_v43 }
 0x380   :  { %4538 = vmatpush1.bf16.msra.mxu0 %v6430_v51  ;;  %4570 = vmatpush1.bf16.msra.mxu1 %v6434_v52 }
 0x381   :  { %4572 = vmatprep.subr.bf16.mxu0 %v6297_v14  ;;  %4604 = vmatprep.subr.bf16.mxu1 %v6299_v29 }
 0x436   :  { %v1268_v5 = vpop.f32.mrb[6].mxu0  ;;  %v1339_v17 = vpop.f32.mrb[6].mxu1 }
 0x437   :  { %v5345_v25 = vadd.f32 %v1268_v5, %v6221_v10  ;;  %v1270_v22 = vpop.f32.mrb[7].mxu0  ;;  %v1341_v33 = vpop.f32.mrb[7].mxu1  ;;  %v5361_v45 = vadd.f32 %v1339_v17, %v6233_v31 }
 0x438   :  { %v5346_v35 = vadd.f32 %v1270_v22, %v6225_v9  ;;  %v5362_v57 = vadd.f32 %v1341_v33, %v6237_v32 }
 0x439   :  { %v4209_v49 = vmul.f32 -1.442695, %v5345_v25  ;;  %v4211_v58 = vmul.f32 -1.442695, %v5361_v45 }
 0x43a   :  { %v4210_v40 = vmul.f32 -1.442695, %v5346_v35 }
 0x43b   :  { %5528 = vpow2.f32 %v4209_v49 }
 0x43c   :  { %5530 = vpow2.f32 %v4210_v40 }
 0x43d   :  { %5532 = vtanh.f32 %v5362_v57 }
 0x43e   :  { %5534 = vpow2.f32 %v4211_v58 }
 0x445   :  { %v5529_v3 = vpop.eup %5528 }
 0x446   :  { %v1353_v20 = vadd.f32 1.0, %v5529_v3  ;;  %v5531_v27 = vpop.eup %5530 }
 0x447   :  { %v1354_v37 = vadd.f32 1.0, %v5531_v27  ;;  %v5533_v46 = vpop.eup %5532 }
 0x448   :  { %5536 = vrcp.f32 %v1353_v20  ;;  %v5535_v56 = vpop.eup %5534 }
 0x449   :  { %5538 = vrcp.f32 %v1354_v37  ;;  %v1355_v22 = vadd.f32 1.0, %v5535_v56 }
 0x44b   :  { %5540 = vrcp.f32 %v1355_v22 }
 0x452   :  { %v5537_v61 = vpop.eup %5536 }
 0x453   :  { %v1364_v5 = vmul.f32 %v5537_v61, %v5533_v46  ;;  %v5539_v25 = vpop.eup %5538 }
 0x454   :  { %v1363_v35 = vmul.f32 %v5539_v25, %v6352_v60 }
 0x455   :  { %v5541_v33 = vpop.eup %5540 }
 0x456   :  { %v6446_v17 = vadd.f32 %v1364_v5, %v1363_v35 }
 0x458   :  { %5542 = vtanh.f32 %v6446_v17 }
 0x462   :  { %v5543_v49 = vpop.eup %5542 }
 0x463   :  { %v6449_v40 = vmul.f32 %v5543_v49, %v5541_v33 }
 0x465   :  { %1506 = vmatmul.mubr.f32.vlgmr.msra.gmra.mrb[8].mxu0 %v6449_v40  ;;  %1577 = vmatmul.mubr.f32.vlgmr.msra.gmra.mrb[8].mxu1 %v6449_v40 }
 0x466   :  { %4574 = vmatpush1.bf16.msra.mxu0 %v6301_v30  ;;  %4606 = vmatpush1.bf16.msra.mxu1 %v6304_v19 }
 0x467   :  { %4576 = vmatprep.subr.bf16.mxu0 %v6309_v34  ;;  %4608 = vmatprep.subr.bf16.mxu1 %v6311_v42 }
 0x468   :  { %1744 = vmatprep.mubr.f32.mxu0 %v5881_v0  ;;  %1815 = vmatprep.mubr.f32.mxu1 %v5881_v0 }
 0x46a   :  { %4578 = vmatpush1.bf16.msra.mxu0 %v6313_v47  ;;  %4610 = vmatpush1.bf16.msra.mxu1 %v6316_v50 }
 0x46b   :  { %4580 = vmatprep.subr.bf16.mxu0 %v6367_v11  ;;  %4612 = vmatprep.subr.bf16.mxu1 %v6369_v26 }
 0x46e   :  { %4582 = vmatpush1.bf16.msra.mxu0 %v6371_v16  ;;  %4614 = vmatpush1.bf16.msra.mxu1 %v6374_v23 }
 0x46f   :  { %4584 = vmatprep.subr.bf16.mxu0 %v6379_v39  ;;  %4616 = vmatprep.subr.bf16.mxu1 %v6381_v41 }
 0x472   :  { %4586 = vmatpush1.bf16.msra.mxu0 %v6383_v44  ;;  %4618 = vmatpush1.bf16.msra.mxu1 %v6386_v54 }
 0x473   :  { %4588 = vmatprep.subr.bf16.mxu0 %v6391_v4  ;;  %4620 = vmatprep.subr.bf16.mxu1 %v6393_v21 }
 0x476   :  { %4590 = vmatpush1.bf16.msra.mxu0 %v6395_v24  ;;  %4622 = vmatpush1.bf16.msra.mxu1 %v6398_v38 }
 0x477   :  { %4592 = vmatprep.subr.bf16.mxu0 %v6403_v59  ;;  %4624 = vmatprep.subr.bf16.mxu1 %v6405_v62 }
 0x47a   :  { %4594 = vmatpush1.bf16.msra.mxu0 %v6407_v13  ;;  %4626 = vmatpush1.bf16.msra.mxu1 %v6410_v18 }
 0x47b   :  { %4596 = vmatprep.subr.bf16.mxu0 %v6414_v36  ;;  %4628 = vmatprep.subr.bf16.mxu1 %v6416_v48 }
 0x47e   :  { %4598 = vmatpush1.bf16.msra.mxu0 %v6419_v53  ;;  %4630 = vmatpush1.bf16.msra.mxu1 %v6423_v7 }
 0x47f   :  { %4600 = vmatprep.subr.bf16.mxu0 %v6425_v8  ;;  %4632 = vmatprep.subr.bf16.mxu1 %v6427_v43 }
 0x482   :  { %4602 = vmatpush1.bf16.msra.mxu0 %v6430_v51  ;;  %4634 = vmatpush1.bf16.msra.mxu1 %v6434_v52 }
 0x483   :  { %4636 = vmatprep.subr.bf16.mxu0 %v6297_v14  ;;  %4668 = vmatprep.subr.bf16.mxu1 %v6299_v29 }
 0x538   :  { %v1507_v60 = vpop.f32.mrb[8].mxu0  ;;  %v1578_v45 = vpop.f32.mrb[8].mxu1 }
 0x539   :  { %v5347_v57 = vadd.f32 %v1507_v60, %v6221_v10  ;;  %v1509_v58 = vpop.f32.mrb[9].mxu0  ;;  %v1580_v3 = vpop.f32.mrb[9].mxu1  ;;  %v5363_v46 = vadd.f32 %v1578_v45, %v6233_v31 }
 0x53a   :  { %v5348_v20 = vadd.f32 %v1509_v58, %v6225_v9  ;;  %v5364_v56 = vadd.f32 %v1580_v3, %v6237_v32 }
 0x53b   :  { %v4212_v27 = vmul.f32 -1.442695, %v5347_v57  ;;  %v4214_v61 = vmul.f32 -1.442695, %v5363_v46 }
 0x53c   :  { %v4213_v37 = vmul.f32 -1.442695, %v5348_v20 }
 0x53d   :  { %5544 = vpow2.f32 %v4212_v27 }
 0x53e   :  { %5546 = vpow2.f32 %v4213_v37 }
 0x53f   :  { %5548 = vtanh.f32 %v5364_v56 }
 0x540   :  { %5550 = vpow2.f32 %v4214_v61 }
 0x547   :  { %v5545_v14 = vpop.eup %5544 }
 0x548   :  { %v1592_v5 = vadd.f32 1.0, %v5545_v14  ;;  %v5547_v29 = vpop.eup %5546 }
 0x549   :  { %v1593_v25 = vadd.f32 1.0, %v5547_v29  ;;  %v5549_v22 = vpop.eup %5548 }
 0x54a   :  { %5552 = vrcp.f32 %v1592_v5  ;;  %v5551_v35 = vpop.eup %5550 }
 0x54b   :  { %5554 = vrcp.f32 %v1593_v25  ;;  %v1594_v57 = vadd.f32 1.0, %v5551_v35 }
 0x54d   :  { %5556 = vrcp.f32 %v1594_v57 }
 0x554   :  { %v5553_v33 = vpop.eup %5552 }
 0x555   :  { %v1603_v49 = vmul.f32 %v5553_v33, %v5549_v22  ;;  %v5555_v60 = vpop.eup %5554 }
 0x556   :  { %v1602_v58 = vmul.f32 %v5555_v60, %v6446_v17 }
 0x557   :  { %v5557_v3 = vpop.eup %5556 }
 0x558   :  { %v6492_v45 = vadd.f32 %v1603_v49, %v1602_v58 }
 0x55a   :  { %5558 = vtanh.f32 %v6492_v45 }
 0x564   :  { %v5559_v20 = vpop.eup %5558 }
 0x565   :  { %v6495_v27 = vmul.f32 %v5559_v20, %v5557_v3 }
 0x567   :  { %1745 = vmatmul.mubr.f32.vlgmr.msra.gmra.mrb[10].mxu0 %v6495_v27  ;;  %1816 = vmatmul.mubr.f32.vlgmr.msra.gmra.mrb[10].mxu1 %v6495_v27 }
 0x568   :  { %4638 = vmatpush1.bf16.msra.mxu0 %v6301_v30  ;;  %4670 = vmatpush1.bf16.msra.mxu1 %v6304_v19 }
 0x569   :  { %4640 = vmatprep.subr.bf16.mxu0 %v6309_v34  ;;  %4672 = vmatprep.subr.bf16.mxu1 %v6311_v42 }
 0x56a   :  { %1983 = vmatprep.mubr.f32.mxu0 %v5881_v0  ;;  %2054 = vmatprep.mubr.f32.mxu1 %v5881_v0 }
 0x56c   :  { %4642 = vmatpush1.bf16.msra.mxu0 %v6313_v47  ;;  %4674 = vmatpush1.bf16.msra.mxu1 %v6316_v50 }
 0x56d   :  { %4644 = vmatprep.subr.bf16.mxu0 %v6367_v11  ;;  %4676 = vmatprep.subr.bf16.mxu1 %v6369_v26 }
 0x570   :  { %4646 = vmatpush1.bf16.msra.mxu0 %v6371_v16  ;;  %4678 = vmatpush1.bf16.msra.mxu1 %v6374_v23 }
 0x571   :  { %4648 = vmatprep.subr.bf16.mxu0 %v6379_v39  ;;  %4680 = vmatprep.subr.bf16.mxu1 %v6381_v41 }
 0x574   :  { %4650 = vmatpush1.bf16.msra.mxu0 %v6383_v44  ;;  %4682 = vmatpush1.bf16.msra.mxu1 %v6386_v54 }
 0x575   :  { %4652 = vmatprep.subr.bf16.mxu0 %v6391_v4  ;;  %4684 = vmatprep.subr.bf16.mxu1 %v6393_v21 }
 0x578   :  { %4654 = vmatpush1.bf16.msra.mxu0 %v6395_v24  ;;  %4686 = vmatpush1.bf16.msra.mxu1 %v6398_v38 }
 0x579   :  { %4656 = vmatprep.subr.bf16.mxu0 %v6403_v59  ;;  %4688 = vmatprep.subr.bf16.mxu1 %v6405_v62 }
 0x57c   :  { %4658 = vmatpush1.bf16.msra.mxu0 %v6407_v13  ;;  %4690 = vmatpush1.bf16.msra.mxu1 %v6410_v18 }
 0x57d   :  { %4660 = vmatprep.subr.bf16.mxu0 %v6414_v36  ;;  %4692 = vmatprep.subr.bf16.mxu1 %v6416_v48 }
 0x580   :  { %4662 = vmatpush1.bf16.msra.mxu0 %v6419_v53  ;;  %4694 = vmatpush1.bf16.msra.mxu1 %v6423_v7 }
 0x581   :  { %4664 = vmatprep.subr.bf16.mxu0 %v6425_v8  ;;  %4696 = vmatprep.subr.bf16.mxu1 %v6427_v43 }
 0x584   :  { %4666 = vmatpush1.bf16.msra.mxu0 %v6430_v51  ;;  %4698 = vmatpush1.bf16.msra.mxu1 %v6434_v52 }
 0x63a   :  { %v1746_v30 = vpop.f32.mrb[10].mxu0  ;;  %v1817_v19 = vpop.f32.mrb[10].mxu1 }
 0x63b   :  { %v5349_v34 = vadd.f32 %v1746_v30, %v6221_v10  ;;  %v1748_v42 = vpop.f32.mrb[11].mxu0  ;;  %v1819_v47 = vpop.f32.mrb[11].mxu1  ;;  %v5365_v46 = vadd.f32 %v1817_v19, %v6233_v31 }
 0x63c   :  { %v5350_v50 = vadd.f32 %v1748_v42, %v6225_v9  ;;  %v5366_v56 = vadd.f32 %v1819_v47, %v6237_v32  ;;  %v2099_v42 = vld [vmem:[#allocation5 + $0x28] sm:$0xff] }
 0x63d   :  { %v4215_v17 = vmul.f32 -1.442695, %v5349_v34  ;;  %v4217_v61 = vmul.f32 -1.442695, %v5365_v46  ;;  %v2095_v34 = vld [vmem:[#allocation5 + $0x8] sm:$0xff] }
 0x63e   :  { %v4216_v37 = vmul.f32 -1.442695, %v5350_v50  ;;  %v4699_v47 = vpack.c.bf16 %v2099_v42, %v2095_v34  ;;  %v2101_v50 = vld [vmem:[#allocation5 + $0x38] sm:$0xff] }
 0x63f   :  { %5560 = vpow2.f32 %v4215_v17  ;;  %v2094_v17 = vld [vmem:[#allocation5] sm:$0xff] }
 0x640   :  { %5562 = vpow2.f32 %v4216_v37  ;;  %v2098_v37 = vld [vmem:[#allocation5 + $0x20] sm:$0xff]  ;;  %4700 = vmatprep.subr.bf16.mxu0 %v4699_v47 }
 0x641   :  { %5564 = vtanh.f32 %v5366_v56  ;;  %v4701_v56 = vpack.c.bf16 %v2098_v37, %v2094_v17  ;;  %v2336_v37 = vld [vmem:[#allocation8] sm:$0xff] }
 0x642   :  { %5566 = vpow2.f32 %v4217_v61  ;;  %v2096_v61 = vld [vmem:[#allocation5 + $0x10] sm:$0xff] }
 0x649   :  { %v5561_v14 = vpop.eup %5560 }
 0x64a   :  { %v1831_v5 = vadd.f32 1.0, %v5561_v14  ;;  %v5563_v29 = vpop.eup %5562  ;;  %v2100_v14 = vld [vmem:[#allocation5 + $0x30] sm:$0xff] }
 0x64b   :  { %v1832_v25 = vadd.f32 1.0, %v5563_v29  ;;  %v5565_v22 = vpop.eup %5564  ;;  %v2103_v29 = vld [vmem:[#allocation5 + $0x48] sm:$0xff] }
 0x64c   :  { %5568 = vrcp.f32 %v1831_v5  ;;  %v5567_v35 = vpop.eup %5566  ;;  %v4733_v5 = vpack.c.bf16 %v2100_v14, %v2096_v61  ;;  %v2342_v61 = vld [vmem:[#allocation8 + $0x30] sm:$0xff]  ;;  %v2345_v14 = vld [vmem:[#allocation8 + $0x48] sm:$0xff] }
 0x64d   :  { %5570 = vrcp.f32 %v1832_v25  ;;  %v1833_v57 = vadd.f32 1.0, %v5567_v35  ;;  %v2107_v25 = vld [vmem:[#allocation5 + $0x68] sm:$0xff] }
 0x64e   :  { %v4703_v35 = vpack.c.bf16 %v2107_v25, %v2103_v29  ;;  %v2347_v29 = vld [vmem:[#allocation8 + $0x58] sm:$0xff] }
 0x64f   :  { %5572 = vrcp.f32 %v1833_v57  ;;  %v2351_v25 = vld [vmem:[#allocation8 + $0x78] sm:$0xff] }
 0x656   :  { %v5569_v33 = vpop.eup %5568 }
 0x657   :  { %v1842_v49 = vmul.f32 %v5569_v33, %v5565_v22  ;;  %v5571_v60 = vpop.eup %5570  ;;  %v2105_v22 = vld [vmem:[#allocation5 + $0x58] sm:$0xff] }
 0x658   :  { %v1841_v58 = vmul.f32 %v5571_v60, %v6492_v45  ;;  %v2097_v45 = vld [vmem:[#allocation5 + $0x18] sm:$0xff]  ;;  %v2106_v60 = vld [vmem:[#allocation5 + $0x60] sm:$0xff] }
 0x659   :  { %v5573_v20 = vpop.eup %5572  ;;  %v4731_v46 = vpack.c.bf16 %v2101_v50, %v2097_v45  ;;  %v2109_v33 = vld [vmem:[#allocation5 + $0x78] sm:$0xff] }
 0x65a   :  { %v6536_v3 = vadd.f32 %v1842_v49, %v1841_v58  ;;  %v2102_v49 = vld [vmem:[#allocation5 + $0x40] sm:$0xff]  ;;  %v4735_v57 = vpack.c.bf16 %v2109_v33, %v2105_v22 }
 0x65b   :  { %4732 = vmatprep.subr.bf16.mxu1 %v4731_v46  ;;  %v4705_v58 = vpack.c.bf16 %v2106_v60, %v2102_v49  ;;  %v2340_v46 = vld [vmem:[#allocation8 + $0x20] sm:$0xff] }
 0x65c   :  { %5574 = vtanh.f32 %v6536_v3  ;;  %v4765_v33 = vpack.c.bf16 %v2340_v46, %v2336_v37  ;;  %v2344_v60 = vld [vmem:[#allocation8 + $0x40] sm:$0xff] }
 0x666   :  { %v5575_v30 = vpop.eup %5574 }
 0x667   :  { %v6539_v19 = vmul.f32 %v5575_v30, %v5573_v20  ;;  %v2104_v20 = vld [vmem:[#allocation5 + $0x50] sm:$0xff] }
 0x668   :  { %v2108_v30 = vld [vmem:[#allocation5 + $0x70] sm:$0xff] }
 0x669   :  { %1984 = vmatmul.mubr.f32.vlgmr.msra.gmra.mrb[12].mxu0 %v6539_v19  ;;  %2055 = vmatmul.mubr.f32.vlgmr.msra.gmra.mrb[12].mxu1 %v6539_v19  ;;  %v4737_v34 = vpack.c.bf16 %v2108_v30, %v2104_v20  ;;  %v4799_v20 = vpack.c.bf16 %v2351_v25, %v2347_v29  ;;  %v2346_v30 = vld [vmem:[#allocation8 + $0x50] sm:$0xff] }
 0x66a   :  { %2222 = vmatprep.mubr.f32.mxu0 %v5881_v0  ;;  %2293 = vmatprep.mubr.f32.mxu1 %v5881_v0  ;;  %v2370_v29 = vld [vmem:[#allocation8 + $0x110] sm:$0xff] }
 0x66b   :  { %4702 = vmatpush1.bf16.msra.mxu0 %v4701_v56  ;;  %4734 = vmatpush1.bf16.msra.mxu1 %v4733_v5  ;;  %v2338_v56 = vld [vmem:[#allocation8 + $0x10] sm:$0xff]  ;;  %v2349_v5 = vld [vmem:[#allocation8 + $0x68] sm:$0xff] }
 0x66c   :  { %4704 = vmatprep.subr.bf16.mxu0 %v4703_v35  ;;  %4736 = vmatprep.subr.bf16.mxu1 %v4735_v57  ;;  %v4797_v49 = vpack.c.bf16 %v2342_v61, %v2338_v56  ;;  %v2348_v57 = vld [vmem:[#allocation8 + $0x60] sm:$0xff]  ;;  %v2374_v25 = vld [vmem:[#allocation8 + $0x130] sm:$0xff] }
 0x66d   :  { %v2368_v56 = vld [vmem:[#allocation8 + $0x100] sm:$0xff] }
 0x66e   :  { %v2372_v61 = vld [vmem:[#allocation8 + $0x120] sm:$0xff] }
 0x66f   :  { %4706 = vmatpush1.bf16.msra.mxu0 %v4705_v58  ;;  %4738 = vmatpush1.bf16.msra.mxu1 %v4737_v34  ;;  %v4767_v58 = vpack.c.bf16 %v2349_v5, %v2345_v14  ;;  %v2350_v34 = vld [vmem:[#allocation8 + $0x70] sm:$0xff] }
 0x670   :  { %4708 = vmatprep.subr.bf16.mxu0 %v6367_v11  ;;  %4740 = vmatprep.subr.bf16.mxu1 %v6369_v26  ;;  %v2337_v11 = vld [vmem:[#allocation8 + $0x8] sm:$0xff] }
 0x671   :  { %v2341_v26 = vld [vmem:[#allocation8 + $0x28] sm:$0xff] }
 0x673   :  { %4710 = vmatpush1.bf16.msra.mxu0 %v6371_v16  ;;  %4742 = vmatpush1.bf16.msra.mxu1 %v6374_v23  ;;  %v2339_v16 = vld [vmem:[#allocation8 + $0x18] sm:$0xff] }
 0x674   :  { %4712 = vmatprep.subr.bf16.mxu0 %v6379_v39  ;;  %4744 = vmatprep.subr.bf16.mxu1 %v6381_v41  ;;  %v2343_v23 = vld [vmem:[#allocation8 + $0x38] sm:$0xff]  ;;  %v4763_v39 = vpack.c.bf16 %v2341_v26, %v2337_v11  ;;  %v2353_v11 = vld [vmem:[#allocation8 + $0x88] sm:$0xff] }
 0x675   :  { %v4795_v41 = vpack.c.bf16 %v2343_v23, %v2339_v16  ;;  %v2357_v26 = vld [vmem:[#allocation8 + $0xa8] sm:$0xff]  ;;  %v2355_v16 = vld [vmem:[#allocation8 + $0x98] sm:$0xff] }
 0x676   :  { %v2359_v23 = vld [vmem:[#allocation8 + $0xb8] sm:$0xff] }
 0x677   :  { %4714 = vmatpush1.bf16.msra.mxu0 %v6383_v44  ;;  %4746 = vmatpush1.bf16.msra.mxu1 %v6386_v54 }
 0x678   :  { %4716 = vmatprep.subr.bf16.mxu0 %v6391_v4  ;;  %4748 = vmatprep.subr.bf16.mxu1 %v6393_v21 }
 0x67b   :  { %4718 = vmatpush1.bf16.msra.mxu0 %v6395_v24  ;;  %4750 = vmatpush1.bf16.msra.mxu1 %v6398_v38 }
 0x67c   :  { %4720 = vmatprep.subr.bf16.mxu0 %v6403_v59  ;;  %4752 = vmatprep.subr.bf16.mxu1 %v6405_v62 }
 0x67f   :  { %4722 = vmatpush1.bf16.msra.mxu0 %v6407_v13  ;;  %4754 = vmatpush1.bf16.msra.mxu1 %v6410_v18 }
 0x680   :  { %4724 = vmatprep.subr.bf16.mxu0 %v6414_v36  ;;  %4756 = vmatprep.subr.bf16.mxu1 %v6416_v48 }
 0x683   :  { %4726 = vmatpush1.bf16.msra.mxu0 %v6419_v53  ;;  %4758 = vmatpush1.bf16.msra.mxu1 %v6423_v7 }
 0x684   :  { %4728 = vmatprep.subr.bf16.mxu0 %v6425_v8  ;;  %4760 = vmatprep.subr.bf16.mxu1 %v6427_v43 }
 0x687   :  { %4730 = vmatpush1.bf16.msra.mxu0 %v6430_v51  ;;  %4762 = vmatpush1.bf16.msra.mxu1 %v6434_v52 }
 0x688   :  { %4764 = vmatprep.subr.bf16.mxu0 %v4763_v39  ;;  %4796 = vmatprep.subr.bf16.mxu1 %v4795_v41  ;;  %v4769_v39 = vpack.c.bf16 %v2348_v57, %v2344_v60  ;;  %v4801_v41 = vpack.c.bf16 %v2350_v34, %v2346_v30  ;;  %v4781_v60 = vpack.c.bf16 %v2372_v61, %v2368_v56  ;;  %v2690_v61 = vld [vmem:[#allocation10 + $0x10] sm:$0xff] }
 0x689   :  { %v4813_v57 = vpack.c.bf16 %v2374_v25, %v2370_v29  ;;  %v2701_v29 = vld [vmem:[#allocation10 + $0x68] sm:$0xff]  ;;  %v2699_v25 = vld [vmem:[#allocation10 + $0x58] sm:$0xff] }
 0x73c   :  { %v1985_v44 = vpop.f32.mrb[12].mxu0  ;;  %v2056_v54 = vpop.f32.mrb[12].mxu1 }
 0x73d   :  { %v5351_v4 = vadd.f32 %v1985_v44, %v6221_v10  ;;  %v1987_v21 = vpop.f32.mrb[13].mxu0  ;;  %v2058_v24 = vpop.f32.mrb[13].mxu1  ;;  %v5367_v13 = vadd.f32 %v2056_v54, %v6233_v31  ;;  %v2352_v44 = vld [vmem:[#allocation8 + $0x80] sm:$0xff] }
 0x73e   :  { %v5352_v38 = vadd.f32 %v1987_v21, %v6225_v9  ;;  %v5368_v18 = vadd.f32 %v2058_v24, %v6237_v32  ;;  %v2356_v54 = vld [vmem:[#allocation8 + $0xa0] sm:$0xff]  ;;  %v4803_v21 = vpack.c.bf16 %v2359_v23, %v2355_v16  ;;  %v2354_v24 = vld [vmem:[#allocation8 + $0x90] sm:$0xff]  ;;  %v2385_v16 = vld [vmem:[#allocation8 + $0x188] sm:$0xff] }
 0x73f   :  { %v4218_v59 = vmul.f32 -1.442695, %v5351_v4  ;;  %v4220_v36 = vmul.f32 -1.442695, %v5367_v13  ;;  %v4771_v4 = vpack.c.bf16 %v2357_v26, %v2353_v11  ;;  %v2363_v13 = vld [vmem:[#allocation8 + $0xd8] sm:$0xff]  ;;  %v2378_v11 = vld [vmem:[#allocation8 + $0x150] sm:$0xff] }
 0x740   :  { %v4219_v62 = vmul.f32 -1.442695, %v5352_v38  ;;  %v2358_v38 = vld [vmem:[#allocation8 + $0xb0] sm:$0xff]  ;;  %v2389_v23 = vld [vmem:[#allocation8 + $0x1a8] sm:$0xff] }
 0x741   :  { %5576 = vpow2.f32 %v4218_v59  ;;  %v2361_v59 = vld [vmem:[#allocation8 + $0xc8] sm:$0xff]  ;;  %v2382_v26 = vld [vmem:[#allocation8 + $0x170] sm:$0xff] }
 0x742   :  { %5578 = vpow2.f32 %v4219_v62  ;;  %v2365_v62 = vld [vmem:[#allocation8 + $0xe8] sm:$0xff] }
 0x743   :  { %5580 = vtanh.f32 %v5368_v18  ;;  %v2367_v18 = vld [vmem:[#allocation8 + $0xf8] sm:$0xff] }
 0x744   :  { %5582 = vpow2.f32 %v4220_v36  ;;  %v4773_v36 = vpack.c.bf16 %v2356_v54, %v2352_v44  ;;  %v4817_v54 = vpack.c.bf16 %v2382_v26, %v2378_v11  ;;  %v2709_v11 = vld [vmem:[#allocation10 + $0xa8] sm:$0xff]  ;;  %v2707_v26 = vld [vmem:[#allocation10 + $0x98] sm:$0xff] }
 0x74b   :  { %v5577_v48 = vpop.eup %5576 }
 0x74c   :  { %v2070_v53 = vadd.f32 1.0, %v5577_v48  ;;  %v5579_v7 = vpop.eup %5578  ;;  %v4805_v48 = vpack.c.bf16 %v2358_v38, %v2354_v24  ;;  %v4787_v24 = vpack.c.bf16 %v2389_v23, %v2385_v16  ;;  %v2711_v23 = vld [vmem:[#allocation10 + $0xb8] sm:$0xff] }
 0x74d   :  { %v2071_v8 = vadd.f32 1.0, %v5579_v7  ;;  %v5581_v43 = vpop.eup %5580  ;;  %v2364_v7 = vld [vmem:[#allocation8 + $0xe0] sm:$0xff] }
 0x74e   :  { %5584 = vrcp.f32 %v2070_v53  ;;  %v5583_v51 = vpop.eup %5582  ;;  %v2360_v53 = vld [vmem:[#allocation8 + $0xc0] sm:$0xff] }
 0x74f   :  { %5586 = vrcp.f32 %v2071_v8  ;;  %v2072_v47 = vadd.f32 1.0, %v5583_v51  ;;  %v4775_v8 = vpack.c.bf16 %v2365_v62, %v2361_v59  ;;  %v2362_v51 = vld [vmem:[#allocation8 + $0xd0] sm:$0xff]  ;;  %v4777_v37 = vpack.c.bf16 %v2364_v7, %v2360_v53 }
 0x750   :  { %v2386_v59 = vld [vmem:[#allocation8 + $0x190] sm:$0xff] }
 0x751   :  { %5588 = vrcp.f32 %v2072_v47  ;;  %v2371_v47 = vld [vmem:[#allocation8 + $0x118] sm:$0xff]  ;;  %v2390_v62 = vld [vmem:[#allocation8 + $0x1b0] sm:$0xff] }
 0x752   :  { %v4821_v7 = vpack.c.bf16 %v2390_v62, %v2386_v59  ;;  %v2717_v59 = vld [vmem:[#allocation10 + $0xe8] sm:$0xff]  ;;  %v2715_v62 = vld [vmem:[#allocation10 + $0xd8] sm:$0xff] }
 0x758   :  { %v5585_v52 = vpop.eup %5584 }
 0x759   :  { %v2081_v42 = vmul.f32 %v5585_v52, %v5581_v43  ;;  %v5587_v45 = vpop.eup %5586  ;;  %v4807_v43 = vpack.c.bf16 %v2367_v18, %v2363_v13  ;;  %v2366_v52 = vld [vmem:[#allocation8 + $0xf0] sm:$0xff]  ;;  %v2393_v13 = vld [vmem:[#allocation8 + $0x1c8] sm:$0xff] }
 0x75a   :  { %v2080_v50 = vmul.f32 %v5587_v45, %v6536_v3  ;;  %v2373_v45 = vld [vmem:[#allocation8 + $0x128] sm:$0xff]  ;;  %v4809_v46 = vpack.c.bf16 %v2366_v52, %v2362_v51  ;;  %v2396_v52 = vld [vmem:[#allocation8 + $0x1e0] sm:$0xff] }
 0x75b   :  { %v5589_v22 = vpop.eup %5588  ;;  %v2397_v18 = vld [vmem:[#allocation8 + $0x1e8] sm:$0xff] }
 0x75c   :  { %v6574_v17 = vadd.f32 %v2081_v42, %v2080_v50  ;;  %v2369_v42 = vld [vmem:[#allocation8 + $0x108] sm:$0xff]  ;;  %v2375_v50 = vld [vmem:[#allocation8 + $0x138] sm:$0xff] }
 0x75d   :  { %v4779_v14 = vpack.c.bf16 %v2373_v45, %v2369_v42  ;;  %v4811_v5 = vpack.c.bf16 %v2375_v50, %v2371_v47  ;;  %v2394_v42 = vld [vmem:[#allocation8 + $0x1d0] sm:$0xff] }
 0x75e   :  { %5590 = vtanh.f32 %v6574_v17  ;;  %v2398_v45 = vld [vmem:[#allocation8 + $0x1f0] sm:$0xff] }
 0x75f   :  { %v4825_v50 = vpack.c.bf16 %v2398_v45, %v2394_v42  ;;  %v2725_v42 = vld [vmem:[#allocation10 + $0x128] sm:$0xff]  ;;  %v2723_v45 = vld [vmem:[#allocation10 + $0x118] sm:$0xff] }
 0x768   :  { %v5591_v35 = vpop.eup %5590 }
 0x769   :  { %v6577_v3 = vmul.f32 %v5591_v35, %v5589_v22  ;;  %v2377_v22 = vld [vmem:[#allocation8 + $0x148] sm:$0xff] }
 0x76a   :  { %v2381_v35 = vld [vmem:[#allocation8 + $0x168] sm:$0xff] }
 0x76b   :  { %2223 = vmatmul.mubr.f32.vlgmr.msra.gmra.mrb[14].mxu0 %v6577_v3  ;;  %2294 = vmatmul.mubr.f32.vlgmr.msra.gmra.mrb[14].mxu1 %v6577_v3  ;;  %v4783_v30 = vpack.c.bf16 %v2381_v35, %v2377_v22  ;;  %v2703_v35 = vld [vmem:[#allocation10 + $0x78] sm:$0xff] }
 0x76c   :  { %4766 = vmatpush1.bf16.msra.mxu0 %v4765_v33  ;;  %4798 = vmatpush1.bf16.msra.mxu1 %v4797_v49  ;;  %v2379_v33 = vld [vmem:[#allocation8 + $0x158] sm:$0xff] }
 0x76d   :  { %4768 = vmatprep.subr.bf16.mxu0 %v4767_v58  ;;  %4800 = vmatprep.subr.bf16.mxu1 %v4799_v20  ;;  %v2383_v49 = vld [vmem:[#allocation8 + $0x178] sm:$0xff]  ;;  %v2376_v58 = vld [vmem:[#allocation8 + $0x140] sm:$0xff] }
 0x76e   :  { %2486 = vmatprep.mubr.f32.mxu0 %v5881_v0  ;;  %2599 = vmatprep.mubr.f32.mxu1 %v5881_v0  ;;  %v2380_v20 = vld [vmem:[#allocation8 + $0x160] sm:$0xff]  ;;  %v4815_v34 = vpack.c.bf16 %v2383_v49, %v2379_v33 }
 0x76f   :  { %v4785_v44 = vpack.c.bf16 %v2380_v20, %v2376_v58  ;;  %v2696_v33 = vld [vmem:[#allocation10 + $0x40] sm:$0xff]  ;;  %v2698_v58 = vld [vmem:[#allocation10 + $0x50] sm:$0xff] }
 0x770   :  { %4770 = vmatpush1.bf16.msra.mxu0 %v4769_v39  ;;  %4802 = vmatpush1.bf16.msra.mxu1 %v4801_v41  ;;  %v2387_v39 = vld [vmem:[#allocation8 + $0x198] sm:$0xff]  ;;  %v2700_v49 = vld [vmem:[#allocation10 + $0x60] sm:$0xff]  ;;  %v2702_v20 = vld [vmem:[#allocation10 + $0x70] sm:$0xff] }
 0x771   :  { %4772 = vmatprep.subr.bf16.mxu0 %v4771_v4  ;;  %4804 = vmatprep.subr.bf16.mxu1 %v4803_v21  ;;  %v2391_v41 = vld [vmem:[#allocation8 + $0x1b8] sm:$0xff]  ;;  %v2384_v4 = vld [vmem:[#allocation8 + $0x180] sm:$0xff] }
 0x772   :  { %v2388_v21 = vld [vmem:[#allocation8 + $0x1a0] sm:$0xff]  ;;  %v4819_v38 = vpack.c.bf16 %v2391_v41, %v2387_v39 }
 0x773   :  { %v4789_v53 = vpack.c.bf16 %v2388_v21, %v2384_v4  ;;  %v2704_v39 = vld [vmem:[#allocation10 + $0x80] sm:$0xff]  ;;  %v2706_v4 = vld [vmem:[#allocation10 + $0x90] sm:$0xff] }
 0x774   :  { %4774 = vmatpush1.bf16.msra.mxu0 %v4773_v36  ;;  %4806 = vmatpush1.bf16.msra.mxu1 %v4805_v48  ;;  %v2395_v36 = vld [vmem:[#allocation8 + $0x1d8] sm:$0xff]  ;;  %v2708_v41 = vld [vmem:[#allocation10 + $0xa0] sm:$0xff]  ;;  %v2710_v21 = vld [vmem:[#allocation10 + $0xb0] sm:$0xff] }
 0x775   :  { %4776 = vmatprep.subr.bf16.mxu0 %v4775_v8  ;;  %4808 = vmatprep.subr.bf16.mxu1 %v4807_v43  ;;  %v2399_v48 = vld [vmem:[#allocation8 + $0x1f8] sm:$0xff]  ;;  %v2392_v8 = vld [vmem:[#allocation8 + $0x1c0] sm:$0xff]  ;;  %v4791_v43 = vpack.c.bf16 %v2397_v18, %v2393_v13 }
 0x776   :  { %v4823_v51 = vpack.c.bf16 %v2399_v48, %v2395_v36  ;;  %v4793_v47 = vpack.c.bf16 %v2396_v52, %v2392_v8  ;;  %v2719_v18 = vld [vmem:[#allocation10 + $0xf8] sm:$0xff]  ;;  %v2712_v36 = vld [vmem:[#allocation10 + $0xc0] sm:$0xff]  ;;  %v2714_v8 = vld [vmem:[#allocation10 + $0xd0] sm:$0xff] }
 0x777   :  { %v2716_v48 = vld [vmem:[#allocation10 + $0xe0] sm:$0xff]  ;;  %v2721_v52 = vld [vmem:[#allocation10 + $0x108] sm:$0xff] }
 0x778   :  { %4778 = vmatpush1.bf16.msra.mxu0 %v4777_v37  ;;  %4810 = vmatpush1.bf16.msra.mxu1 %v4809_v46  ;;  %v2688_v37 = vld [vmem:[#allocation10] sm:$0xff] }
 0x779   :  { %4780 = vmatprep.subr.bf16.mxu0 %v4779_v14  ;;  %4812 = vmatprep.subr.bf16.mxu1 %v4811_v5  ;;  %v2694_v14 = vld [vmem:[#allocation10 + $0x30] sm:$0xff]  ;;  %v2697_v5 = vld [vmem:[#allocation10 + $0x48] sm:$0xff] }
 0x77a   :  { %v6623_v22 = vpack.c.bf16 %v2701_v29, %v2697_v5  ;;  %v2733_v5 = vld [vmem:[#allocation10 + $0x168] sm:$0xff]  ;;  %v2731_v29 = vld [vmem:[#allocation10 + $0x158] sm:$0xff] }
 0x77c   :  { %4782 = vmatpush1.bf16.msra.mxu0 %v4781_v60  ;;  %4814 = vmatpush1.bf16.msra.mxu1 %v4813_v57  ;;  %v6625_v60 = vpack.c.bf16 %v2703_v35, %v2699_v25  ;;  %v6627_v57 = vpack.c.bf16 %v2700_v49, %v2696_v33  ;;  %v2735_v25 = vld [vmem:[#allocation10 + $0x178] sm:$0xff]  ;;  %v2728_v49 = vld [vmem:[#allocation10 + $0x140] sm:$0xff] }
 0x77d   :  { %4784 = vmatprep.subr.bf16.mxu0 %v4783_v30  ;;  %4816 = vmatprep.subr.bf16.mxu1 %v4815_v34  ;;  %v6630_v30 = vpack.c.bf16 %v2702_v20, %v2698_v58  ;;  %v2705_v34 = vld [vmem:[#allocation10 + $0x88] sm:$0xff]  ;;  %v6672_v33 = vpack.c.bf16 %v2735_v25, %v2731_v29  ;;  %v2732_v58 = vld [vmem:[#allocation10 + $0x160] sm:$0xff]  ;;  %v2730_v20 = vld [vmem:[#allocation10 + $0x150] sm:$0xff] }
 0x77e   :  { %v6635_v16 = vpack.c.bf16 %v2709_v11, %v2705_v34  ;;  %v6675_v34 = vpack.c.bf16 %v2732_v58, %v2728_v49  ;;  %v2734_v11 = vld [vmem:[#allocation10 + $0x170] sm:$0xff] }
 0x780   :  { %4786 = vmatpush1.bf16.msra.mxu0 %v4785_v44  ;;  %4818 = vmatpush1.bf16.msra.mxu1 %v4817_v54  ;;  %v6637_v44 = vpack.c.bf16 %v2711_v23, %v2707_v26  ;;  %v6639_v54 = vpack.c.bf16 %v2708_v41, %v2704_v39  ;;  %v2737_v26 = vld [vmem:[#allocation10 + $0x188] sm:$0xff]  ;;  %v6679_v39 = vpack.c.bf16 %v2734_v11, %v2730_v20 }
 0x781   :  { %4788 = vmatprep.subr.bf16.mxu0 %v4787_v24  ;;  %4820 = vmatprep.subr.bf16.mxu1 %v4819_v38  ;;  %v6642_v24 = vpack.c.bf16 %v2710_v21, %v2706_v4  ;;  %v2713_v38 = vld [vmem:[#allocation10 + $0xc8] sm:$0xff]  ;;  %v2739_v4 = vld [vmem:[#allocation10 + $0x198] sm:$0xff] }
 0x782   :  { %v6647_v13 = vpack.c.bf16 %v2717_v59, %v2713_v38  ;;  %v2741_v23 = vld [vmem:[#allocation10 + $0x1a8] sm:$0xff]  ;;  %v2743_v21 = vld [vmem:[#allocation10 + $0x1b8] sm:$0xff]  ;;  %v2736_v38 = vld [vmem:[#allocation10 + $0x180] sm:$0xff] }
 0x783   :  { %v6681_v41 = vpack.c.bf16 %v2741_v23, %v2737_v26  ;;  %v6683_v59 = vpack.c.bf16 %v2743_v21, %v2739_v4 }
 0x784   :  { %4790 = vmatpush1.bf16.msra.mxu0 %v4789_v53  ;;  %4822 = vmatpush1.bf16.msra.mxu1 %v4821_v7  ;;  %v6649_v53 = vpack.c.bf16 %v2719_v18, %v2715_v62  ;;  %v6651_v7 = vpack.c.bf16 %v2716_v48, %v2712_v36  ;;  %v2740_v62 = vld [vmem:[#allocation10 + $0x1a0] sm:$0xff]  ;;  %v2738_v18 = vld [vmem:[#allocation10 + $0x190] sm:$0xff] }
 0x785   :  { %4792 = vmatprep.subr.bf16.mxu0 %v4791_v43  ;;  %4824 = vmatprep.subr.bf16.mxu1 %v4823_v51  ;;  %v2718_v43 = vld [vmem:[#allocation10 + $0xf0] sm:$0xff]  ;;  %v6686_v48 = vpack.c.bf16 %v2740_v62, %v2736_v38 }
 0x786   :  { %v6654_v51 = vpack.c.bf16 %v2718_v43, %v2714_v8  ;;  %v2742_v36 = vld [vmem:[#allocation10 + $0x1b0] sm:$0xff]  ;;  %v2745_v43 = vld [vmem:[#allocation10 + $0x1c8] sm:$0xff] }
 0x787   :  { %v6690_v8 = vpack.c.bf16 %v2742_v36, %v2738_v18 }
 0x788   :  { %4794 = vmatpush1.bf16.msra.mxu0 %v4793_v47  ;;  %4826 = vmatpush1.bf16.msra.mxu1 %v4825_v50  ;;  %v6659_v47 = vpack.c.bf16 %v2725_v42, %v2721_v52  ;;  %v2727_v50 = vld [vmem:[#allocation10 + $0x138] sm:$0xff]  ;;  %v2749_v52 = vld [vmem:[#allocation10 + $0x1e8] sm:$0xff] }
 0x789   :  { %v2747_v42 = vld [vmem:[#allocation10 + $0x1d8] sm:$0xff] }
 0x78b   :  { %2487 = vmatmul.mubr.f32.vlgmr.msra.gmra.mrb[16].mxu0 %v6247_v12  ;;  %2600 = vmatmul.mubr.f32.vlgmr.msra.gmra.mrb[16].mxu1 %v6247_v12  ;;  %v2689_v12 = vld [vmem:[#allocation10 + $0x8] sm:$0xff] }
 0x78c   :  { %2492 = vmatprep.mubr.f32.mxu0 %v5881_v0  ;;  %2605 = vmatprep.mubr.f32.mxu1 %v5881_v0 }
 0x78f   :  { %2493 = vmatmul.mubr.f32.gmra.mrb[18].mxu0 %v6291_v63  ;;  %2606 = vmatmul.mubr.f32.gmra.mrb[18].mxu1 %v6291_v63  ;;  %v2693_v63 = vld [vmem:[#allocation10 + $0x28] sm:$0xff] }
 0x790   :  { %2498 = vmatprep.mubr.f32.mxu0 %v5881_v0  ;;  %2611 = vmatprep.mubr.f32.mxu1 %v5881_v0 }
 0x793   :  { %2499 = vmatmul.mubr.f32.gmra.mrb[20].mxu0 %v6355_v55  ;;  %2612 = vmatmul.mubr.f32.gmra.mrb[20].mxu1 %v6355_v55  ;;  %v2691_v55 = vld [vmem:[#allocation10 + $0x18] sm:$0xff] }
 0x794   :  { %2504 = vmatprep.mubr.f32.mxu0 %v5881_v0  ;;  %2617 = vmatprep.mubr.f32.mxu1 %v5881_v0 }
 0x797   :  { %2505 = vmatmul.mubr.f32.gmra.mrb[22].mxu0 %v6449_v40  ;;  %2618 = vmatmul.mubr.f32.gmra.mrb[22].mxu1 %v6449_v40  ;;  %v6611_v40 = vpack.c.bf16 %v2693_v63, %v2689_v12  ;;  %v2720_v12 = vld [vmem:[#allocation10 + $0x100] sm:$0xff] }
 0x798   :  { %2510 = vmatprep.mubr.f32.mxu0 %v5881_v0  ;;  %2623 = vmatprep.mubr.f32.mxu1 %v5881_v0  ;;  %v2724_v63 = vld [vmem:[#allocation10 + $0x120] sm:$0xff] }
 0x799   :  { %4828 = vmatprep.subr.bf16.mxu0 %v6611_v40 }
 0x79b   :  { %2511 = vmatmul.mubr.f32.gmra.mrb[24].mxu0 %v6495_v27  ;;  %2624 = vmatmul.mubr.f32.gmra.mrb[24].mxu1 %v6495_v27  ;;  %v2695_v27 = vld [vmem:[#allocation10 + $0x38] sm:$0xff] }
 0x79c   :  { %2516 = vmatprep.mubr.f32.mxu0 %v5881_v0  ;;  %2629 = vmatprep.mubr.f32.mxu1 %v5881_v0  ;;  %v6613_v46 = vpack.c.bf16 %v2695_v27, %v2691_v55  ;;  %v6661_v55 = vpack.c.bf16 %v2727_v50, %v2723_v45  ;;  %v6663_v27 = vpack.c.bf16 %v2724_v63, %v2720_v12  ;;  %v2751_v50 = vld [vmem:[#allocation10 + $0x1f8] sm:$0xff]  ;;  %v2744_v12 = vld [vmem:[#allocation10 + $0x1c0] sm:$0xff] }
 0x79d   :  { %v6695_v45 = vpack.c.bf16 %v2749_v52, %v2745_v43  ;;  %v2748_v63 = vld [vmem:[#allocation10 + $0x1e0] sm:$0xff] }
 0x79e   :  { %4860 = vmatprep.subr.bf16.mxu1 %v6613_v46 }
 0x79f   :  { %2517 = vmatmul.mubr.f32.gmra.mrb[26].mxu0 %v6539_v19  ;;  %2630 = vmatmul.mubr.f32.gmra.mrb[26].mxu1 %v6539_v19  ;;  %v2692_v19 = vld [vmem:[#allocation10 + $0x20] sm:$0xff] }
 0x7a0   :  { %2522 = vmatprep.mubr.f32.mxu0 %v5881_v0  ;;  %2635 = vmatprep.mubr.f32.mxu1 %v5881_v0  ;;  %v6615_v56 = vpack.c.bf16 %v2692_v19, %v2688_v37  ;;  %v2722_v37 = vld [vmem:[#allocation10 + $0x110] sm:$0xff] }
 0x7a1   :  { %v2726_v19 = vld [vmem:[#allocation10 + $0x130] sm:$0xff] }
 0x7a2   :  { %4830 = vmatpush1.bf16.msra.mxu0 %v6615_v56 }
 0x7a3   :  { %2523 = vmatmul.mubr.f32.gmra.mrb[28].mxu0 %v6577_v3  ;;  %2636 = vmatmul.mubr.f32.gmra.mrb[28].mxu1 %v6577_v3  ;;  %v6618_v3 = vpack.c.bf16 %v2694_v14, %v2690_v61  ;;  %v2729_v61 = vld [vmem:[#allocation10 + $0x148] sm:$0xff]  ;;  %v6666_v14 = vpack.c.bf16 %v2726_v19, %v2722_v37  ;;  %v6697_v37 = vpack.c.bf16 %v2751_v50, %v2747_v42 }
 0x7a4   :  { %2528 = vmatprep.mubr.f32.mxu0 %v5881_v0  ;;  %2641 = vmatprep.mubr.f32.mxu1 %v5881_v0  ;;  %v6670_v35 = vpack.c.bf16 %v2733_v5, %v2729_v61  ;;  %v6699_v19 = vpack.c.bf16 %v2748_v63, %v2744_v12  ;;  %v2746_v61 = vld [vmem:[#allocation10 + $0x1d0] sm:$0xff] }
 0x7a5   :  { %4862 = vmatpush1.bf16.msra.mxu1 %v6618_v3  ;;  %4832 = vmatprep.subr.bf16.mxu0 %v6623_v22  ;;  %v2750_v5 = vld [vmem:[#allocation10 + $0x1f0] sm:$0xff] }
 0x7a6   :  { %4864 = vmatprep.subr.bf16.mxu1 %v6625_v60  ;;  %4834 = vmatpush1.bf16.msra.mxu0 %v6627_v57  ;;  %v6702_v29 = vpack.c.bf16 %v2750_v5, %v2746_v61 }
 0x7a7   :  { %4836 = vmatprep.subr.bf16.mxu0 %v6635_v16 }
 0x7a9   :  { %4866 = vmatpush1.bf16.msra.mxu1 %v6630_v30 }
 0x7aa   :  { %4868 = vmatprep.subr.bf16.mxu1 %v6637_v44  ;;  %4838 = vmatpush1.bf16.msra.mxu0 %v6639_v54 }
 0x7ab   :  { %4840 = vmatprep.subr.bf16.mxu0 %v6647_v13 }
 0x7ad   :  { %4870 = vmatpush1.bf16.msra.mxu1 %v6642_v24 }
 0x7ae   :  { %4872 = vmatprep.subr.bf16.mxu1 %v6649_v53  ;;  %4842 = vmatpush1.bf16.msra.mxu0 %v6651_v7 }
 0x7af   :  { %4844 = vmatprep.subr.bf16.mxu0 %v6659_v47 }
 0x7b1   :  { %4874 = vmatpush1.bf16.msra.mxu1 %v6654_v51 }
 0x7b2   :  { %4876 = vmatprep.subr.bf16.mxu1 %v6661_v55  ;;  %4846 = vmatpush1.bf16.msra.mxu0 %v6663_v27 }
 0x7b3   :  { %4848 = vmatprep.subr.bf16.mxu0 %v6670_v35 }
 0x7b5   :  { %4878 = vmatpush1.bf16.msra.mxu1 %v6666_v14 }
 0x7b6   :  { %4880 = vmatprep.subr.bf16.mxu1 %v6672_v33  ;;  %4850 = vmatpush1.bf16.msra.mxu0 %v6675_v34 }
 0x7b7   :  { %4852 = vmatprep.subr.bf16.mxu0 %v6681_v41 }
 0x7b9   :  { %4882 = vmatpush1.bf16.msra.mxu1 %v6679_v39 }
 0x7ba   :  { %4884 = vmatprep.subr.bf16.mxu1 %v6683_v59  ;;  %4854 = vmatpush1.bf16.msra.mxu0 %v6686_v48 }
 0x7bb   :  { %4856 = vmatprep.subr.bf16.mxu0 %v6695_v45 }
 0x7bd   :  { %4886 = vmatpush1.bf16.msra.mxu1 %v6690_v8 }
 0x7be   :  { %4888 = vmatprep.subr.bf16.mxu1 %v6697_v37  ;;  %4858 = vmatpush1.bf16.msra.mxu0 %v6699_v19 }
 0x7bf   :  { %4892 = vmatprep.subr.bf16.mxu0 %v6611_v40 }
 0x7c1   :  { %4890 = vmatpush1.bf16.msra.mxu1 %v6702_v29 }
 0x7c2   :  { %4924 = vmatprep.subr.bf16.mxu1 %v6613_v46 }
 0x83e   :  { %v2224_v25 = vpop.f32.mrb[14].mxu0  ;;  %v2295_v49 = vpop.f32.mrb[14].mxu1 }
 0x83f   :  { %v5353_v58 = vadd.f32 %v2224_v25, %v6221_v10  ;;  %v2226_v20 = vpop.f32.mrb[15].mxu0  ;;  %v2297_v11 = vpop.f32.mrb[15].mxu1  ;;  %v5369_v21 = vadd.f32 %v2295_v49, %v6233_v31  ;;  %v4224_v49 = vld [vmem:[%s7076_s1 + $0x8] sm:$0xff] }
 0x840   :  { %v5354_v26 = vadd.f32 %v2226_v20, %v6225_v9  ;;  %v5370_v38 = vadd.f32 %v2297_v11, %v6237_v32 }
 0x841   :  { %v4221_v23 = vmul.f32 -1.442695, %v5353_v58  ;;  %v4223_v62 = vmul.f32 -1.442695, %v5369_v21 }
 0x842   :  { %v4222_v4 = vmul.f32 -1.442695, %v5354_v26 }
 0x843   :  { %5592 = vpow2.f32 %v4221_v23 }
 0x844   :  { %5594 = vpow2.f32 %v4222_v4 }
 0x845   :  { %5596 = vtanh.f32 %v5370_v38 }
 0x846   :  { %5598 = vpow2.f32 %v4223_v62 }
 0x84d   :  { %v5593_v18 = vpop.eup %5592 }
 0x84e   :  { %v2309_v36 = vadd.f32 1.0, %v5593_v18  ;;  %v5595_v43 = vpop.eup %5594 }
 0x84f   :  { %v2310_v10 = vadd.f32 1.0, %v5595_v43  ;;  %v5597_v52 = vpop.eup %5596 }
 0x850   :  { %5600 = vrcp.f32 %v2309_v36  ;;  %v5599_v42 = vpop.eup %5598 }
 0x851   :  { %5602 = vrcp.f32 %v2310_v10  ;;  %v2311_v63 = vadd.f32 1.0, %v5599_v42 }
 0x853   :  { %5604 = vrcp.f32 %v2311_v63 }
 0x85a   :  { %v5601_v9 = vpop.eup %5600 }
 0x85b   :  { %v2320_v50 = vmul.f32 %v5601_v9, %v5597_v52  ;;  %v5603_v12 = vpop.eup %5602 }
 0x85c   :  { %v2319_v61 = vmul.f32 %v5603_v12, %v6574_v17  ;;  %v2400_v17 = vld [vmem:[%s7083_s8] sm:$0xf] }
 0x85d   :  { %v5605_v32 = vpop.eup %5604  ;;  %v6758_v58 = vrot.slane %v2400_v17, %v99_v2  ;;  %v6762_v20 = vrot.slane %v2400_v17, %v103_v6  ;;  %v6768_v36 = vrot.slane %v2400_v17, %v107_v15  ;;  %v6772_v2 = vrot.slane %v2400_v17, %v111_v28 }
 0x85e   :  { %v2321_v31 = vadd.f32 %v2320_v50, %v2319_v61 }
 0x860   :  { %2327 = vst [vmem:[#allocation14] sm:$0xff] %v2321_v31  ;;  %5606 = vtanh.f32 %v2321_v31 }
 0x86a   :  { %v5607_v5 = vpop.eup %5606 }
 0x86b   :  { %v2323_v25 = vmul.f32 %v5607_v5, %v5605_v32 }
 0x86d   :  { %2529 = vmatmul.mubr.f32.gmra.mrb[30].mxu0 %v2323_v25  ;;  %2326 = vst [vmem:[#allocation12] sm:$0xff] %v2323_v25  ;;  %2642 = vmatmul.mubr.f32.gmra.mrb[30].mxu1 %v2323_v25 }
 0x86e   :  { %2816 = vmatprep.mubr.f32.mxu0 %v5881_v0  ;;  %2887 = vmatprep.mubr.f32.mxu1 %v5881_v0 }
 0x871   :  { %2817 = vmatmul.mubr.f32.vlgmr.msra.gmra.mrb[16].mxu0 %v4224_v49  ;;  %2888 = vmatmul.mubr.f32.vlgmr.msra.gmra.mrb[16].mxu1 %v4224_v49 }
 0x872   :  { %4894 = vmatpush1.bf16.msra.mxu0 %v6615_v56  ;;  %4926 = vmatpush1.bf16.msra.mxu1 %v6618_v3 }
 0x873   :  { %4896 = vmatprep.subr.bf16.mxu0 %v6623_v22  ;;  %4928 = vmatprep.subr.bf16.mxu1 %v6625_v60 }
 0x874   :  { %2986 = vmatprep.mubr.f32.mxu0 %v5881_v0  ;;  %3057 = vmatprep.mubr.f32.mxu1 %v5881_v0 }
 0x876   :  { %4898 = vmatpush1.bf16.msra.mxu0 %v6627_v57  ;;  %4930 = vmatpush1.bf16.msra.mxu1 %v6630_v30 }
 0x877   :  { %4900 = vmatprep.subr.bf16.mxu0 %v6635_v16  ;;  %4932 = vmatprep.subr.bf16.mxu1 %v6637_v44 }
 0x87a   :  { %4902 = vmatpush1.bf16.msra.mxu0 %v6639_v54  ;;  %4934 = vmatpush1.bf16.msra.mxu1 %v6642_v24 }
 0x87b   :  { %4904 = vmatprep.subr.bf16.mxu0 %v6647_v13  ;;  %4936 = vmatprep.subr.bf16.mxu1 %v6649_v53 }
 0x87e   :  { %4906 = vmatpush1.bf16.msra.mxu0 %v6651_v7  ;;  %4938 = vmatpush1.bf16.msra.mxu1 %v6654_v51 }
 0x87f   :  { %4908 = vmatprep.subr.bf16.mxu0 %v6659_v47  ;;  %4940 = vmatprep.subr.bf16.mxu1 %v6661_v55 }
 0x882   :  { %4910 = vmatpush1.bf16.msra.mxu0 %v6663_v27  ;;  %4942 = vmatpush1.bf16.msra.mxu1 %v6666_v14 }
 0x883   :  { %4912 = vmatprep.subr.bf16.mxu0 %v6670_v35  ;;  %4944 = vmatprep.subr.bf16.mxu1 %v6672_v33 }
 0x886   :  { %4914 = vmatpush1.bf16.msra.mxu0 %v6675_v34  ;;  %4946 = vmatpush1.bf16.msra.mxu1 %v6679_v39 }
 0x887   :  { %4916 = vmatprep.subr.bf16.mxu0 %v6681_v41  ;;  %4948 = vmatprep.subr.bf16.mxu1 %v6683_v59 }
 0x88a   :  { %4918 = vmatpush1.bf16.msra.mxu0 %v6686_v48  ;;  %4950 = vmatpush1.bf16.msra.mxu1 %v6690_v8 }
 0x88b   :  { %4920 = vmatprep.subr.bf16.mxu0 %v6695_v45  ;;  %4952 = vmatprep.subr.bf16.mxu1 %v6697_v37 }
 0x88e   :  { %4922 = vmatpush1.bf16.msra.mxu0 %v6699_v19  ;;  %4954 = vmatpush1.bf16.msra.mxu1 %v6702_v29 }
 0x88f   :  { %4956 = vmatprep.subr.bf16.mxu0 %v6611_v40  ;;  %4988 = vmatprep.subr.bf16.mxu1 %v6613_v46 }
 0x944   :  { %v2818_v11 = vpop.f32.mrb[16].mxu0  ;;  %v2889_v26 = vpop.f32.mrb[16].mxu1 }
 0x945   :  { %v5371_v23 = vadd.f32 %v2818_v11, %v6758_v58  ;;  %v2820_v4 = vpop.f32.mrb[17].mxu0  ;;  %v2891_v21 = vpop.f32.mrb[17].mxu1  ;;  %v5387_v6 = vadd.f32 %v2889_v26, %v6768_v36 }
 0x946   :  { %v5372_v38 = vadd.f32 %v2820_v4, %v6762_v20  ;;  %v5388_v43 = vadd.f32 %v2891_v21, %v6772_v2 }
 0x947   :  { %v4226_v62 = vmul.f32 -1.442695, %v5371_v23  ;;  %v4228_v10 = vmul.f32 -1.442695, %v5387_v6 }
 0x948   :  { %v4227_v18 = vmul.f32 -1.442695, %v5372_v38 }
 0x949   :  { %5608 = vpow2.f32 %v4226_v62 }
 0x94a   :  { %5610 = vpow2.f32 %v4227_v18 }
 0x94b   :  { %5612 = vtanh.f32 %v5388_v43 }
 0x94c   :  { %5614 = vpow2.f32 %v4228_v10 }
 0x953   :  { %v5609_v52 = vpop.eup %5608 }
 0x954   :  { %v2903_v42 = vadd.f32 1.0, %v5609_v52  ;;  %v5611_v9 = vpop.eup %5610 }
 0x955   :  { %v2904_v50 = vadd.f32 1.0, %v5611_v9  ;;  %v5613_v15 = vpop.eup %5612 }
 0x956   :  { %5616 = vrcp.f32 %v2903_v42  ;;  %v5615_v12 = vpop.eup %5614 }
 0x957   :  { %5618 = vrcp.f32 %v2904_v50  ;;  %v2905_v31 = vadd.f32 1.0, %v5615_v12 }
 0x959   :  { %5620 = vrcp.f32 %v2905_v31 }
 0x960   :  { %v5617_v63 = vpop.eup %5616 }
 0x961   :  { %v2914_v28 = vmul.f32 %v5617_v63, %v5613_v15  ;;  %v5619_v61 = vpop.eup %5618 }
 0x962   :  { %v2913_v32 = vmul.f32 %v5619_v61, %v4225_v1 }
 0x963   :  { %v5621_v25 = vpop.eup %5620 }
 0x964   :  { %v6779_v5 = vadd.f32 %v2914_v28, %v2913_v32 }
 0x966   :  { %5622 = vtanh.f32 %v6779_v5 }
 0x970   :  { %v5623_v49 = vpop.eup %5622 }
 0x971   :  { %v2917_v17 = vmul.f32 %v5623_v49, %v5621_v25 }
 0x973   :  { %2987 = vmatmul.mubr.f32.vlgmr.msra.gmra.mrb[18].mxu0 %v2917_v17  ;;  %3058 = vmatmul.mubr.f32.vlgmr.msra.gmra.mrb[18].mxu1 %v2917_v17 }
 0x974   :  { %4958 = vmatpush1.bf16.msra.mxu0 %v6615_v56  ;;  %4990 = vmatpush1.bf16.msra.mxu1 %v6618_v3 }
 0x975   :  { %4960 = vmatprep.subr.bf16.mxu0 %v6623_v22  ;;  %4992 = vmatprep.subr.bf16.mxu1 %v6625_v60 }
 0x976   :  { %3156 = vmatprep.mubr.f32.mxu0 %v5881_v0  ;;  %3227 = vmatprep.mubr.f32.mxu1 %v5881_v0 }
 0x978   :  { %4962 = vmatpush1.bf16.msra.mxu0 %v6627_v57  ;;  %4994 = vmatpush1.bf16.msra.mxu1 %v6630_v30 }
 0x979   :  { %4964 = vmatprep.subr.bf16.mxu0 %v6635_v16  ;;  %4996 = vmatprep.subr.bf16.mxu1 %v6637_v44 }
 0x97c   :  { %4966 = vmatpush1.bf16.msra.mxu0 %v6639_v54  ;;  %4998 = vmatpush1.bf16.msra.mxu1 %v6642_v24 }
 0x97d   :  { %4968 = vmatprep.subr.bf16.mxu0 %v6647_v13  ;;  %5000 = vmatprep.subr.bf16.mxu1 %v6649_v53 }
 0x980   :  { %4970 = vmatpush1.bf16.msra.mxu0 %v6651_v7  ;;  %5002 = vmatpush1.bf16.msra.mxu1 %v6654_v51 }
 0x981   :  { %4972 = vmatprep.subr.bf16.mxu0 %v6659_v47  ;;  %5004 = vmatprep.subr.bf16.mxu1 %v6661_v55 }
 0x984   :  { %4974 = vmatpush1.bf16.msra.mxu0 %v6663_v27  ;;  %5006 = vmatpush1.bf16.msra.mxu1 %v6666_v14 }
 0x985   :  { %4976 = vmatprep.subr.bf16.mxu0 %v6670_v35  ;;  %5008 = vmatprep.subr.bf16.mxu1 %v6672_v33 }
 0x988   :  { %4978 = vmatpush1.bf16.msra.mxu0 %v6675_v34  ;;  %5010 = vmatpush1.bf16.msra.mxu1 %v6679_v39 }
 0x989   :  { %4980 = vmatprep.subr.bf16.mxu0 %v6681_v41  ;;  %5012 = vmatprep.subr.bf16.mxu1 %v6683_v59 }
 0x98c   :  { %4982 = vmatpush1.bf16.msra.mxu0 %v6686_v48  ;;  %5014 = vmatpush1.bf16.msra.mxu1 %v6690_v8 }
 0x98d   :  { %4984 = vmatprep.subr.bf16.mxu0 %v6695_v45  ;;  %5016 = vmatprep.subr.bf16.mxu1 %v6697_v37 }
 0x990   :  { %4986 = vmatpush1.bf16.msra.mxu0 %v6699_v19  ;;  %5018 = vmatpush1.bf16.msra.mxu1 %v6702_v29 }
 0x991   :  { %5020 = vmatprep.subr.bf16.mxu0 %v6611_v40  ;;  %5052 = vmatprep.subr.bf16.mxu1 %v6613_v46 }
 0xa46   :  { %v2988_v11 = vpop.f32.mrb[18].mxu0  ;;  %v3059_v26 = vpop.f32.mrb[18].mxu1 }
 0xa47   :  { %v5373_v23 = vadd.f32 %v2988_v11, %v6758_v58  ;;  %v2990_v4 = vpop.f32.mrb[19].mxu0  ;;  %v3061_v21 = vpop.f32.mrb[19].mxu1  ;;  %v5389_v6 = vadd.f32 %v3059_v26, %v6768_v36 }
 0xa48   :  { %v5374_v38 = vadd.f32 %v2990_v4, %v6762_v20  ;;  %v5390_v43 = vadd.f32 %v3061_v21, %v6772_v2 }
 0xa49   :  { %v4229_v62 = vmul.f32 -1.442695, %v5373_v23  ;;  %v4231_v10 = vmul.f32 -1.442695, %v5389_v6 }
 0xa4a   :  { %v4230_v18 = vmul.f32 -1.442695, %v5374_v38 }
 0xa4b   :  { %5624 = vpow2.f32 %v4229_v62 }
 0xa4c   :  { %5626 = vpow2.f32 %v4230_v18 }
 0xa4d   :  { %5628 = vtanh.f32 %v5390_v43 }
 0xa4e   :  { %5630 = vpow2.f32 %v4231_v10 }
 0xa55   :  { %v5625_v52 = vpop.eup %5624 }
 0xa56   :  { %v3073_v42 = vadd.f32 1.0, %v5625_v52  ;;  %v5627_v9 = vpop.eup %5626 }
 0xa57   :  { %v3074_v50 = vadd.f32 1.0, %v5627_v9  ;;  %v5629_v15 = vpop.eup %5628 }
 0xa58   :  { %5632 = vrcp.f32 %v3073_v42  ;;  %v5631_v12 = vpop.eup %5630 }
 0xa59   :  { %5634 = vrcp.f32 %v3074_v50  ;;  %v3075_v61 = vadd.f32 1.0, %v5631_v12 }
 0xa5b   :  { %5636 = vrcp.f32 %v3075_v61 }
 0xa62   :  { %v5633_v63 = vpop.eup %5632 }
 0xa63   :  { %v3084_v1 = vmul.f32 %v5633_v63, %v5629_v15  ;;  %v5635_v28 = vpop.eup %5634 }
 0xa64   :  { %v3083_v31 = vmul.f32 %v5635_v28, %v6779_v5 }
 0xa65   :  { %v5637_v25 = vpop.eup %5636 }
 0xa66   :  { %v6821_v32 = vadd.f32 %v3084_v1, %v3083_v31 }
 0xa68   :  { %5638 = vtanh.f32 %v6821_v32 }
 0xa72   :  { %v5639_v49 = vpop.eup %5638 }
 0xa73   :  { %v3087_v17 = vmul.f32 %v5639_v49, %v5637_v25 }
 0xa75   :  { %3157 = vmatmul.mubr.f32.vlgmr.msra.gmra.mrb[20].mxu0 %v3087_v17  ;;  %3228 = vmatmul.mubr.f32.vlgmr.msra.gmra.mrb[20].mxu1 %v3087_v17 }
 0xa76   :  { %5022 = vmatpush1.bf16.msra.mxu0 %v6615_v56  ;;  %5054 = vmatpush1.bf16.msra.mxu1 %v6618_v3 }
 0xa77   :  { %5024 = vmatprep.subr.bf16.mxu0 %v6623_v22  ;;  %5056 = vmatprep.subr.bf16.mxu1 %v6625_v60 }
 0xa78   :  { %3326 = vmatprep.mubr.f32.mxu0 %v5881_v0  ;;  %3397 = vmatprep.mubr.f32.mxu1 %v5881_v0 }
 0xa7a   :  { %5026 = vmatpush1.bf16.msra.mxu0 %v6627_v57  ;;  %5058 = vmatpush1.bf16.msra.mxu1 %v6630_v30 }
 0xa7b   :  { %5028 = vmatprep.subr.bf16.mxu0 %v6635_v16  ;;  %5060 = vmatprep.subr.bf16.mxu1 %v6637_v44 }
 0xa7e   :  { %5030 = vmatpush1.bf16.msra.mxu0 %v6639_v54  ;;  %5062 = vmatpush1.bf16.msra.mxu1 %v6642_v24 }
 0xa7f   :  { %5032 = vmatprep.subr.bf16.mxu0 %v6647_v13  ;;  %5064 = vmatprep.subr.bf16.mxu1 %v6649_v53 }
 0xa82   :  { %5034 = vmatpush1.bf16.msra.mxu0 %v6651_v7  ;;  %5066 = vmatpush1.bf16.msra.mxu1 %v6654_v51 }
 0xa83   :  { %5036 = vmatprep.subr.bf16.mxu0 %v6659_v47  ;;  %5068 = vmatprep.subr.bf16.mxu1 %v6661_v55 }
 0xa86   :  { %5038 = vmatpush1.bf16.msra.mxu0 %v6663_v27  ;;  %5070 = vmatpush1.bf16.msra.mxu1 %v6666_v14 }
 0xa87   :  { %5040 = vmatprep.subr.bf16.mxu0 %v6670_v35  ;;  %5072 = vmatprep.subr.bf16.mxu1 %v6672_v33 }
 0xa8a   :  { %5042 = vmatpush1.bf16.msra.mxu0 %v6675_v34  ;;  %5074 = vmatpush1.bf16.msra.mxu1 %v6679_v39 }
 0xa8b   :  { %5044 = vmatprep.subr.bf16.mxu0 %v6681_v41  ;;  %5076 = vmatprep.subr.bf16.mxu1 %v6683_v59 }
 0xa8e   :  { %5046 = vmatpush1.bf16.msra.mxu0 %v6686_v48  ;;  %5078 = vmatpush1.bf16.msra.mxu1 %v6690_v8 }
 0xa8f   :  { %5048 = vmatprep.subr.bf16.mxu0 %v6695_v45  ;;  %5080 = vmatprep.subr.bf16.mxu1 %v6697_v37 }
 0xa92   :  { %5050 = vmatpush1.bf16.msra.mxu0 %v6699_v19  ;;  %5082 = vmatpush1.bf16.msra.mxu1 %v6702_v29 }
 0xa93   :  { %5084 = vmatprep.subr.bf16.mxu0 %v6611_v40  ;;  %5116 = vmatprep.subr.bf16.mxu1 %v6613_v46 }
 0xb48   :  { %v3158_v5 = vpop.f32.mrb[20].mxu0  ;;  %v3229_v11 = vpop.f32.mrb[20].mxu1 }
 0xb49   :  { %v5375_v26 = vadd.f32 %v3158_v5, %v6758_v58  ;;  %v3160_v23 = vpop.f32.mrb[21].mxu0  ;;  %v3231_v4 = vpop.f32.mrb[21].mxu1  ;;  %v5391_v18 = vadd.f32 %v3229_v11, %v6768_v36 }
 0xb4a   :  { %v5376_v21 = vadd.f32 %v3160_v23, %v6762_v20  ;;  %v5392_v6 = vadd.f32 %v3231_v4, %v6772_v2 }
 0xb4b   :  { %v4232_v38 = vmul.f32 -1.442695, %v5375_v26  ;;  %v4234_v43 = vmul.f32 -1.442695, %v5391_v18 }
 0xb4c   :  { %v4233_v62 = vmul.f32 -1.442695, %v5376_v21 }
 0xb4d   :  { %5640 = vpow2.f32 %v4232_v38 }
 0xb4e   :  { %5642 = vpow2.f32 %v4233_v62 }
 0xb4f   :  { %5644 = vtanh.f32 %v5392_v6 }
 0xb50   :  { %5646 = vpow2.f32 %v4234_v43 }
 0xb57   :  { %v5641_v10 = vpop.eup %5640 }
 0xb58   :  { %v3243_v52 = vadd.f32 1.0, %v5641_v10  ;;  %v5643_v42 = vpop.eup %5642 }
 0xb59   :  { %v3244_v9 = vadd.f32 1.0, %v5643_v42  ;;  %v5645_v50 = vpop.eup %5644 }
 0xb5a   :  { %5648 = vrcp.f32 %v3243_v52  ;;  %v5647_v15 = vpop.eup %5646 }
 0xb5b   :  { %5650 = vrcp.f32 %v3244_v9  ;;  %v3245_v28 = vadd.f32 1.0, %v5647_v15 }
 0xb5d   :  { %5652 = vrcp.f32 %v3245_v28 }
 0xb64   :  { %v5649_v12 = vpop.eup %5648 }
 0xb65   :  { %v3254_v63 = vmul.f32 %v5649_v12, %v5645_v50  ;;  %v5651_v1 = vpop.eup %5650 }
 0xb66   :  { %v3253_v61 = vmul.f32 %v5651_v1, %v6821_v32 }
 0xb67   :  { %v5653_v25 = vpop.eup %5652 }
 0xb68   :  { %v6863_v31 = vadd.f32 %v3254_v63, %v3253_v61 }
 0xb6a   :  { %5654 = vtanh.f32 %v6863_v31 }
 0xb74   :  { %v5655_v49 = vpop.eup %5654 }
 0xb75   :  { %v3257_v17 = vmul.f32 %v5655_v49, %v5653_v25 }
 0xb77   :  { %3327 = vmatmul.mubr.f32.vlgmr.msra.gmra.mrb[22].mxu0 %v3257_v17  ;;  %3398 = vmatmul.mubr.f32.vlgmr.msra.gmra.mrb[22].mxu1 %v3257_v17 }
 0xb78   :  { %5086 = vmatpush1.bf16.msra.mxu0 %v6615_v56  ;;  %5118 = vmatpush1.bf16.msra.mxu1 %v6618_v3 }
 0xb79   :  { %5088 = vmatprep.subr.bf16.mxu0 %v6623_v22  ;;  %5120 = vmatprep.subr.bf16.mxu1 %v6625_v60 }
 0xb7a   :  { %3496 = vmatprep.mubr.f32.mxu0 %v5881_v0  ;;  %3567 = vmatprep.mubr.f32.mxu1 %v5881_v0 }
 0xb7c   :  { %5090 = vmatpush1.bf16.msra.mxu0 %v6627_v57  ;;  %5122 = vmatpush1.bf16.msra.mxu1 %v6630_v30 }
 0xb7d   :  { %5092 = vmatprep.subr.bf16.mxu0 %v6635_v16  ;;  %5124 = vmatprep.subr.bf16.mxu1 %v6637_v44 }
 0xb80   :  { %5094 = vmatpush1.bf16.msra.mxu0 %v6639_v54  ;;  %5126 = vmatpush1.bf16.msra.mxu1 %v6642_v24 }
 0xb81   :  { %5096 = vmatprep.subr.bf16.mxu0 %v6647_v13  ;;  %5128 = vmatprep.subr.bf16.mxu1 %v6649_v53 }
 0xb84   :  { %5098 = vmatpush1.bf16.msra.mxu0 %v6651_v7  ;;  %5130 = vmatpush1.bf16.msra.mxu1 %v6654_v51 }
 0xb85   :  { %5100 = vmatprep.subr.bf16.mxu0 %v6659_v47  ;;  %5132 = vmatprep.subr.bf16.mxu1 %v6661_v55 }
 0xb88   :  { %5102 = vmatpush1.bf16.msra.mxu0 %v6663_v27  ;;  %5134 = vmatpush1.bf16.msra.mxu1 %v6666_v14 }
 0xb89   :  { %5104 = vmatprep.subr.bf16.mxu0 %v6670_v35  ;;  %5136 = vmatprep.subr.bf16.mxu1 %v6672_v33 }
 0xb8c   :  { %5106 = vmatpush1.bf16.msra.mxu0 %v6675_v34  ;;  %5138 = vmatpush1.bf16.msra.mxu1 %v6679_v39 }
 0xb8d   :  { %5108 = vmatprep.subr.bf16.mxu0 %v6681_v41  ;;  %5140 = vmatprep.subr.bf16.mxu1 %v6683_v59 }
 0xb90   :  { %5110 = vmatpush1.bf16.msra.mxu0 %v6686_v48  ;;  %5142 = vmatpush1.bf16.msra.mxu1 %v6690_v8 }
 0xb91   :  { %5112 = vmatprep.subr.bf16.mxu0 %v6695_v45  ;;  %5144 = vmatprep.subr.bf16.mxu1 %v6697_v37 }
 0xb94   :  { %5114 = vmatpush1.bf16.msra.mxu0 %v6699_v19  ;;  %5146 = vmatpush1.bf16.msra.mxu1 %v6702_v29 }
 0xb95   :  { %5148 = vmatprep.subr.bf16.mxu0 %v6611_v40  ;;  %5180 = vmatprep.subr.bf16.mxu1 %v6613_v46 }
 0xc4a   :  { %v3328_v32 = vpop.f32.mrb[22].mxu0  ;;  %v3399_v5 = vpop.f32.mrb[22].mxu1 }
 0xc4b   :  { %v5377_v11 = vadd.f32 %v3328_v32, %v6758_v58  ;;  %v3330_v26 = vpop.f32.mrb[23].mxu0  ;;  %v3401_v23 = vpop.f32.mrb[23].mxu1  ;;  %v5393_v62 = vadd.f32 %v3399_v5, %v6768_v36 }
 0xc4c   :  { %v5378_v4 = vadd.f32 %v3330_v26, %v6762_v20  ;;  %v5394_v18 = vadd.f32 %v3401_v23, %v6772_v2 }
 0xc4d   :  { %v4235_v21 = vmul.f32 -1.442695, %v5377_v11  ;;  %v4237_v6 = vmul.f32 -1.442695, %v5393_v62 }
 0xc4e   :  { %v4236_v38 = vmul.f32 -1.442695, %v5378_v4 }
 0xc4f   :  { %5656 = vpow2.f32 %v4235_v21 }
 0xc50   :  { %5658 = vpow2.f32 %v4236_v38 }
 0xc51   :  { %5660 = vtanh.f32 %v5394_v18 }
 0xc52   :  { %5662 = vpow2.f32 %v4237_v6 }
 0xc59   :  { %v5657_v43 = vpop.eup %5656 }
 0xc5a   :  { %v3413_v10 = vadd.f32 1.0, %v5657_v43  ;;  %v5659_v52 = vpop.eup %5658 }
 0xc5b   :  { %v3414_v42 = vadd.f32 1.0, %v5659_v52  ;;  %v5661_v9 = vpop.eup %5660 }
 0xc5c   :  { %5664 = vrcp.f32 %v3413_v10  ;;  %v5663_v50 = vpop.eup %5662 }
 0xc5d   :  { %5666 = vrcp.f32 %v3414_v42  ;;  %v3415_v1 = vadd.f32 1.0, %v5663_v50 }
 0xc5f   :  { %5668 = vrcp.f32 %v3415_v1 }
 0xc66   :  { %v5665_v15 = vpop.eup %5664 }
 0xc67   :  { %v3424_v12 = vmul.f32 %v5665_v15, %v5661_v9  ;;  %v5667_v63 = vpop.eup %5666 }
 0xc68   :  { %v3423_v28 = vmul.f32 %v5667_v63, %v6863_v31 }
 0xc69   :  { %v5669_v25 = vpop.eup %5668 }
 0xc6a   :  { %v6905_v61 = vadd.f32 %v3424_v12, %v3423_v28 }
 0xc6c   :  { %5670 = vtanh.f32 %v6905_v61 }
 0xc76   :  { %v5671_v49 = vpop.eup %5670 }
 0xc77   :  { %v3427_v17 = vmul.f32 %v5671_v49, %v5669_v25 }
 0xc79   :  { %3497 = vmatmul.mubr.f32.vlgmr.msra.gmra.mrb[24].mxu0 %v3427_v17  ;;  %3568 = vmatmul.mubr.f32.vlgmr.msra.gmra.mrb[24].mxu1 %v3427_v17 }
 0xc7a   :  { %5150 = vmatpush1.bf16.msra.mxu0 %v6615_v56  ;;  %5182 = vmatpush1.bf16.msra.mxu1 %v6618_v3 }
 0xc7b   :  { %5152 = vmatprep.subr.bf16.mxu0 %v6623_v22  ;;  %5184 = vmatprep.subr.bf16.mxu1 %v6625_v60 }
 0xc7c   :  { %3666 = vmatprep.mubr.f32.mxu0 %v5881_v0  ;;  %3737 = vmatprep.mubr.f32.mxu1 %v5881_v0 }
 0xc7e   :  { %5154 = vmatpush1.bf16.msra.mxu0 %v6627_v57  ;;  %5186 = vmatpush1.bf16.msra.mxu1 %v6630_v30 }
 0xc7f   :  { %5156 = vmatprep.subr.bf16.mxu0 %v6635_v16  ;;  %5188 = vmatprep.subr.bf16.mxu1 %v6637_v44 }
 0xc82   :  { %5158 = vmatpush1.bf16.msra.mxu0 %v6639_v54  ;;  %5190 = vmatpush1.bf16.msra.mxu1 %v6642_v24 }
 0xc83   :  { %5160 = vmatprep.subr.bf16.mxu0 %v6647_v13  ;;  %5192 = vmatprep.subr.bf16.mxu1 %v6649_v53 }
 0xc86   :  { %5162 = vmatpush1.bf16.msra.mxu0 %v6651_v7  ;;  %5194 = vmatpush1.bf16.msra.mxu1 %v6654_v51 }
 0xc87   :  { %5164 = vmatprep.subr.bf16.mxu0 %v6659_v47  ;;  %5196 = vmatprep.subr.bf16.mxu1 %v6661_v55 }
 0xc8a   :  { %5166 = vmatpush1.bf16.msra.mxu0 %v6663_v27  ;;  %5198 = vmatpush1.bf16.msra.mxu1 %v6666_v14 }
 0xc8b   :  { %5168 = vmatprep.subr.bf16.mxu0 %v6670_v35  ;;  %5200 = vmatprep.subr.bf16.mxu1 %v6672_v33 }
 0xc8e   :  { %5170 = vmatpush1.bf16.msra.mxu0 %v6675_v34  ;;  %5202 = vmatpush1.bf16.msra.mxu1 %v6679_v39 }
 0xc8f   :  { %5172 = vmatprep.subr.bf16.mxu0 %v6681_v41  ;;  %5204 = vmatprep.subr.bf16.mxu1 %v6683_v59 }
 0xc92   :  { %5174 = vmatpush1.bf16.msra.mxu0 %v6686_v48  ;;  %5206 = vmatpush1.bf16.msra.mxu1 %v6690_v8 }
 0xc93   :  { %5176 = vmatprep.subr.bf16.mxu0 %v6695_v45  ;;  %5208 = vmatprep.subr.bf16.mxu1 %v6697_v37 }
 0xc96   :  { %5178 = vmatpush1.bf16.msra.mxu0 %v6699_v19  ;;  %5210 = vmatpush1.bf16.msra.mxu1 %v6702_v29 }
 0xc97   :  { %5212 = vmatprep.subr.bf16.mxu0 %v6611_v40  ;;  %5244 = vmatprep.subr.bf16.mxu1 %v6613_v46 }
 0xd4c   :  { %v3498_v31 = vpop.f32.mrb[24].mxu0  ;;  %v3569_v32 = vpop.f32.mrb[24].mxu1 }
 0xd4d   :  { %v5379_v5 = vadd.f32 %v3498_v31, %v6758_v58  ;;  %v3500_v11 = vpop.f32.mrb[25].mxu0  ;;  %v3571_v26 = vpop.f32.mrb[25].mxu1  ;;  %v5395_v38 = vadd.f32 %v3569_v32, %v6768_v36 }
 0xd4e   :  { %v5380_v23 = vadd.f32 %v3500_v11, %v6762_v20  ;;  %v5396_v62 = vadd.f32 %v3571_v26, %v6772_v2 }
 0xd4f   :  { %v4238_v4 = vmul.f32 -1.442695, %v5379_v5  ;;  %v4240_v18 = vmul.f32 -1.442695, %v5395_v38 }
 0xd50   :  { %v4239_v21 = vmul.f32 -1.442695, %v5380_v23 }
 0xd51   :  { %5672 = vpow2.f32 %v4238_v4 }
 0xd52   :  { %5674 = vpow2.f32 %v4239_v21 }
 0xd53   :  { %5676 = vtanh.f32 %v5396_v62 }
 0xd54   :  { %5678 = vpow2.f32 %v4240_v18 }
 0xd5b   :  { %v5673_v6 = vpop.eup %5672 }
 0xd5c   :  { %v3583_v43 = vadd.f32 1.0, %v5673_v6  ;;  %v5675_v10 = vpop.eup %5674 }
 0xd5d   :  { %v3584_v52 = vadd.f32 1.0, %v5675_v10  ;;  %v5677_v42 = vpop.eup %5676 }
 0xd5e   :  { %5680 = vrcp.f32 %v3583_v43  ;;  %v5679_v9 = vpop.eup %5678 }
 0xd5f   :  { %5682 = vrcp.f32 %v3584_v52  ;;  %v3585_v63 = vadd.f32 1.0, %v5679_v9 }
 0xd61   :  { %5684 = vrcp.f32 %v3585_v63 }
 0xd68   :  { %v5681_v50 = vpop.eup %5680 }
 0xd69   :  { %v3594_v15 = vmul.f32 %v5681_v50, %v5677_v42  ;;  %v5683_v12 = vpop.eup %5682 }
 0xd6a   :  { %v3593_v1 = vmul.f32 %v5683_v12, %v6905_v61 }
 0xd6b   :  { %v5685_v25 = vpop.eup %5684 }
 0xd6c   :  { %v6947_v28 = vadd.f32 %v3594_v15, %v3593_v1 }
 0xd6e   :  { %5686 = vtanh.f32 %v6947_v28 }
 0xd78   :  { %v5687_v49 = vpop.eup %5686 }
 0xd79   :  { %v3597_v17 = vmul.f32 %v5687_v49, %v5685_v25 }
 0xd7b   :  { %3667 = vmatmul.mubr.f32.vlgmr.msra.gmra.mrb[26].mxu0 %v3597_v17  ;;  %3738 = vmatmul.mubr.f32.vlgmr.msra.gmra.mrb[26].mxu1 %v3597_v17 }
 0xd7c   :  { %5214 = vmatpush1.bf16.msra.mxu0 %v6615_v56  ;;  %5246 = vmatpush1.bf16.msra.mxu1 %v6618_v3 }
 0xd7d   :  { %5216 = vmatprep.subr.bf16.mxu0 %v6623_v22  ;;  %5248 = vmatprep.subr.bf16.mxu1 %v6625_v60 }
 0xd7e   :  { %3836 = vmatprep.mubr.f32.mxu0 %v5881_v0  ;;  %3907 = vmatprep.mubr.f32.mxu1 %v5881_v0 }
 0xd80   :  { %5218 = vmatpush1.bf16.msra.mxu0 %v6627_v57  ;;  %5250 = vmatpush1.bf16.msra.mxu1 %v6630_v30 }
 0xd81   :  { %5220 = vmatprep.subr.bf16.mxu0 %v6635_v16  ;;  %5252 = vmatprep.subr.bf16.mxu1 %v6637_v44 }
 0xd84   :  { %5222 = vmatpush1.bf16.msra.mxu0 %v6639_v54  ;;  %5254 = vmatpush1.bf16.msra.mxu1 %v6642_v24 }
 0xd85   :  { %5224 = vmatprep.subr.bf16.mxu0 %v6647_v13  ;;  %5256 = vmatprep.subr.bf16.mxu1 %v6649_v53 }
 0xd88   :  { %5226 = vmatpush1.bf16.msra.mxu0 %v6651_v7  ;;  %5258 = vmatpush1.bf16.msra.mxu1 %v6654_v51 }
 0xd89   :  { %5228 = vmatprep.subr.bf16.mxu0 %v6659_v47  ;;  %5260 = vmatprep.subr.bf16.mxu1 %v6661_v55 }
 0xd8c   :  { %5230 = vmatpush1.bf16.msra.mxu0 %v6663_v27  ;;  %5262 = vmatpush1.bf16.msra.mxu1 %v6666_v14 }
 0xd8d   :  { %5232 = vmatprep.subr.bf16.mxu0 %v6670_v35  ;;  %5264 = vmatprep.subr.bf16.mxu1 %v6672_v33 }
 0xd90   :  { %5234 = vmatpush1.bf16.msra.mxu0 %v6675_v34  ;;  %5266 = vmatpush1.bf16.msra.mxu1 %v6679_v39 }
 0xd91   :  { %5236 = vmatprep.subr.bf16.mxu0 %v6681_v41  ;;  %5268 = vmatprep.subr.bf16.mxu1 %v6683_v59 }
 0xd94   :  { %5238 = vmatpush1.bf16.msra.mxu0 %v6686_v48  ;;  %5270 = vmatpush1.bf16.msra.mxu1 %v6690_v8 }
 0xd95   :  { %5240 = vmatprep.subr.bf16.mxu0 %v6695_v45  ;;  %5272 = vmatprep.subr.bf16.mxu1 %v6697_v37 }
 0xd98   :  { %5242 = vmatpush1.bf16.msra.mxu0 %v6699_v19  ;;  %5274 = vmatpush1.bf16.msra.mxu1 %v6702_v29 }
 0xd99   :  { %5276 = vmatprep.subr.bf16.mxu0 %v6611_v40  ;;  %5308 = vmatprep.subr.bf16.mxu1 %v6613_v46 }
 0xe4e   :  { %v3668_v61 = vpop.f32.mrb[26].mxu0  ;;  %v3739_v31 = vpop.f32.mrb[26].mxu1 }
 0xe4f   :  { %v5381_v32 = vadd.f32 %v3668_v61, %v6758_v58  ;;  %v3670_v5 = vpop.f32.mrb[27].mxu0  ;;  %v3741_v11 = vpop.f32.mrb[27].mxu1  ;;  %v5397_v21 = vadd.f32 %v3739_v31, %v6768_v36 }
 0xe50   :  { %v5382_v26 = vadd.f32 %v3670_v5, %v6762_v20  ;;  %v5398_v38 = vadd.f32 %v3741_v11, %v6772_v2 }
 0xe51   :  { %v4241_v23 = vmul.f32 -1.442695, %v5381_v32  ;;  %v4243_v62 = vmul.f32 -1.442695, %v5397_v21 }
 0xe52   :  { %v4242_v4 = vmul.f32 -1.442695, %v5382_v26 }
 0xe53   :  { %5688 = vpow2.f32 %v4241_v23 }
 0xe54   :  { %5690 = vpow2.f32 %v4242_v4 }
 0xe55   :  { %5692 = vtanh.f32 %v5398_v38 }
 0xe56   :  { %5694 = vpow2.f32 %v4243_v62 }
 0xe5d   :  { %v5689_v40 = vpop.eup %5688 }
 0xe5e   :  { %v3753_v18 = vadd.f32 1.0, %v5689_v40  ;;  %v5691_v46 = vpop.eup %5690 }
 0xe5f   :  { %v3754_v6 = vadd.f32 1.0, %v5691_v46  ;;  %v5693_v43 = vpop.eup %5692  ;;  %v4250_v46 = vld [vmem:[%s7084_s9] ss:$0 sm:$0xff] }
 0xe60   :  { %5696 = vrcp.f32 %v3753_v18  ;;  %v5695_v10 = vpop.eup %5694 }
 0xe61   :  { %5698 = vrcp.f32 %v3754_v6  ;;  %v3755_v50 = vadd.f32 1.0, %v5695_v10 }
 0xe63   :  { %5700 = vrcp.f32 %v3755_v50 }
 0xe6a   :  { %v5697_v52 = vpop.eup %5696 }
 0xe6b   :  { %v3764_v42 = vmul.f32 %v5697_v52, %v5693_v43  ;;  %v5699_v9 = vpop.eup %5698 }
 0xe6c   :  { %v3763_v15 = vmul.f32 %v5699_v9, %v6947_v28 }
 0xe6d   :  { %v5701_v63 = vpop.eup %5700 }
 0xe6e   :  { %v6989_v12 = vadd.f32 %v3764_v42, %v3763_v15 }
 0xe70   :  { %5702 = vtanh.f32 %v6989_v12 }
 0xe7a   :  { %v5703_v1 = vpop.eup %5702 }
 0xe7b   :  { %v3767_v25 = vmul.f32 %v5703_v1, %v5701_v63 }
 0xe7d   :  { %3837 = vmatmul.mubr.f32.vlgmr.msra.gmra.mrb[28].mxu0 %v3767_v25  ;;  %3908 = vmatmul.mubr.f32.vlgmr.msra.gmra.mrb[28].mxu1 %v3767_v25 }
 0xe7e   :  { %5278 = vmatpush1.bf16.msra.mxu0 %v6615_v56  ;;  %5310 = vmatpush1.bf16.msra.mxu1 %v6618_v3 }
 0xe7f   :  { %5280 = vmatprep.subr.bf16.mxu0 %v6623_v22  ;;  %5312 = vmatprep.subr.bf16.mxu1 %v6625_v60 }
 0xe80   :  { %4006 = vmatprep.mubr.f32.mxu0 %v5881_v0  ;;  %4077 = vmatprep.mubr.f32.mxu1 %v5881_v0 }
 0xe82   :  { %5282 = vmatpush1.bf16.msra.mxu0 %v6627_v57  ;;  %5314 = vmatpush1.bf16.msra.mxu1 %v6630_v30 }
 0xe83   :  { %5284 = vmatprep.subr.bf16.mxu0 %v6635_v16  ;;  %5316 = vmatprep.subr.bf16.mxu1 %v6637_v44 }
 0xe86   :  { %5286 = vmatpush1.bf16.msra.mxu0 %v6639_v54  ;;  %5318 = vmatpush1.bf16.msra.mxu1 %v6642_v24 }
 0xe87   :  { %5288 = vmatprep.subr.bf16.mxu0 %v6647_v13  ;;  %5320 = vmatprep.subr.bf16.mxu1 %v6649_v53 }
 0xe8a   :  { %5290 = vmatpush1.bf16.msra.mxu0 %v6651_v7  ;;  %5322 = vmatpush1.bf16.msra.mxu1 %v6654_v51 }
 0xe8b   :  { %5292 = vmatprep.subr.bf16.mxu0 %v6659_v47  ;;  %5324 = vmatprep.subr.bf16.mxu1 %v6661_v55 }
 0xe8e   :  { %5294 = vmatpush1.bf16.msra.mxu0 %v6663_v27  ;;  %5326 = vmatpush1.bf16.msra.mxu1 %v6666_v14 }
 0xe8f   :  { %5296 = vmatprep.subr.bf16.mxu0 %v6670_v35  ;;  %5328 = vmatprep.subr.bf16.mxu1 %v6672_v33 }
 0xe92   :  { %5298 = vmatpush1.bf16.msra.mxu0 %v6675_v34  ;;  %5330 = vmatpush1.bf16.msra.mxu1 %v6679_v39 }
 0xe93   :  { %5300 = vmatprep.subr.bf16.mxu0 %v6681_v41  ;;  %5332 = vmatprep.subr.bf16.mxu1 %v6683_v59 }
 0xe96   :  { %5302 = vmatpush1.bf16.msra.mxu0 %v6686_v48  ;;  %5334 = vmatpush1.bf16.msra.mxu1 %v6690_v8 }
 0xe97   :  { %5304 = vmatprep.subr.bf16.mxu0 %v6695_v45  ;;  %5336 = vmatprep.subr.bf16.mxu1 %v6697_v37 }
 0xe9a   :  { %5306 = vmatpush1.bf16.msra.mxu0 %v6699_v19  ;;  %5338 = vmatpush1.bf16.msra.mxu1 %v6702_v29 }
 0xf50   :  { %v3838_v0 = vpop.f32.mrb[28].mxu0  ;;  %v3909_v56 = vpop.f32.mrb[28].mxu1 }
 0xf51   :  { %v5383_v3 = vadd.f32 %v3838_v0, %v6758_v58  ;;  %v3840_v22 = vpop.f32.mrb[29].mxu0  ;;  %v3911_v60 = vpop.f32.mrb[29].mxu1  ;;  %v5399_v44 = vadd.f32 %v3909_v56, %v6768_v36 }
 0xf52   :  { %v5384_v57 = vadd.f32 %v3840_v22, %v6762_v20  ;;  %v5400_v54 = vadd.f32 %v3911_v60, %v6772_v2 }
 0xf53   :  { %v4244_v30 = vmul.f32 -1.442695, %v5383_v3  ;;  %v4246_v24 = vmul.f32 -1.442695, %v5399_v44 }
 0xf54   :  { %v4245_v16 = vmul.f32 -1.442695, %v5384_v57 }
 0xf55   :  { %5704 = vpow2.f32 %v4244_v30 }
 0xf56   :  { %5706 = vpow2.f32 %v4245_v16 }
 0xf57   :  { %5708 = vtanh.f32 %v5400_v54 }
 0xf58   :  { %5710 = vpow2.f32 %v4246_v24 }
 0xf5f   :  { %v5705_v13 = vpop.eup %5704 }
 0xf60   :  { %v3923_v53 = vadd.f32 1.0, %v5705_v13  ;;  %v5707_v7 = vpop.eup %5706 }
 0xf61   :  { %v3924_v51 = vadd.f32 1.0, %v5707_v7  ;;  %v5709_v47 = vpop.eup %5708 }
 0xf62   :  { %5712 = vrcp.f32 %v3923_v53  ;;  %v5711_v55 = vpop.eup %5710 }
 0xf63   :  { %5714 = vrcp.f32 %v3924_v51  ;;  %v3925_v33 = vadd.f32 1.0, %v5711_v55 }
 0xf65   :  { %5716 = vrcp.f32 %v3925_v33 }
 0xf6c   :  { %v5713_v27 = vpop.eup %5712 }
 0xf6d   :  { %v3934_v14 = vmul.f32 %v5713_v27, %v5709_v47  ;;  %v5715_v35 = vpop.eup %5714 }
 0xf6e   :  { %v3933_v34 = vmul.f32 %v5715_v35, %v6989_v12 }
 0xf6f   :  { %v5717_v41 = vpop.eup %5716 }
 0xf70   :  { %v3935_v39 = vadd.f32 %v3934_v14, %v3933_v34 }
 0xf72   :  { %5718 = vtanh.f32 %v3935_v39 }
 0xf7c   :  { %v5719_v59 = vpop.eup %5718 }
 0xf7d   :  { %v3937_v48 = vmul.f32 %v5719_v59, %v5717_v41 }
 0xf7f   :  { %4007 = vmatmul.mubr.f32.vlgmr.msra.gmra.mrb[30].mxu0 %v3937_v48  ;;  %4078 = vmatmul.mubr.f32.vlgmr.msra.gmra.mrb[30].mxu1 %v3937_v48 }
0x1052   :  { %v4008_v8 = vpop.f32.mrb[30].mxu0  ;;  %v4079_v45 = vpop.f32.mrb[30].mxu1 }
0x1053   :  { %v5385_v37 = vadd.f32 %v4008_v8, %v6758_v58  ;;  %v4010_v19 = vpop.f32.mrb[31].mxu0  ;;  %v4081_v29 = vpop.f32.mrb[31].mxu1  ;;  %v5401_v61 = vadd.f32 %v4079_v45, %v6768_v36 }
0x1054   :  { %v5386_v28 = vadd.f32 %v4010_v19, %v6762_v20  ;;  %v5402_v31 = vadd.f32 %v4081_v29, %v6772_v2 }
0x1055   :  { %v4247_v49 = vmul.f32 -1.442695, %v5385_v37  ;;  %v4249_v32 = vmul.f32 -1.442695, %v5401_v61 }
0x1056   :  { %v4248_v17 = vmul.f32 -1.442695, %v5386_v28 }
0x1057   :  { %5720 = vpow2.f32 %v4247_v49 }
0x1058   :  { %5722 = vpow2.f32 %v4248_v17 }
0x1059   :  { %5724 = vtanh.f32 %v5402_v31 }
0x105a   :  { %5726 = vpow2.f32 %v4249_v32 }
0x1061   :  { %v5721_v5 = vpop.eup %5720 }
0x1062   :  { %v4093_v11 = vadd.f32 1.0, %v5721_v5  ;;  %v5723_v26 = vpop.eup %5722 }
0x1063   :  { %v4094_v58 = vadd.f32 1.0, %v5723_v26  ;;  %v5725_v23 = vpop.eup %5724 }
0x1064   :  { %5728 = vrcp.f32 %v4093_v11  ;;  %v5727_v4 = vpop.eup %5726 }
0x1065   :  { %5730 = vrcp.f32 %v4094_v58  ;;  %v4095_v62 = vadd.f32 1.0, %v5727_v4 }
0x1067   :  { %5732 = vrcp.f32 %v4095_v62 }
0x106e   :  { %v5729_v20 = vpop.eup %5728 }
0x106f   :  { %v4104_v21 = vmul.f32 %v5729_v20, %v5725_v23  ;;  %v5731_v38 = vpop.eup %5730 }
0x1070   :  { %v4103_v40 = vmul.f32 %v5731_v38, %v3935_v39 }
0x1071   :  { %v5733_v36 = vpop.eup %5732 }
0x1072   :  { %v4105_v18 = vadd.f32 %v4104_v21, %v4103_v40 }
0x1074   :  { %4111 = vst [vmem:[#allocation14 + $0x8] sm:$0xff] %v4105_v18  ;;  %5734 = vtanh.f32 %v4105_v18 }
0x107e   :  { %v5735_v2 = vpop.eup %5734 }
0x107f   :  { %v4107_v6 = vmul.f32 %v5735_v2, %v5733_v36 }
0x1081   :  { %4109 = vst [vmem:[#allocation12 + $0x8] sm:$0xff] %v4107_v6  ;;  %v4119_v43 = vmul.f32 %v4250_v46, %v4107_v6 }
0x1083   :  { %4120 = vadd.xlane.f32.xlu0 %v4119_v43 }
0x1084   :  { %5813 = shalt.err (!%p5810_p0)
}
0x1085   :  { %s5814_s23 = scalar_lea.hbm %s7087_s12, 256 }
0x1086   :  { %p5815_p1 = scmp.ne.s32.totalorder %s7087_s12, %s5814_s23  ;;  %p5818_p2 = scmp.lt.u32.totalorder %s5814_s23, %s7087_s12 }
0x1088   :  { %p5820_p3 = pnand %p5818_p2, %p5815_p1 }
0x108a   :  { %5823 = shalt.err (!%p5820_p3)
}
0x108b   :  { %s5883_s29 = smov 128   ;;  %s5884_s30 = smov 8  }
0x108c   :  { %4147 = dma.vmem_to_hbm [thread:$0]  %s4142_s17, 256, %s7087_s12, [#allocation13], %s5883_s29, %s5883_s29, %s5884_s30  }
0x108d   :  { %s5885_s28 = smov [#allocation14]  }
0x108e   :  { %s4153_s14 = sshll.u32 %s5885_s28, 4  ;;  %s4154_s14 = int_to_ptr.vmem [resolvable:$true] %s4153_s14 }
0x108f   :  { %s5824_s15 = scalar_lea.vmem %s4154_s14, 256  ;;  %p5829_p5 = scmp.lt.s32.totalorder %s4154_s14, %s4154_s14 }
0x1090   :  { %p5825_p4 = scmp.ne.s32.totalorder %s4154_s14, %s5824_s15  ;;  %p5830_p6 = scmp.lt.s32.totalorder %s5824_s15, %s5824_s15 }
0x1092   :  { %p5831_p7 = por %p5830_p6, %p5829_p5 }
0x1094   :  { %p5832_p8 = pnand %p5831_p7, %p5825_p4 }
0x1096   :  { %5835 = shalt.err (!%p5832_p8)
}
0x1097   :  { %s5836_s6 = scalar_lea.hbm %s7088_s13, 256 }
0x1098   :  { %p5837_p9 = scmp.ne.s32.totalorder %s7088_s13, %s5836_s6  ;;  %p5840_p10 = scmp.lt.u32.totalorder %s5836_s6, %s7088_s13 }
0x109a   :  { %p5842_p11 = pnand %p5840_p10, %p5837_p9 }
0x109c   :  { %5845 = shalt.err (!%p5842_p11)
}
0x109d   :  { %4159 = dma.vmem_to_hbm [thread:$0]  %s4154_s14, 256, %s7088_s13, [#allocation13], %s5883_s29, %s5883_s29, %s5884_s30  }
0x109e   :  { %v4123_v10 = vstv %s7085_s10  ;;  %s5886_s21 = smov [#allocation11]  }
0x109f   :  { %s4132_s17 = sshll.u32 %s5886_s21, 4  ;;  %s4133_s17 = int_to_ptr.vmem [resolvable:$true] %s4132_s17 }
0x10a0   :  { %s5846_s18 = scalar_lea.vmem %s4133_s17, 128  ;;  %p5851_p13 = scmp.lt.s32.totalorder %s4133_s17, %s4133_s17 }
0x10a1   :  { %p5847_p12 = scmp.ne.s32.totalorder %s4133_s17, %s5846_s18  ;;  %p5852_p0 = scmp.lt.s32.totalorder %s5846_s18, %s5846_s18 }
0x10a3   :  { %p5853_p1 = por %p5852_p0, %p5851_p13 }
0x10a5   :  { %p5854_p2 = pnand %p5853_p1, %p5847_p12 }
0x1110   :  { %v4121_v52 = vpop.xlane.xlu0 %4120 }
0x1111   :  { %v4124_v42 = vadd.f32 %v4123_v10, %v4121_v52 }
0x1113   :  { %4125 = vst [vmem:[#allocation11] sm:$0xff] %v4124_v42 }
0x1114   :  { %5857 = shalt.err (!%p5854_p2)
}
0x1115   :  { %s5858_s13 = scalar_lea.hbm %s7086_s11, 128 }
0x1116   :  { %p5859_p3 = scmp.ne.s32.totalorder %s7086_s11, %s5858_s13  ;;  %p5862_p4 = scmp.lt.u32.totalorder %s5858_s13, %s7086_s11 }
0x1118   :  { %p5864_p5 = pnand %p5862_p4, %p5859_p3 }
0x111a   :  { %5867 = shalt.err (!%p5864_p5)
}
0x111b   :  { %4135 = dma.vmem_to_hbm [thread:$0]  %s4133_s17, 128, %s7086_s11, [#allocation7]  }
0x111c   :  { %5872 = dma.done.wait [#allocation7], 128  }
0x111d   :  { %5873 = vsyncadd [#allocation7], 4294967168 }
0x111e   :  { %5874 = dma.done.wait [#allocation13], 512  }
0x111f   :  { %5875 = vsyncadd [#allocation13], 4294966784 }
0x1120   :  { %4169 = vsyncpa [#allocation6], 1 }
0x1121   :  { %4170 = vsyncpa [#allocation9], 1 }
0x1122   :  { %4171 = vsyncpa [#allocation7], 1 }
0x1123   :  { %4172 = vsyncpa [#allocation13], 1 }

</bundles_post_ra>
